<compile_context>
chip_gen: v7x
topology: tpu7x:2x2x1
jax: 0.10.0
libtpu: 0.0.40
codegen_flags: <defaults>
</compile_context>

<pallas_src>
import numpy as np

import jax
import jax.numpy as jnp
from jax.experimental import pallas as pl
from jax.experimental.pallas import tpu as pltpu


# ----------------------------------------------------------------------------
# Static 0/1 gather ("in-kernel im2col") matrices for a 4x4 / stride-2 / pad-1
# conv:  sel[kh*kw, M_out, M_in] with sel[k, m_out, m_in] = 1 iff output
# position m_out reads input position m_in for kernel offset k (zero rows give
# the zero padding for free).  Built with numpy at trace time -> constants.
# ----------------------------------------------------------------------------
def _make_selection(h_in, w_in, kh=4, kw=4, stride=2, pad=1):
    oh = (h_in + 2 * pad - kh) // stride + 1
    ow = (w_in + 2 * pad - kw) // stride + 1
    sel = np.zeros((kh * kw, oh * ow, h_in * w_in), np.float32)
    for ih in range(kh):
        for iw in range(kw):
            k = ih * kw + iw
            for a in range(oh):
                hh = stride * a + ih - pad
                if hh < 0 or hh >= h_in:
                    continue
                for b in range(ow):
                    ww = stride * b + iw - pad
                    if 0 <= ww < w_in:
                        sel[k, a * ow + b, hh * w_in + ww] = 1.0
    return sel


# ----------------------------------------------------------------------------
# Fused kernel: one batch element per grid step, all layers in VMEM.
# ----------------------------------------------------------------------------
def _conv_block(act_bf16, s_ref, w_ref, b_ref, m_out, c_out, slope=0.2):
    """One conv layer: 16 x [gather matmul -> weight matmul], f32 accumulate."""
    acc = jnp.zeros((m_out, c_out), jnp.float32)
    for off in range(16):  # unrolled over the 4x4 kernel taps
        # (M_out, M_in) @ (M_in, C_in) -> gathered patch slab (M_out, C_in)
        g = jnp.dot(s_ref[off], act_bf16, preferred_element_type=jnp.float32)
        # (M_out, C_in) @ (C_in, C_out), accumulate in f32
        acc = acc + jnp.dot(g.astype(jnp.bfloat16), w_ref[off],
                            preferred_element_type=jnp.float32)
    acc = acc + b_ref[...]
    return jnp.where(acc > 0, acc, slope * acc)  # LeakyReLU(0.2) in f32


def _disc_kernel(p1_ref, w1_ref, b1_ref,
                 s2_ref, w2_ref, b2_ref,
                 s3_ref, w3_ref, b3_ref,
                 s4_ref, w4_ref, b4_ref,
                 o_ref):
    f32, bf16 = jnp.float32, jnp.bfloat16

    # ---- layer 1: pre-built patches (256, 128) @ (128, 64), K padded to 128
    a = jnp.dot(p1_ref[0], w1_ref[...], preferred_element_type=f32)
    a = a + b1_ref[...]
    a = jnp.where(a > 0, a, 0.2 * a)                       # (256, 64) f32

    # ---- layer 2: 16x16x64 -> 8x8x128 (in-kernel im2col via selection matmuls)
    a = _conv_block(a.astype(bf16), s2_ref, w2_ref, b2_ref, 64, 128)
    # ---- layer 3: 8x8x128 -> 4x4x256
    a = _conv_block(a.astype(bf16), s3_ref, w3_ref, b3_ref, 16, 256)

    # ---- layer 4: 4x4x256 -> 2x2x1. Cout=1 => VPU multiply + lane reduction
    a_b = a.astype(bf16)
    acc = jnp.zeros((4, 1), f32)
    for off in range(16):
        g = jnp.dot(s4_ref[off], a_b, preferred_element_type=f32)   # (4, 256)
        w = w4_ref[off].astype(f32)                                  # (1, 256)
        acc = acc + jnp.sum(g * w, axis=-1, keepdims=True)           # (4, 1)
    y = acc + b4_ref[...]

    # sigmoid: exp + EUP approx reciprocal (clamped to guard approx overshoot)
    y = pl.reciprocal(1.0 + jnp.exp(-y), approx=True)
    o_ref[0] = jnp.minimum(y, 1.0).astype(o_ref.dtype)


# ----------------------------------------------------------------------------
# Wrapper: layout prep (cheap XLA glue) + single pallas_call
# ----------------------------------------------------------------------------
def discriminator_forward(x_nchw, params):
    (w1, b1), (w2, b2), (w3, b3), (w4, b4) = params
    n = x_nchw.shape[0]
    bf16, f32 = jnp.bfloat16, jnp.float32

    # layer-1 patches: NCHW -> NHWC, Cin pad 3->8 (K=128), spatial pad, im2col
    x = jnp.transpose(x_nchw, (0, 2, 3, 1)).astype(f32)          # (N,32,32,3)
    x = jnp.pad(x, ((0, 0), (0, 0), (0, 0), (0, 5)))             # (N,32,32,8)
    xp = jnp.pad(x, ((0, 0), (1, 1), (1, 1), (0, 0)))            # (N,34,34,8)
    oh = ow = 16
    cols = []
    for ih in range(4):
        for iw in range(4):
            sl = xp[:, ih:ih + 2 * oh - 1:2, iw:iw + 2 * ow - 1:2, :]
            cols.append(sl.reshape(n, oh * ow, 8))
    p1 = jnp.concatenate(cols, axis=-1).astype(bf16)             # (N,256,128)

    # weights -> (kh*kw, Cin, Cout) bf16 ; layer-1 Cin padded 3->8
    w1m = jnp.pad(w1, ((0, 0), (0, 5), (0, 0), (0, 0)))
    w1m = jnp.transpose(w1m, (2, 3, 1, 0)).reshape(128, 64).astype(bf16)
    w2m = jnp.transpose(w2, (2, 3, 1, 0)).reshape(16, 64, 128).astype(bf16)
    w3m = jnp.transpose(w3, (2, 3, 1, 0)).reshape(16, 128, 256).astype(bf16)
    w4m = jnp.transpose(w4, (2, 3, 0, 1)).reshape(16, 1, 256).astype(bf16)

    b1r = b1.reshape(1, 64).astype(f32)
    b2r = b2.reshape(1, 128).astype(f32)
    b3r = b3.reshape(1, 256).astype(f32)
    b4r = b4.reshape(1, 1).astype(f32)

    # static gather matrices for layers 2..4 (trace-time constants, ~0.6 MB)
    s2 = jnp.asarray(_make_selection(16, 16), dtype=bf16)        # (16, 64, 256)
    s3 = jnp.asarray(_make_selection(8, 8), dtype=bf16)          # (16, 16, 64)
    s4 = jnp.asarray(_make_selection(4, 4), dtype=bf16)          # (16, 4, 16)

    def full(*shape):
        return pl.BlockSpec(shape, lambda b: (0,) * len(shape))

    out = pl.pallas_call(
        _disc_kernel,
        out_shape=jax.ShapeDtypeStruct((n, 4, 1), f32),
        grid=(n,),
        in_specs=[
            pl.BlockSpec((1, 256, 128), lambda b: (b, 0, 0)),    # layer-1 patches
            full(128, 64), full(1, 64),                          # W1, b1
            full(16, 64, 256), full(16, 64, 128), full(1, 128),  # S2, W2, b2
            full(16, 16, 64), full(16, 128, 256), full(1, 256),  # S3, W3, b3
            full(16, 4, 16), full(16, 1, 256), full(1, 1),       # S4, W4, b4
        ],
        out_specs=pl.BlockSpec((1, 4, 1), lambda b: (b, 0, 0)),
        compiler_params=pltpu.CompilerParams(
            dimension_semantics=("parallel",),       # v7x: one image per core
            vmem_limit_bytes=32 * 1024 * 1024,       # safe on v7x's 64 MiB VMEM
        ),
    )(p1, w1m, b1r, s2, w2m, b2r, s3, w3m, b3r, s4, w4m, b4r)

    out = out.reshape(n, 2, 2, 1)                                # NHWC
    return jnp.transpose(out, (0, 3, 1, 2))                      # NCHW


# ----------------------------------------------------------------------------
# Params (PyTorch-style uniform init) and smoke test
# ----------------------------------------------------------------------------
def init_params(key):
    shapes = [
        (64, 3, 4, 4),
        (128, 64, 4, 4),
        (256, 128, 4, 4),
        (1, 256, 4, 4),
    ]
    params = []
    for i, s in enumerate(shapes):
        kw_, kb_ = jax.random.split(jax.random.fold_in(key, i))
        fan_in = s[1] * s[2] * s[3]
        bound = 1.0 / jnp.sqrt(fan_in)
        w = jax.random.uniform(kw_, s, jnp.float32, -bound, bound)
        b = jax.random.uniform(kb_, (s[0],), jnp.float32, -bound, bound)
        params.append((w, b))
    return params


if __name__ == "__main__":
    key = jax.random.PRNGKey(0)
    k_x, k_p = jax.random.split(key)
    # 4 stride-2 convs: 32 -> 16 -> 8 -> 4 -> 2
    x = jax.random.normal(k_x, (2, 3, 32, 32), jnp.float32)
    params = init_params(k_p)

    out = jax.jit(discriminator_forward)(x, params)
    out = jax.block_until_ready(out)

    assert out.shape == (2, 1, 2, 2), out.shape
    assert bool(jnp.all((out >= 0.0) & (out <= 1.0)))
    print("KERNEL_OK")
</pallas_src>

<mosaic_0001>
module attributes {stable_mosaic.version = 11 : i64} {
  func.func @_disc_kernel(%arg0: i32, %arg1: memref<1x256x128xbf16, #tpu.memory_space<vmem>>, %arg2: memref<128x64xbf16, #tpu.memory_space<vmem>>, %arg3: memref<1x64xf32, #tpu.memory_space<vmem>>, %arg4: memref<16x64x256xbf16, #tpu.memory_space<vmem>>, %arg5: memref<16x64x128xbf16, #tpu.memory_space<vmem>>, %arg6: memref<1x128xf32, #tpu.memory_space<vmem>>, %arg7: memref<16x16x64xbf16, #tpu.memory_space<vmem>>, %arg8: memref<16x128x256xbf16, #tpu.memory_space<vmem>>, %arg9: memref<1x256xf32, #tpu.memory_space<vmem>>, %arg10: memref<16x4x16xbf16, #tpu.memory_space<vmem>>, %arg11: memref<16x1x256xbf16, #tpu.memory_space<vmem>>, %arg12: memref<1x1xf32, #tpu.memory_space<vmem>>, %arg13: memref<1x4x1xf32, #tpu.memory_space<vmem>>) attributes {dimension_semantics = [#tpu.dimension_semantics<parallel>], iteration_bounds = array<i64: 2>, scalar_prefetch = 0 : i64, scratch_operands = 0 : i64, tpu.core_type = #tpu.core_type<tc>, window_params = [{transform_indices = @transform_0, window_bounds = array<i64: 1, 256, 128>}, {pipeline_mode = #tpu.pipeline_mode<synchronous>, transform_indices = @transform_1, window_bounds = array<i64: 128, 64>}, {pipeline_mode = #tpu.pipeline_mode<synchronous>, transform_indices = @transform_2, window_bounds = array<i64: 1, 64>}, {pipeline_mode = #tpu.pipeline_mode<synchronous>, transform_indices = @transform_3, window_bounds = array<i64: 16, 64, 256>}, {pipeline_mode = #tpu.pipeline_mode<synchronous>, transform_indices = @transform_4, window_bounds = array<i64: 16, 64, 128>}, {pipeline_mode = #tpu.pipeline_mode<synchronous>, transform_indices = @transform_5, window_bounds = array<i64: 1, 128>}, {pipeline_mode = #tpu.pipeline_mode<synchronous>, transform_indices = @transform_6, window_bounds = array<i64: 16, 16, 64>}, {pipeline_mode = #tpu.pipeline_mode<synchronous>, transform_indices = @transform_7, window_bounds = array<i64: 16, 128, 256>}, {pipeline_mode = #tpu.pipeline_mode<synchronous>, transform_indices = @transform_8, window_bounds = array<i64: 1, 256>}, {pipeline_mode = #tpu.pipeline_mode<synchronous>, transform_indices = @transform_9, window_bounds = array<i64: 16, 4, 16>}, {pipeline_mode = #tpu.pipeline_mode<synchronous>, transform_indices = @transform_10, window_bounds = array<i64: 16, 1, 256>}, {pipeline_mode = #tpu.pipeline_mode<synchronous>, transform_indices = @transform_11, window_bounds = array<i64: 1, 1>}, {transform_indices = @transform_12, window_bounds = array<i64: 1, 4, 1>}]} {
    %c0 = arith.constant 0 : index
    %c0_0 = arith.constant 0 : index
    %c0_1 = arith.constant 0 : index
    %0 = vector.load %arg1[%c0, %c0_0, %c0_1] : memref<1x256x128xbf16, #tpu.memory_space<vmem>>, vector<1x256x128xbf16>
    %1 = vector.shape_cast %0 : vector<1x256x128xbf16> to vector<256x128xbf16>
    %c0_2 = arith.constant 0 : index
    %c0_3 = arith.constant 0 : index
    %2 = vector.load %arg2[%c0_2, %c0_3] : memref<128x64xbf16, #tpu.memory_space<vmem>>, vector<128x64xbf16>
    %cst = arith.constant dense<0.000000e+00> : vector<256x64xf32>
    %3 = tpu.matmul %1, %2, %cst {dimension_numbers = #tpu.dot_dimension_numbers<[1], [0], [0], [1], [0, 0, 1, 1], [], []>} : vector<256x128xbf16>, vector<128x64xbf16>, vector<256x64xf32> -> vector<256x64xf32>
    %c0_4 = arith.constant 0 : index
    %c0_5 = arith.constant 0 : index
    %4 = vector.load %arg3[%c0_4, %c0_5] : memref<1x64xf32, #tpu.memory_space<vmem>>, vector<1x64xf32>
    %5 = vector.broadcast %4 : vector<1x64xf32> to vector<256x64xf32>
    %6 = arith.addf %3, %5 : vector<256x64xf32>
    %cst_6 = arith.constant 0.000000e+00 : f32
    %7 = vector.broadcast %cst_6 : f32 to vector<256x64xf32>
    %8 = arith.cmpf ogt, %6, %7 : vector<256x64xf32>
    %cst_7 = arith.constant 2.000000e-01 : f32
    %9 = vector.broadcast %cst_7 : f32 to vector<256x64xf32>
    %10 = arith.mulf %9, %6 : vector<256x64xf32>
    %11 = arith.select %8, %6, %10 : vector<256x64xi1>, vector<256x64xf32>
    %12 = arith.truncf %11 : vector<256x64xf32> to vector<256x64xbf16>
    %cst_8 = arith.constant 0.000000e+00 : f32
    %13 = vector.broadcast %cst_8 : f32 to vector<64x128xf32>
    %c0_9 = arith.constant 0 : index
    %c0_10 = arith.constant 0 : index
    %c0_11 = arith.constant 0 : index
    %14 = vector.load %arg4[%c0_9, %c0_10, %c0_11] : memref<16x64x256xbf16, #tpu.memory_space<vmem>>, vector<1x64x256xbf16>
    %15 = vector.shape_cast %14 : vector<1x64x256xbf16> to vector<64x256xbf16>
    %cst_12 = arith.constant dense<0.000000e+00> : vector<64x64xf32>
    %16 = tpu.matmul %15, %12, %cst_12 {dimension_numbers = #tpu.dot_dimension_numbers<[1], [0], [0], [1], [0, 0, 1, 1], [], []>} : vector<64x256xbf16>, vector<256x64xbf16>, vector<64x64xf32> -> vector<64x64xf32>
    %17 = arith.truncf %16 : vector<64x64xf32> to vector<64x64xbf16>
    %c0_13 = arith.constant 0 : index
    %c0_14 = arith.constant 0 : index
    %c0_15 = arith.constant 0 : index
    %18 = vector.load %arg5[%c0_13, %c0_14, %c0_15] : memref<16x64x128xbf16, #tpu.memory_space<vmem>>, vector<1x64x128xbf16>
    %19 = vector.shape_cast %18 : vector<1x64x128xbf16> to vector<64x128xbf16>
    %cst_16 = arith.constant dense<0.000000e+00> : vector<64x128xf32>
    %20 = tpu.matmul %17, %19, %cst_16 {dimension_numbers = #tpu.dot_dimension_numbers<[1], [0], [0], [1], [0, 0, 1, 1], [], []>} : vector<64x64xbf16>, vector<64x128xbf16>, vector<64x128xf32> -> vector<64x128xf32>
    %21 = arith.addf %13, %20 : vector<64x128xf32>
    %c1 = arith.constant 1 : index
    %c0_17 = arith.constant 0 : index
    %c0_18 = arith.constant 0 : index
    %22 = vector.load %arg4[%c1, %c0_17, %c0_18] : memref<16x64x256xbf16, #tpu.memory_space<vmem>>, vector<1x64x256xbf16>
    %23 = vector.shape_cast %22 : vector<1x64x256xbf16> to vector<64x256xbf16>
    %cst_19 = arith.constant dense<0.000000e+00> : vector<64x64xf32>
    %24 = tpu.matmul %23, %12, %cst_19 {dimension_numbers = #tpu.dot_dimension_numbers<[1], [0], [0], [1], [0, 0, 1, 1], [], []>} : vector<64x256xbf16>, vector<256x64xbf16>, vector<64x64xf32> -> vector<64x64xf32>
    %25 = arith.truncf %24 : vector<64x64xf32> to vector<64x64xbf16>
    %c1_20 = arith.constant 1 : index
    %c0_21 = arith.constant 0 : index
    %c0_22 = arith.constant 0 : index
    %26 = vector.load %arg5[%c1_20, %c0_21, %c0_22] : memref<16x64x128xbf16, #tpu.memory_space<vmem>>, vector<1x64x128xbf16>
    %27 = vector.shape_cast %26 : vector<1x64x128xbf16> to vector<64x128xbf16>
    %cst_23 = arith.constant dense<0.000000e+00> : vector<64x128xf32>
    %28 = tpu.matmul %25, %27, %cst_23 {dimension_numbers = #tpu.dot_dimension_numbers<[1], [0], [0], [1], [0, 0, 1, 1], [], []>} : vector<64x64xbf16>, vector<64x128xbf16>, vector<64x128xf32> -> vector<64x128xf32>
    %29 = arith.addf %21, %28 : vector<64x128xf32>
    %c2 = arith.constant 2 : index
    %c0_24 = arith.constant 0 : index
    %c0_25 = arith.constant 0 : index
    %30 = vector.load %arg4[%c2, %c0_24, %c0_25] : memref<16x64x256xbf16, #tpu.memory_space<vmem>>, vector<1x64x256xbf16>
    %31 = vector.shape_cast %30 : vector<1x64x256xbf16> to vector<64x256xbf16>
    %cst_26 = arith.constant dense<0.000000e+00> : vector<64x64xf32>
    %32 = tpu.matmul %31, %12, %cst_26 {dimension_numbers = #tpu.dot_dimension_numbers<[1], [0], [0], [1], [0, 0, 1, 1], [], []>} : vector<64x256xbf16>, vector<256x64xbf16>, vector<64x64xf32> -> vector<64x64xf32>
    %33 = arith.truncf %32 : vector<64x64xf32> to vector<64x64xbf16>
    %c2_27 = arith.constant 2 : index
    %c0_28 = arith.constant 0 : index
    %c0_29 = arith.constant 0 : index
    %34 = vector.load %arg5[%c2_27, %c0_28, %c0_29] : memref<16x64x128xbf16, #tpu.memory_space<vmem>>, vector<1x64x128xbf16>
    %35 = vector.shape_cast %34 : vector<1x64x128xbf16> to vector<64x128xbf16>
    %cst_30 = arith.constant dense<0.000000e+00> : vector<64x128xf32>
    %36 = tpu.matmul %33, %35, %cst_30 {dimension_numbers = #tpu.dot_dimension_numbers<[1], [0], [0], [1], [0, 0, 1, 1], [], []>} : vector<64x64xbf16>, vector<64x128xbf16>, vector<64x128xf32> -> vector<64x128xf32>
    %37 = arith.addf %29, %36 : vector<64x128xf32>
    %c3 = arith.constant 3 : index
    %c0_31 = arith.constant 0 : index
    %c0_32 = arith.constant 0 : index
    %38 = vector.load %arg4[%c3, %c0_31, %c0_32] : memref<16x64x256xbf16, #tpu.memory_space<vmem>>, vector<1x64x256xbf16>
    %39 = vector.shape_cast %38 : vector<1x64x256xbf16> to vector<64x256xbf16>
    %cst_33 = arith.constant dense<0.000000e+00> : vector<64x64xf32>
    %40 = tpu.matmul %39, %12, %cst_33 {dimension_numbers = #tpu.dot_dimension_numbers<[1], [0], [0], [1], [0, 0, 1, 1], [], []>} : vector<64x256xbf16>, vector<256x64xbf16>, vector<64x64xf32> -> vector<64x64xf32>
    %41 = arith.truncf %40 : vector<64x64xf32> to vector<64x64xbf16>
    %c3_34 = arith.constant 3 : index
    %c0_35 = arith.constant 0 : index
    %c0_36 = arith.constant 0 : index
    %42 = vector.load %arg5[%c3_34, %c0_35, %c0_36] : memref<16x64x128xbf16, #tpu.memory_space<vmem>>, vector<1x64x128xbf16>
    %43 = vector.shape_cast %42 : vector<1x64x128xbf16> to vector<64x128xbf16>
    %cst_37 = arith.constant dense<0.000000e+00> : vector<64x128xf32>
    %44 = tpu.matmul %41, %43, %cst_37 {dimension_numbers = #tpu.dot_dimension_numbers<[1], [0], [0], [1], [0, 0, 1, 1], [], []>} : vector<64x64xbf16>, vector<64x128xbf16>, vector<64x128xf32> -> vector<64x128xf32>
    %45 = arith.addf %37, %44 : vector<64x128xf32>
    %c4 = arith.constant 4 : index
    %c0_38 = arith.constant 0 : index
    %c0_39 = arith.constant 0 : index
    %46 = vector.load %arg4[%c4, %c0_38, %c0_39] : memref<16x64x256xbf16, #tpu.memory_space<vmem>>, vector<1x64x256xbf16>
    %47 = vector.shape_cast %46 : vector<1x64x256xbf16> to vector<64x256xbf16>
    %cst_40 = arith.constant dense<0.000000e+00> : vector<64x64xf32>
    %48 = tpu.matmul %47, %12, %cst_40 {dimension_numbers = #tpu.dot_dimension_numbers<[1], [0], [0], [1], [0, 0, 1, 1], [], []>} : vector<64x256xbf16>, vector<256x64xbf16>, vector<64x64xf32> -> vector<64x64xf32>
    %49 = arith.truncf %48 : vector<64x64xf32> to vector<64x64xbf16>
    %c4_41 = arith.constant 4 : index
    %c0_42 = arith.constant 0 : index
    %c0_43 = arith.constant 0 : index
    %50 = vector.load %arg5[%c4_41, %c0_42, %c0_43] : memref<16x64x128xbf16, #tpu.memory_space<vmem>>, vector<1x64x128xbf16>
    %51 = vector.shape_cast %50 : vector<1x64x128xbf16> to vector<64x128xbf16>
    %cst_44 = arith.constant dense<0.000000e+00> : vector<64x128xf32>
    %52 = tpu.matmul %49, %51, %cst_44 {dimension_numbers = #tpu.dot_dimension_numbers<[1], [0], [0], [1], [0, 0, 1, 1], [], []>} : vector<64x64xbf16>, vector<64x128xbf16>, vector<64x128xf32> -> vector<64x128xf32>
    %53 = arith.addf %45, %52 : vector<64x128xf32>
    %c5 = arith.constant 5 : index
    %c0_45 = arith.constant 0 : index
    %c0_46 = arith.constant 0 : index
    %54 = vector.load %arg4[%c5, %c0_45, %c0_46] : memref<16x64x256xbf16, #tpu.memory_space<vmem>>, vector<1x64x256xbf16>
    %55 = vector.shape_cast %54 : vector<1x64x256xbf16> to vector<64x256xbf16>
    %cst_47 = arith.constant dense<0.000000e+00> : vector<64x64xf32>
    %56 = tpu.matmul %55, %12, %cst_47 {dimension_numbers = #tpu.dot_dimension_numbers<[1], [0], [0], [1], [0, 0, 1, 1], [], []>} : vector<64x256xbf16>, vector<256x64xbf16>, vector<64x64xf32> -> vector<64x64xf32>
    %57 = arith.truncf %56 : vector<64x64xf32> to vector<64x64xbf16>
    %c5_48 = arith.constant 5 : index
    %c0_49 = arith.constant 0 : index
    %c0_50 = arith.constant 0 : index
    %58 = vector.load %arg5[%c5_48, %c0_49, %c0_50] : memref<16x64x128xbf16, #tpu.memory_space<vmem>>, vector<1x64x128xbf16>
    %59 = vector.shape_cast %58 : vector<1x64x128xbf16> to vector<64x128xbf16>
    %cst_51 = arith.constant dense<0.000000e+00> : vector<64x128xf32>
    %60 = tpu.matmul %57, %59, %cst_51 {dimension_numbers = #tpu.dot_dimension_numbers<[1], [0], [0], [1], [0, 0, 1, 1], [], []>} : vector<64x64xbf16>, vector<64x128xbf16>, vector<64x128xf32> -> vector<64x128xf32>
    %61 = arith.addf %53, %60 : vector<64x128xf32>
    %c6 = arith.constant 6 : index
    %c0_52 = arith.constant 0 : index
    %c0_53 = arith.constant 0 : index
    %62 = vector.load %arg4[%c6, %c0_52, %c0_53] : memref<16x64x256xbf16, #tpu.memory_space<vmem>>, vector<1x64x256xbf16>
    %63 = vector.shape_cast %62 : vector<1x64x256xbf16> to vector<64x256xbf16>
    %cst_54 = arith.constant dense<0.000000e+00> : vector<64x64xf32>
    %64 = tpu.matmul %63, %12, %cst_54 {dimension_numbers = #tpu.dot_dimension_numbers<[1], [0], [0], [1], [0, 0, 1, 1], [], []>} : vector<64x256xbf16>, vector<256x64xbf16>, vector<64x64xf32> -> vector<64x64xf32>
    %65 = arith.truncf %64 : vector<64x64xf32> to vector<64x64xbf16>
    %c6_55 = arith.constant 6 : index
    %c0_56 = arith.constant 0 : index
    %c0_57 = arith.constant 0 : index
    %66 = vector.load %arg5[%c6_55, %c0_56, %c0_57] : memref<16x64x128xbf16, #tpu.memory_space<vmem>>, vector<1x64x128xbf16>
    %67 = vector.shape_cast %66 : vector<1x64x128xbf16> to vector<64x128xbf16>
    %cst_58 = arith.constant dense<0.000000e+00> : vector<64x128xf32>
    %68 = tpu.matmul %65, %67, %cst_58 {dimension_numbers = #tpu.dot_dimension_numbers<[1], [0], [0], [1], [0, 0, 1, 1], [], []>} : vector<64x64xbf16>, vector<64x128xbf16>, vector<64x128xf32> -> vector<64x128xf32>
    %69 = arith.addf %61, %68 : vector<64x128xf32>
    %c7 = arith.constant 7 : index
    %c0_59 = arith.constant 0 : index
    %c0_60 = arith.constant 0 : index
    %70 = vector.load %arg4[%c7, %c0_59, %c0_60] : memref<16x64x256xbf16, #tpu.memory_space<vmem>>, vector<1x64x256xbf16>
    %71 = vector.shape_cast %70 : vector<1x64x256xbf16> to vector<64x256xbf16>
    %cst_61 = arith.constant dense<0.000000e+00> : vector<64x64xf32>
    %72 = tpu.matmul %71, %12, %cst_61 {dimension_numbers = #tpu.dot_dimension_numbers<[1], [0], [0], [1], [0, 0, 1, 1], [], []>} : vector<64x256xbf16>, vector<256x64xbf16>, vector<64x64xf32> -> vector<64x64xf32>
    %73 = arith.truncf %72 : vector<64x64xf32> to vector<64x64xbf16>
    %c7_62 = arith.constant 7 : index
    %c0_63 = arith.constant 0 : index
    %c0_64 = arith.constant 0 : index
    %74 = vector.load %arg5[%c7_62, %c0_63, %c0_64] : memref<16x64x128xbf16, #tpu.memory_space<vmem>>, vector<1x64x128xbf16>
    %75 = vector.shape_cast %74 : vector<1x64x128xbf16> to vector<64x128xbf16>
    %cst_65 = arith.constant dense<0.000000e+00> : vector<64x128xf32>
    %76 = tpu.matmul %73, %75, %cst_65 {dimension_numbers = #tpu.dot_dimension_numbers<[1], [0], [0], [1], [0, 0, 1, 1], [], []>} : vector<64x64xbf16>, vector<64x128xbf16>, vector<64x128xf32> -> vector<64x128xf32>
    %77 = arith.addf %69, %76 : vector<64x128xf32>
    %c8 = arith.constant 8 : index
    %c0_66 = arith.constant 0 : index
    %c0_67 = arith.constant 0 : index
    %78 = vector.load %arg4[%c8, %c0_66, %c0_67] : memref<16x64x256xbf16, #tpu.memory_space<vmem>>, vector<1x64x256xbf16>
    %79 = vector.shape_cast %78 : vector<1x64x256xbf16> to vector<64x256xbf16>
    %cst_68 = arith.constant dense<0.000000e+00> : vector<64x64xf32>
    %80 = tpu.matmul %79, %12, %cst_68 {dimension_numbers = #tpu.dot_dimension_numbers<[1], [0], [0], [1], [0, 0, 1, 1], [], []>} : vector<64x256xbf16>, vector<256x64xbf16>, vector<64x64xf32> -> vector<64x64xf32>
    %81 = arith.truncf %80 : vector<64x64xf32> to vector<64x64xbf16>
    %c8_69 = arith.constant 8 : index
    %c0_70 = arith.constant 0 : index
    %c0_71 = arith.constant 0 : index
    %82 = vector.load %arg5[%c8_69, %c0_70, %c0_71] : memref<16x64x128xbf16, #tpu.memory_space<vmem>>, vector<1x64x128xbf16>
    %83 = vector.shape_cast %82 : vector<1x64x128xbf16> to vector<64x128xbf16>
    %cst_72 = arith.constant dense<0.000000e+00> : vector<64x128xf32>
    %84 = tpu.matmul %81, %83, %cst_72 {dimension_numbers = #tpu.dot_dimension_numbers<[1], [0], [0], [1], [0, 0, 1, 1], [], []>} : vector<64x64xbf16>, vector<64x128xbf16>, vector<64x128xf32> -> vector<64x128xf32>
    %85 = arith.addf %77, %84 : vector<64x128xf32>
    %c9 = arith.constant 9 : index
    %c0_73 = arith.constant 0 : index
    %c0_74 = arith.constant 0 : index
    %86 = vector.load %arg4[%c9, %c0_73, %c0_74] : memref<16x64x256xbf16, #tpu.memory_space<vmem>>, vector<1x64x256xbf16>
    %87 = vector.shape_cast %86 : vector<1x64x256xbf16> to vector<64x256xbf16>
    %cst_75 = arith.constant dense<0.000000e+00> : vector<64x64xf32>
    %88 = tpu.matmul %87, %12, %cst_75 {dimension_numbers = #tpu.dot_dimension_numbers<[1], [0], [0], [1], [0, 0, 1, 1], [], []>} : vector<64x256xbf16>, vector<256x64xbf16>, vector<64x64xf32> -> vector<64x64xf32>
    %89 = arith.truncf %88 : vector<64x64xf32> to vector<64x64xbf16>
    %c9_76 = arith.constant 9 : index
    %c0_77 = arith.constant 0 : index
    %c0_78 = arith.constant 0 : index
    %90 = vector.load %arg5[%c9_76, %c0_77, %c0_78] : memref<16x64x128xbf16, #tpu.memory_space<vmem>>, vector<1x64x128xbf16>
    %91 = vector.shape_cast %90 : vector<1x64x128xbf16> to vector<64x128xbf16>
    %cst_79 = arith.constant dense<0.000000e+00> : vector<64x128xf32>
    %92 = tpu.matmul %89, %91, %cst_79 {dimension_numbers = #tpu.dot_dimension_numbers<[1], [0], [0], [1], [0, 0, 1, 1], [], []>} : vector<64x64xbf16>, vector<64x128xbf16>, vector<64x128xf32> -> vector<64x128xf32>
    %93 = arith.addf %85, %92 : vector<64x128xf32>
    %c10 = arith.constant 10 : index
    %c0_80 = arith.constant 0 : index
    %c0_81 = arith.constant 0 : index
    %94 = vector.load %arg4[%c10, %c0_80, %c0_81] : memref<16x64x256xbf16, #tpu.memory_space<vmem>>, vector<1x64x256xbf16>
    %95 = vector.shape_cast %94 : vector<1x64x256xbf16> to vector<64x256xbf16>
    %cst_82 = arith.constant dense<0.000000e+00> : vector<64x64xf32>
    %96 = tpu.matmul %95, %12, %cst_82 {dimension_numbers = #tpu.dot_dimension_numbers<[1], [0], [0], [1], [0, 0, 1, 1], [], []>} : vector<64x256xbf16>, vector<256x64xbf16>, vector<64x64xf32> -> vector<64x64xf32>
    %97 = arith.truncf %96 : vector<64x64xf32> to vector<64x64xbf16>
    %c10_83 = arith.constant 10 : index
    %c0_84 = arith.constant 0 : index
    %c0_85 = arith.constant 0 : index
    %98 = vector.load %arg5[%c10_83, %c0_84, %c0_85] : memref<16x64x128xbf16, #tpu.memory_space<vmem>>, vector<1x64x128xbf16>
    %99 = vector.shape_cast %98 : vector<1x64x128xbf16> to vector<64x128xbf16>
    %cst_86 = arith.constant dense<0.000000e+00> : vector<64x128xf32>
    %100 = tpu.matmul %97, %99, %cst_86 {dimension_numbers = #tpu.dot_dimension_numbers<[1], [0], [0], [1], [0, 0, 1, 1], [], []>} : vector<64x64xbf16>, vector<64x128xbf16>, vector<64x128xf32> -> vector<64x128xf32>
    %101 = arith.addf %93, %100 : vector<64x128xf32>
    %c11 = arith.constant 11 : index
    %c0_87 = arith.constant 0 : index
    %c0_88 = arith.constant 0 : index
    %102 = vector.load %arg4[%c11, %c0_87, %c0_88] : memref<16x64x256xbf16, #tpu.memory_space<vmem>>, vector<1x64x256xbf16>
    %103 = vector.shape_cast %102 : vector<1x64x256xbf16> to vector<64x256xbf16>
    %cst_89 = arith.constant dense<0.000000e+00> : vector<64x64xf32>
    %104 = tpu.matmul %103, %12, %cst_89 {dimension_numbers = #tpu.dot_dimension_numbers<[1], [0], [0], [1], [0, 0, 1, 1], [], []>} : vector<64x256xbf16>, vector<256x64xbf16>, vector<64x64xf32> -> vector<64x64xf32>
    %105 = arith.truncf %104 : vector<64x64xf32> to vector<64x64xbf16>
    %c11_90 = arith.constant 11 : index
    %c0_91 = arith.constant 0 : index
    %c0_92 = arith.constant 0 : index
    %106 = vector.load %arg5[%c11_90, %c0_91, %c0_92] : memref<16x64x128xbf16, #tpu.memory_space<vmem>>, vector<1x64x128xbf16>
    %107 = vector.shape_cast %106 : vector<1x64x128xbf16> to vector<64x128xbf16>
    %cst_93 = arith.constant dense<0.000000e+00> : vector<64x128xf32>
    %108 = tpu.matmul %105, %107, %cst_93 {dimension_numbers = #tpu.dot_dimension_numbers<[1], [0], [0], [1], [0, 0, 1, 1], [], []>} : vector<64x64xbf16>, vector<64x128xbf16>, vector<64x128xf32> -> vector<64x128xf32>
    %109 = arith.addf %101, %108 : vector<64x128xf32>
    %c12 = arith.constant 12 : index
    %c0_94 = arith.constant 0 : index
    %c0_95 = arith.constant 0 : index
    %110 = vector.load %arg4[%c12, %c0_94, %c0_95] : memref<16x64x256xbf16, #tpu.memory_space<vmem>>, vector<1x64x256xbf16>
    %111 = vector.shape_cast %110 : vector<1x64x256xbf16> to vector<64x256xbf16>
    %cst_96 = arith.constant dense<0.000000e+00> : vector<64x64xf32>
    %112 = tpu.matmul %111, %12, %cst_96 {dimension_numbers = #tpu.dot_dimension_numbers<[1], [0], [0], [1], [0, 0, 1, 1], [], []>} : vector<64x256xbf16>, vector<256x64xbf16>, vector<64x64xf32> -> vector<64x64xf32>
    %113 = arith.truncf %112 : vector<64x64xf32> to vector<64x64xbf16>
    %c12_97 = arith.constant 12 : index
    %c0_98 = arith.constant 0 : index
    %c0_99 = arith.constant 0 : index
    %114 = vector.load %arg5[%c12_97, %c0_98, %c0_99] : memref<16x64x128xbf16, #tpu.memory_space<vmem>>, vector<1x64x128xbf16>
    %115 = vector.shape_cast %114 : vector<1x64x128xbf16> to vector<64x128xbf16>
    %cst_100 = arith.constant dense<0.000000e+00> : vector<64x128xf32>
    %116 = tpu.matmul %113, %115, %cst_100 {dimension_numbers = #tpu.dot_dimension_numbers<[1], [0], [0], [1], [0, 0, 1, 1], [], []>} : vector<64x64xbf16>, vector<64x128xbf16>, vector<64x128xf32> -> vector<64x128xf32>
    %117 = arith.addf %109, %116 : vector<64x128xf32>
    %c13 = arith.constant 13 : index
    %c0_101 = arith.constant 0 : index
    %c0_102 = arith.constant 0 : index
    %118 = vector.load %arg4[%c13, %c0_101, %c0_102] : memref<16x64x256xbf16, #tpu.memory_space<vmem>>, vector<1x64x256xbf16>
    %119 = vector.shape_cast %118 : vector<1x64x256xbf16> to vector<64x256xbf16>
    %cst_103 = arith.constant dense<0.000000e+00> : vector<64x64xf32>
    %120 = tpu.matmul %119, %12, %cst_103 {dimension_numbers = #tpu.dot_dimension_numbers<[1], [0], [0], [1], [0, 0, 1, 1], [], []>} : vector<64x256xbf16>, vector<256x64xbf16>, vector<64x64xf32> -> vector<64x64xf32>
    %121 = arith.truncf %120 : vector<64x64xf32> to vector<64x64xbf16>
    %c13_104 = arith.constant 13 : index
    %c0_105 = arith.constant 0 : index
    %c0_106 = arith.constant 0 : index
    %122 = vector.load %arg5[%c13_104, %c0_105, %c0_106] : memref<16x64x128xbf16, #tpu.memory_space<vmem>>, vector<1x64x128xbf16>
    %123 = vector.shape_cast %122 : vector<1x64x128xbf16> to vector<64x128xbf16>
    %cst_107 = arith.constant dense<0.000000e+00> : vector<64x128xf32>
    %124 = tpu.matmul %121, %123, %cst_107 {dimension_numbers = #tpu.dot_dimension_numbers<[1], [0], [0], [1], [0, 0, 1, 1], [], []>} : vector<64x64xbf16>, vector<64x128xbf16>, vector<64x128xf32> -> vector<64x128xf32>
    %125 = arith.addf %117, %124 : vector<64x128xf32>
    %c14 = arith.constant 14 : index
    %c0_108 = arith.constant 0 : index
    %c0_109 = arith.constant 0 : index
    %126 = vector.load %arg4[%c14, %c0_108, %c0_109] : memref<16x64x256xbf16, #tpu.memory_space<vmem>>, vector<1x64x256xbf16>
    %127 = vector.shape_cast %126 : vector<1x64x256xbf16> to vector<64x256xbf16>
    %cst_110 = arith.constant dense<0.000000e+00> : vector<64x64xf32>
    %128 = tpu.matmul %127, %12, %cst_110 {dimension_numbers = #tpu.dot_dimension_numbers<[1], [0], [0], [1], [0, 0, 1, 1], [], []>} : vector<64x256xbf16>, vector<256x64xbf16>, vector<64x64xf32> -> vector<64x64xf32>
    %129 = arith.truncf %128 : vector<64x64xf32> to vector<64x64xbf16>
    %c14_111 = arith.constant 14 : index
    %c0_112 = arith.constant 0 : index
    %c0_113 = arith.constant 0 : index
    %130 = vector.load %arg5[%c14_111, %c0_112, %c0_113] : memref<16x64x128xbf16, #tpu.memory_space<vmem>>, vector<1x64x128xbf16>
    %131 = vector.shape_cast %130 : vector<1x64x128xbf16> to vector<64x128xbf16>
    %cst_114 = arith.constant dense<0.000000e+00> : vector<64x128xf32>
    %132 = tpu.matmul %129, %131, %cst_114 {dimension_numbers = #tpu.dot_dimension_numbers<[1], [0], [0], [1], [0, 0, 1, 1], [], []>} : vector<64x64xbf16>, vector<64x128xbf16>, vector<64x128xf32> -> vector<64x128xf32>
    %133 = arith.addf %125, %132 : vector<64x128xf32>
    %c15 = arith.constant 15 : index
    %c0_115 = arith.constant 0 : index
    %c0_116 = arith.constant 0 : index
    %134 = vector.load %arg4[%c15, %c0_115, %c0_116] : memref<16x64x256xbf16, #tpu.memory_space<vmem>>, vector<1x64x256xbf16>
    %135 = vector.shape_cast %134 : vector<1x64x256xbf16> to vector<64x256xbf16>
    %cst_117 = arith.constant dense<0.000000e+00> : vector<64x64xf32>
    %136 = tpu.matmul %135, %12, %cst_117 {dimension_numbers = #tpu.dot_dimension_numbers<[1], [0], [0], [1], [0, 0, 1, 1], [], []>} : vector<64x256xbf16>, vector<256x64xbf16>, vector<64x64xf32> -> vector<64x64xf32>
    %137 = arith.truncf %136 : vector<64x64xf32> to vector<64x64xbf16>
    %c15_118 = arith.constant 15 : index
    %c0_119 = arith.constant 0 : index
    %c0_120 = arith.constant 0 : index
    %138 = vector.load %arg5[%c15_118, %c0_119, %c0_120] : memref<16x64x128xbf16, #tpu.memory_space<vmem>>, vector<1x64x128xbf16>
    %139 = vector.shape_cast %138 : vector<1x64x128xbf16> to vector<64x128xbf16>
    %cst_121 = arith.constant dense<0.000000e+00> : vector<64x128xf32>
    %140 = tpu.matmul %137, %139, %cst_121 {dimension_numbers = #tpu.dot_dimension_numbers<[1], [0], [0], [1], [0, 0, 1, 1], [], []>} : vector<64x64xbf16>, vector<64x128xbf16>, vector<64x128xf32> -> vector<64x128xf32>
    %141 = arith.addf %133, %140 : vector<64x128xf32>
    %c0_122 = arith.constant 0 : index
    %c0_123 = arith.constant 0 : index
    %142 = vector.load %arg6[%c0_122, %c0_123] : memref<1x128xf32, #tpu.memory_space<vmem>>, vector<1x128xf32>
    %143 = vector.broadcast %142 : vector<1x128xf32> to vector<64x128xf32>
    %144 = arith.addf %141, %143 : vector<64x128xf32>
    %cst_124 = arith.constant 0.000000e+00 : f32
    %145 = vector.broadcast %cst_124 : f32 to vector<64x128xf32>
    %146 = arith.cmpf ogt, %144, %145 : vector<64x128xf32>
    %cst_125 = arith.constant 2.000000e-01 : f32
    %147 = vector.broadcast %cst_125 : f32 to vector<64x128xf32>
    %148 = arith.mulf %147, %144 : vector<64x128xf32>
    %149 = arith.select %146, %144, %148 : vector<64x128xi1>, vector<64x128xf32>
    %150 = arith.truncf %149 : vector<64x128xf32> to vector<64x128xbf16>
    %cst_126 = arith.constant 0.000000e+00 : f32
    %151 = vector.broadcast %cst_126 : f32 to vector<16x256xf32>
    %c0_127 = arith.constant 0 : index
    %c0_128 = arith.constant 0 : index
    %c0_129 = arith.constant 0 : index
    %152 = vector.load %arg7[%c0_127, %c0_128, %c0_129] : memref<16x16x64xbf16, #tpu.memory_space<vmem>>, vector<1x16x64xbf16>
    %153 = vector.shape_cast %152 : vector<1x16x64xbf16> to vector<16x64xbf16>
    %cst_130 = arith.constant dense<0.000000e+00> : vector<16x128xf32>
    %154 = tpu.matmul %153, %150, %cst_130 {dimension_numbers = #tpu.dot_dimension_numbers<[1], [0], [0], [1], [0, 0, 1, 1], [], []>} : vector<16x64xbf16>, vector<64x128xbf16>, vector<16x128xf32> -> vector<16x128xf32>
    %155 = arith.truncf %154 : vector<16x128xf32> to vector<16x128xbf16>
    %c0_131 = arith.constant 0 : index
    %c0_132 = arith.constant 0 : index
    %c0_133 = arith.constant 0 : index
    %156 = vector.load %arg8[%c0_131, %c0_132, %c0_133] : memref<16x128x256xbf16, #tpu.memory_space<vmem>>, vector<1x128x256xbf16>
    %157 = vector.shape_cast %156 : vector<1x128x256xbf16> to vector<128x256xbf16>
    %cst_134 = arith.constant dense<0.000000e+00> : vector<16x256xf32>
    %158 = tpu.matmul %155, %157, %cst_134 {dimension_numbers = #tpu.dot_dimension_numbers<[1], [0], [0], [1], [0, 0, 1, 1], [], []>} : vector<16x128xbf16>, vector<128x256xbf16>, vector<16x256xf32> -> vector<16x256xf32>
    %159 = arith.addf %151, %158 : vector<16x256xf32>
    %c1_135 = arith.constant 1 : index
    %c0_136 = arith.constant 0 : index
    %c0_137 = arith.constant 0 : index
    %160 = vector.load %arg7[%c1_135, %c0_136, %c0_137] : memref<16x16x64xbf16, #tpu.memory_space<vmem>>, vector<1x16x64xbf16>
    %161 = vector.shape_cast %160 : vector<1x16x64xbf16> to vector<16x64xbf16>
    %cst_138 = arith.constant dense<0.000000e+00> : vector<16x128xf32>
    %162 = tpu.matmul %161, %150, %cst_138 {dimension_numbers = #tpu.dot_dimension_numbers<[1], [0], [0], [1], [0, 0, 1, 1], [], []>} : vector<16x64xbf16>, vector<64x128xbf16>, vector<16x128xf32> -> vector<16x128xf32>
    %163 = arith.truncf %162 : vector<16x128xf32> to vector<16x128xbf16>
    %c1_139 = arith.constant 1 : index
    %c0_140 = arith.constant 0 : index
    %c0_141 = arith.constant 0 : index
    %164 = vector.load %arg8[%c1_139, %c0_140, %c0_141] : memref<16x128x256xbf16, #tpu.memory_space<vmem>>, vector<1x128x256xbf16>
    %165 = vector.shape_cast %164 : vector<1x128x256xbf16> to vector<128x256xbf16>
    %cst_142 = arith.constant dense<0.000000e+00> : vector<16x256xf32>
    %166 = tpu.matmul %163, %165, %cst_142 {dimension_numbers = #tpu.dot_dimension_numbers<[1], [0], [0], [1], [0, 0, 1, 1], [], []>} : vector<16x128xbf16>, vector<128x256xbf16>, vector<16x256xf32> -> vector<16x256xf32>
    %167 = arith.addf %159, %166 : vector<16x256xf32>
    %c2_143 = arith.constant 2 : index
    %c0_144 = arith.constant 0 : index
    %c0_145 = arith.constant 0 : index
    %168 = vector.load %arg7[%c2_143, %c0_144, %c0_145] : memref<16x16x64xbf16, #tpu.memory_space<vmem>>, vector<1x16x64xbf16>
    %169 = vector.shape_cast %168 : vector<1x16x64xbf16> to vector<16x64xbf16>
    %cst_146 = arith.constant dense<0.000000e+00> : vector<16x128xf32>
    %170 = tpu.matmul %169, %150, %cst_146 {dimension_numbers = #tpu.dot_dimension_numbers<[1], [0], [0], [1], [0, 0, 1, 1], [], []>} : vector<16x64xbf16>, vector<64x128xbf16>, vector<16x128xf32> -> vector<16x128xf32>
    %171 = arith.truncf %170 : vector<16x128xf32> to vector<16x128xbf16>
    %c2_147 = arith.constant 2 : index
    %c0_148 = arith.constant 0 : index
    %c0_149 = arith.constant 0 : index
    %172 = vector.load %arg8[%c2_147, %c0_148, %c0_149] : memref<16x128x256xbf16, #tpu.memory_space<vmem>>, vector<1x128x256xbf16>
    %173 = vector.shape_cast %172 : vector<1x128x256xbf16> to vector<128x256xbf16>
    %cst_150 = arith.constant dense<0.000000e+00> : vector<16x256xf32>
    %174 = tpu.matmul %171, %173, %cst_150 {dimension_numbers = #tpu.dot_dimension_numbers<[1], [0], [0], [1], [0, 0, 1, 1], [], []>} : vector<16x128xbf16>, vector<128x256xbf16>, vector<16x256xf32> -> vector<16x256xf32>
    %175 = arith.addf %167, %174 : vector<16x256xf32>
    %c3_151 = arith.constant 3 : index
    %c0_152 = arith.constant 0 : index
    %c0_153 = arith.constant 0 : index
    %176 = vector.load %arg7[%c3_151, %c0_152, %c0_153] : memref<16x16x64xbf16, #tpu.memory_space<vmem>>, vector<1x16x64xbf16>
    %177 = vector.shape_cast %176 : vector<1x16x64xbf16> to vector<16x64xbf16>
    %cst_154 = arith.constant dense<0.000000e+00> : vector<16x128xf32>
    %178 = tpu.matmul %177, %150, %cst_154 {dimension_numbers = #tpu.dot_dimension_numbers<[1], [0], [0], [1], [0, 0, 1, 1], [], []>} : vector<16x64xbf16>, vector<64x128xbf16>, vector<16x128xf32> -> vector<16x128xf32>
    %179 = arith.truncf %178 : vector<16x128xf32> to vector<16x128xbf16>
    %c3_155 = arith.constant 3 : index
    %c0_156 = arith.constant 0 : index
    %c0_157 = arith.constant 0 : index
    %180 = vector.load %arg8[%c3_155, %c0_156, %c0_157] : memref<16x128x256xbf16, #tpu.memory_space<vmem>>, vector<1x128x256xbf16>
    %181 = vector.shape_cast %180 : vector<1x128x256xbf16> to vector<128x256xbf16>
    %cst_158 = arith.constant dense<0.000000e+00> : vector<16x256xf32>
    %182 = tpu.matmul %179, %181, %cst_158 {dimension_numbers = #tpu.dot_dimension_numbers<[1], [0], [0], [1], [0, 0, 1, 1], [], []>} : vector<16x128xbf16>, vector<128x256xbf16>, vector<16x256xf32> -> vector<16x256xf32>
    %183 = arith.addf %175, %182 : vector<16x256xf32>
    %c4_159 = arith.constant 4 : index
    %c0_160 = arith.constant 0 : index
    %c0_161 = arith.constant 0 : index
    %184 = vector.load %arg7[%c4_159, %c0_160, %c0_161] : memref<16x16x64xbf16, #tpu.memory_space<vmem>>, vector<1x16x64xbf16>
    %185 = vector.shape_cast %184 : vector<1x16x64xbf16> to vector<16x64xbf16>
    %cst_162 = arith.constant dense<0.000000e+00> : vector<16x128xf32>
    %186 = tpu.matmul %185, %150, %cst_162 {dimension_numbers = #tpu.dot_dimension_numbers<[1], [0], [0], [1], [0, 0, 1, 1], [], []>} : vector<16x64xbf16>, vector<64x128xbf16>, vector<16x128xf32> -> vector<16x128xf32>
    %187 = arith.truncf %186 : vector<16x128xf32> to vector<16x128xbf16>
    %c4_163 = arith.constant 4 : index
    %c0_164 = arith.constant 0 : index
    %c0_165 = arith.constant 0 : index
    %188 = vector.load %arg8[%c4_163, %c0_164, %c0_165] : memref<16x128x256xbf16, #tpu.memory_space<vmem>>, vector<1x128x256xbf16>
    %189 = vector.shape_cast %188 : vector<1x128x256xbf16> to vector<128x256xbf16>
    %cst_166 = arith.constant dense<0.000000e+00> : vector<16x256xf32>
    %190 = tpu.matmul %187, %189, %cst_166 {dimension_numbers = #tpu.dot_dimension_numbers<[1], [0], [0], [1], [0, 0, 1, 1], [], []>} : vector<16x128xbf16>, vector<128x256xbf16>, vector<16x256xf32> -> vector<16x256xf32>
    %191 = arith.addf %183, %190 : vector<16x256xf32>
    %c5_167 = arith.constant 5 : index
    %c0_168 = arith.constant 0 : index
    %c0_169 = arith.constant 0 : index
    %192 = vector.load %arg7[%c5_167, %c0_168, %c0_169] : memref<16x16x64xbf16, #tpu.memory_space<vmem>>, vector<1x16x64xbf16>
    %193 = vector.shape_cast %192 : vector<1x16x64xbf16> to vector<16x64xbf16>
    %cst_170 = arith.constant dense<0.000000e+00> : vector<16x128xf32>
    %194 = tpu.matmul %193, %150, %cst_170 {dimension_numbers = #tpu.dot_dimension_numbers<[1], [0], [0], [1], [0, 0, 1, 1], [], []>} : vector<16x64xbf16>, vector<64x128xbf16>, vector<16x128xf32> -> vector<16x128xf32>
    %195 = arith.truncf %194 : vector<16x128xf32> to vector<16x128xbf16>
    %c5_171 = arith.constant 5 : index
    %c0_172 = arith.constant 0 : index
    %c0_173 = arith.constant 0 : index
    %196 = vector.load %arg8[%c5_171, %c0_172, %c0_173] : memref<16x128x256xbf16, #tpu.memory_space<vmem>>, vector<1x128x256xbf16>
    %197 = vector.shape_cast %196 : vector<1x128x256xbf16> to vector<128x256xbf16>
    %cst_174 = arith.constant dense<0.000000e+00> : vector<16x256xf32>
    %198 = tpu.matmul %195, %197, %cst_174 {dimension_numbers = #tpu.dot_dimension_numbers<[1], [0], [0], [1], [0, 0, 1, 1], [], []>} : vector<16x128xbf16>, vector<128x256xbf16>, vector<16x256xf32> -> vector<16x256xf32>
    %199 = arith.addf %191, %198 : vector<16x256xf32>
    %c6_175 = arith.constant 6 : index
    %c0_176 = arith.constant 0 : index
    %c0_177 = arith.constant 0 : index
    %200 = vector.load %arg7[%c6_175, %c0_176, %c0_177] : memref<16x16x64xbf16, #tpu.memory_space<vmem>>, vector<1x16x64xbf16>
    %201 = vector.shape_cast %200 : vector<1x16x64xbf16> to vector<16x64xbf16>
    %cst_178 = arith.constant dense<0.000000e+00> : vector<16x128xf32>
    %202 = tpu.matmul %201, %150, %cst_178 {dimension_numbers = #tpu.dot_dimension_numbers<[1], [0], [0], [1], [0, 0, 1, 1], [], []>} : vector<16x64xbf16>, vector<64x128xbf16>, vector<16x128xf32> -> vector<16x128xf32>
    %203 = arith.truncf %202 : vector<16x128xf32> to vector<16x128xbf16>
    %c6_179 = arith.constant 6 : index
    %c0_180 = arith.constant 0 : index
    %c0_181 = arith.constant 0 : index
    %204 = vector.load %arg8[%c6_179, %c0_180, %c0_181] : memref<16x128x256xbf16, #tpu.memory_space<vmem>>, vector<1x128x256xbf16>
    %205 = vector.shape_cast %204 : vector<1x128x256xbf16> to vector<128x256xbf16>
    %cst_182 = arith.constant dense<0.000000e+00> : vector<16x256xf32>
    %206 = tpu.matmul %203, %205, %cst_182 {dimension_numbers = #tpu.dot_dimension_numbers<[1], [0], [0], [1], [0, 0, 1, 1], [], []>} : vector<16x128xbf16>, vector<128x256xbf16>, vector<16x256xf32> -> vector<16x256xf32>
    %207 = arith.addf %199, %206 : vector<16x256xf32>
    %c7_183 = arith.constant 7 : index
    %c0_184 = arith.constant 0 : index
    %c0_185 = arith.constant 0 : index
    %208 = vector.load %arg7[%c7_183, %c0_184, %c0_185] : memref<16x16x64xbf16, #tpu.memory_space<vmem>>, vector<1x16x64xbf16>
    %209 = vector.shape_cast %208 : vector<1x16x64xbf16> to vector<16x64xbf16>
    %cst_186 = arith.constant dense<0.000000e+00> : vector<16x128xf32>
    %210 = tpu.matmul %209, %150, %cst_186 {dimension_numbers = #tpu.dot_dimension_numbers<[1], [0], [0], [1], [0, 0, 1, 1], [], []>} : vector<16x64xbf16>, vector<64x128xbf16>, vector<16x128xf32> -> vector<16x128xf32>
    %211 = arith.truncf %210 : vector<16x128xf32> to vector<16x128xbf16>
    %c7_187 = arith.constant 7 : index
    %c0_188 = arith.constant 0 : index
    %c0_189 = arith.constant 0 : index
    %212 = vector.load %arg8[%c7_187, %c0_188, %c0_189] : memref<16x128x256xbf16, #tpu.memory_space<vmem>>, vector<1x128x256xbf16>
    %213 = vector.shape_cast %212 : vector<1x128x256xbf16> to vector<128x256xbf16>
    %cst_190 = arith.constant dense<0.000000e+00> : vector<16x256xf32>
    %214 = tpu.matmul %211, %213, %cst_190 {dimension_numbers = #tpu.dot_dimension_numbers<[1], [0], [0], [1], [0, 0, 1, 1], [], []>} : vector<16x128xbf16>, vector<128x256xbf16>, vector<16x256xf32> -> vector<16x256xf32>
    %215 = arith.addf %207, %214 : vector<16x256xf32>
    %c8_191 = arith.constant 8 : index
    %c0_192 = arith.constant 0 : index
    %c0_193 = arith.constant 0 : index
    %216 = vector.load %arg7[%c8_191, %c0_192, %c0_193] : memref<16x16x64xbf16, #tpu.memory_space<vmem>>, vector<1x16x64xbf16>
    %217 = vector.shape_cast %216 : vector<1x16x64xbf16> to vector<16x64xbf16>
    %cst_194 = arith.constant dense<0.000000e+00> : vector<16x128xf32>
    %218 = tpu.matmul %217, %150, %cst_194 {dimension_numbers = #tpu.dot_dimension_numbers<[1], [0], [0], [1], [0, 0, 1, 1], [], []>} : vector<16x64xbf16>, vector<64x128xbf16>, vector<16x128xf32> -> vector<16x128xf32>
    %219 = arith.truncf %218 : vector<16x128xf32> to vector<16x128xbf16>
    %c8_195 = arith.constant 8 : index
    %c0_196 = arith.constant 0 : index
    %c0_197 = arith.constant 0 : index
    %220 = vector.load %arg8[%c8_195, %c0_196, %c0_197] : memref<16x128x256xbf16, #tpu.memory_space<vmem>>, vector<1x128x256xbf16>
    %221 = vector.shape_cast %220 : vector<1x128x256xbf16> to vector<128x256xbf16>
    %cst_198 = arith.constant dense<0.000000e+00> : vector<16x256xf32>
    %222 = tpu.matmul %219, %221, %cst_198 {dimension_numbers = #tpu.dot_dimension_numbers<[1], [0], [0], [1], [0, 0, 1, 1], [], []>} : vector<16x128xbf16>, vector<128x256xbf16>, vector<16x256xf32> -> vector<16x256xf32>
    %223 = arith.addf %215, %222 : vector<16x256xf32>
    %c9_199 = arith.constant 9 : index
    %c0_200 = arith.constant 0 : index
    %c0_201 = arith.constant 0 : index
    %224 = vector.load %arg7[%c9_199, %c0_200, %c0_201] : memref<16x16x64xbf16, #tpu.memory_space<vmem>>, vector<1x16x64xbf16>
    %225 = vector.shape_cast %224 : vector<1x16x64xbf16> to vector<16x64xbf16>
    %cst_202 = arith.constant dense<0.000000e+00> : vector<16x128xf32>
    %226 = tpu.matmul %225, %150, %cst_202 {dimension_numbers = #tpu.dot_dimension_numbers<[1], [0], [0], [1], [0, 0, 1, 1], [], []>} : vector<16x64xbf16>, vector<64x128xbf16>, vector<16x128xf32> -> vector<16x128xf32>
    %227 = arith.truncf %226 : vector<16x128xf32> to vector<16x128xbf16>
    %c9_203 = arith.constant 9 : index
    %c0_204 = arith.constant 0 : index
    %c0_205 = arith.constant 0 : index
    %228 = vector.load %arg8[%c9_203, %c0_204, %c0_205] : memref<16x128x256xbf16, #tpu.memory_space<vmem>>, vector<1x128x256xbf16>
    %229 = vector.shape_cast %228 : vector<1x128x256xbf16> to vector<128x256xbf16>
    %cst_206 = arith.constant dense<0.000000e+00> : vector<16x256xf32>
    %230 = tpu.matmul %227, %229, %cst_206 {dimension_numbers = #tpu.dot_dimension_numbers<[1], [0], [0], [1], [0, 0, 1, 1], [], []>} : vector<16x128xbf16>, vector<128x256xbf16>, vector<16x256xf32> -> vector<16x256xf32>
    %231 = arith.addf %223, %230 : vector<16x256xf32>
    %c10_207 = arith.constant 10 : index
    %c0_208 = arith.constant 0 : index
    %c0_209 = arith.constant 0 : index
    %232 = vector.load %arg7[%c10_207, %c0_208, %c0_209] : memref<16x16x64xbf16, #tpu.memory_space<vmem>>, vector<1x16x64xbf16>
    %233 = vector.shape_cast %232 : vector<1x16x64xbf16> to vector<16x64xbf16>
    %cst_210 = arith.constant dense<0.000000e+00> : vector<16x128xf32>
    %234 = tpu.matmul %233, %150, %cst_210 {dimension_numbers = #tpu.dot_dimension_numbers<[1], [0], [0], [1], [0, 0, 1, 1], [], []>} : vector<16x64xbf16>, vector<64x128xbf16>, vector<16x128xf32> -> vector<16x128xf32>
    %235 = arith.truncf %234 : vector<16x128xf32> to vector<16x128xbf16>
    %c10_211 = arith.constant 10 : index
    %c0_212 = arith.constant 0 : index
    %c0_213 = arith.constant 0 : index
    %236 = vector.load %arg8[%c10_211, %c0_212, %c0_213] : memref<16x128x256xbf16, #tpu.memory_space<vmem>>, vector<1x128x256xbf16>
    %237 = vector.shape_cast %236 : vector<1x128x256xbf16> to vector<128x256xbf16>
    %cst_214 = arith.constant dense<0.000000e+00> : vector<16x256xf32>
    %238 = tpu.matmul %235, %237, %cst_214 {dimension_numbers = #tpu.dot_dimension_numbers<[1], [0], [0], [1], [0, 0, 1, 1], [], []>} : vector<16x128xbf16>, vector<128x256xbf16>, vector<16x256xf32> -> vector<16x256xf32>
    %239 = arith.addf %231, %238 : vector<16x256xf32>
    %c11_215 = arith.constant 11 : index
    %c0_216 = arith.constant 0 : index
    %c0_217 = arith.constant 0 : index
    %240 = vector.load %arg7[%c11_215, %c0_216, %c0_217] : memref<16x16x64xbf16, #tpu.memory_space<vmem>>, vector<1x16x64xbf16>
    %241 = vector.shape_cast %240 : vector<1x16x64xbf16> to vector<16x64xbf16>
    %cst_218 = arith.constant dense<0.000000e+00> : vector<16x128xf32>
    %242 = tpu.matmul %241, %150, %cst_218 {dimension_numbers = #tpu.dot_dimension_numbers<[1], [0], [0], [1], [0, 0, 1, 1], [], []>} : vector<16x64xbf16>, vector<64x128xbf16>, vector<16x128xf32> -> vector<16x128xf32>
    %243 = arith.truncf %242 : vector<16x128xf32> to vector<16x128xbf16>
    %c11_219 = arith.constant 11 : index
    %c0_220 = arith.constant 0 : index
    %c0_221 = arith.constant 0 : index
    %244 = vector.load %arg8[%c11_219, %c0_220, %c0_221] : memref<16x128x256xbf16, #tpu.memory_space<vmem>>, vector<1x128x256xbf16>
    %245 = vector.shape_cast %244 : vector<1x128x256xbf16> to vector<128x256xbf16>
    %cst_222 = arith.constant dense<0.000000e+00> : vector<16x256xf32>
    %246 = tpu.matmul %243, %245, %cst_222 {dimension_numbers = #tpu.dot_dimension_numbers<[1], [0], [0], [1], [0, 0, 1, 1], [], []>} : vector<16x128xbf16>, vector<128x256xbf16>, vector<16x256xf32> -> vector<16x256xf32>
    %247 = arith.addf %239, %246 : vector<16x256xf32>
    %c12_223 = arith.constant 12 : index
    %c0_224 = arith.constant 0 : index
    %c0_225 = arith.constant 0 : index
    %248 = vector.load %arg7[%c12_223, %c0_224, %c0_225] : memref<16x16x64xbf16, #tpu.memory_space<vmem>>, vector<1x16x64xbf16>
    %249 = vector.shape_cast %248 : vector<1x16x64xbf16> to vector<16x64xbf16>
    %cst_226 = arith.constant dense<0.000000e+00> : vector<16x128xf32>
    %250 = tpu.matmul %249, %150, %cst_226 {dimension_numbers = #tpu.dot_dimension_numbers<[1], [0], [0], [1], [0, 0, 1, 1], [], []>} : vector<16x64xbf16>, vector<64x128xbf16>, vector<16x128xf32> -> vector<16x128xf32>
    %251 = arith.truncf %250 : vector<16x128xf32> to vector<16x128xbf16>
    %c12_227 = arith.constant 12 : index
    %c0_228 = arith.constant 0 : index
    %c0_229 = arith.constant 0 : index
    %252 = vector.load %arg8[%c12_227, %c0_228, %c0_229] : memref<16x128x256xbf16, #tpu.memory_space<vmem>>, vector<1x128x256xbf16>
    %253 = vector.shape_cast %252 : vector<1x128x256xbf16> to vector<128x256xbf16>
    %cst_230 = arith.constant dense<0.000000e+00> : vector<16x256xf32>
    %254 = tpu.matmul %251, %253, %cst_230 {dimension_numbers = #tpu.dot_dimension_numbers<[1], [0], [0], [1], [0, 0, 1, 1], [], []>} : vector<16x128xbf16>, vector<128x256xbf16>, vector<16x256xf32> -> vector<16x256xf32>
    %255 = arith.addf %247, %254 : vector<16x256xf32>
    %c13_231 = arith.constant 13 : index
    %c0_232 = arith.constant 0 : index
    %c0_233 = arith.constant 0 : index
    %256 = vector.load %arg7[%c13_231, %c0_232, %c0_233] : memref<16x16x64xbf16, #tpu.memory_space<vmem>>, vector<1x16x64xbf16>
    %257 = vector.shape_cast %256 : vector<1x16x64xbf16> to vector<16x64xbf16>
    %cst_234 = arith.constant dense<0.000000e+00> : vector<16x128xf32>
    %258 = tpu.matmul %257, %150, %cst_234 {dimension_numbers = #tpu.dot_dimension_numbers<[1], [0], [0], [1], [0, 0, 1, 1], [], []>} : vector<16x64xbf16>, vector<64x128xbf16>, vector<16x128xf32> -> vector<16x128xf32>
    %259 = arith.truncf %258 : vector<16x128xf32> to vector<16x128xbf16>
    %c13_235 = arith.constant 13 : index
    %c0_236 = arith.constant 0 : index
    %c0_237 = arith.constant 0 : index
    %260 = vector.load %arg8[%c13_235, %c0_236, %c0_237] : memref<16x128x256xbf16, #tpu.memory_space<vmem>>, vector<1x128x256xbf16>
    %261 = vector.shape_cast %260 : vector<1x128x256xbf16> to vector<128x256xbf16>
    %cst_238 = arith.constant dense<0.000000e+00> : vector<16x256xf32>
    %262 = tpu.matmul %259, %261, %cst_238 {dimension_numbers = #tpu.dot_dimension_numbers<[1], [0], [0], [1], [0, 0, 1, 1], [], []>} : vector<16x128xbf16>, vector<128x256xbf16>, vector<16x256xf32> -> vector<16x256xf32>
    %263 = arith.addf %255, %262 : vector<16x256xf32>
    %c14_239 = arith.constant 14 : index
    %c0_240 = arith.constant 0 : index
    %c0_241 = arith.constant 0 : index
    %264 = vector.load %arg7[%c14_239, %c0_240, %c0_241] : memref<16x16x64xbf16, #tpu.memory_space<vmem>>, vector<1x16x64xbf16>
    %265 = vector.shape_cast %264 : vector<1x16x64xbf16> to vector<16x64xbf16>
    %cst_242 = arith.constant dense<0.000000e+00> : vector<16x128xf32>
    %266 = tpu.matmul %265, %150, %cst_242 {dimension_numbers = #tpu.dot_dimension_numbers<[1], [0], [0], [1], [0, 0, 1, 1], [], []>} : vector<16x64xbf16>, vector<64x128xbf16>, vector<16x128xf32> -> vector<16x128xf32>
    %267 = arith.truncf %266 : vector<16x128xf32> to vector<16x128xbf16>
    %c14_243 = arith.constant 14 : index
    %c0_244 = arith.constant 0 : index
    %c0_245 = arith.constant 0 : index
    %268 = vector.load %arg8[%c14_243, %c0_244, %c0_245] : memref<16x128x256xbf16, #tpu.memory_space<vmem>>, vector<1x128x256xbf16>
    %269 = vector.shape_cast %268 : vector<1x128x256xbf16> to vector<128x256xbf16>
    %cst_246 = arith.constant dense<0.000000e+00> : vector<16x256xf32>
    %270 = tpu.matmul %267, %269, %cst_246 {dimension_numbers = #tpu.dot_dimension_numbers<[1], [0], [0], [1], [0, 0, 1, 1], [], []>} : vector<16x128xbf16>, vector<128x256xbf16>, vector<16x256xf32> -> vector<16x256xf32>
    %271 = arith.addf %263, %270 : vector<16x256xf32>
    %c15_247 = arith.constant 15 : index
    %c0_248 = arith.constant 0 : index
    %c0_249 = arith.constant 0 : index
    %272 = vector.load %arg7[%c15_247, %c0_248, %c0_249] : memref<16x16x64xbf16, #tpu.memory_space<vmem>>, vector<1x16x64xbf16>
    %273 = vector.shape_cast %272 : vector<1x16x64xbf16> to vector<16x64xbf16>
    %cst_250 = arith.constant dense<0.000000e+00> : vector<16x128xf32>
    %274 = tpu.matmul %273, %150, %cst_250 {dimension_numbers = #tpu.dot_dimension_numbers<[1], [0], [0], [1], [0, 0, 1, 1], [], []>} : vector<16x64xbf16>, vector<64x128xbf16>, vector<16x128xf32> -> vector<16x128xf32>
    %275 = arith.truncf %274 : vector<16x128xf32> to vector<16x128xbf16>
    %c15_251 = arith.constant 15 : index
    %c0_252 = arith.constant 0 : index
    %c0_253 = arith.constant 0 : index
    %276 = vector.load %arg8[%c15_251, %c0_252, %c0_253] : memref<16x128x256xbf16, #tpu.memory_space<vmem>>, vector<1x128x256xbf16>
    %277 = vector.shape_cast %276 : vector<1x128x256xbf16> to vector<128x256xbf16>
    %cst_254 = arith.constant dense<0.000000e+00> : vector<16x256xf32>
    %278 = tpu.matmul %275, %277, %cst_254 {dimension_numbers = #tpu.dot_dimension_numbers<[1], [0], [0], [1], [0, 0, 1, 1], [], []>} : vector<16x128xbf16>, vector<128x256xbf16>, vector<16x256xf32> -> vector<16x256xf32>
    %279 = arith.addf %271, %278 : vector<16x256xf32>
    %c0_255 = arith.constant 0 : index
    %c0_256 = arith.constant 0 : index
    %280 = vector.load %arg9[%c0_255, %c0_256] : memref<1x256xf32, #tpu.memory_space<vmem>>, vector<1x256xf32>
    %281 = vector.broadcast %280 : vector<1x256xf32> to vector<16x256xf32>
    %282 = arith.addf %279, %281 : vector<16x256xf32>
    %cst_257 = arith.constant 0.000000e+00 : f32
    %283 = vector.broadcast %cst_257 : f32 to vector<16x256xf32>
    %284 = arith.cmpf ogt, %282, %283 : vector<16x256xf32>
    %cst_258 = arith.constant 2.000000e-01 : f32
    %285 = vector.broadcast %cst_258 : f32 to vector<16x256xf32>
    %286 = arith.mulf %285, %282 : vector<16x256xf32>
    %287 = arith.select %284, %282, %286 : vector<16x256xi1>, vector<16x256xf32>
    %288 = arith.truncf %287 : vector<16x256xf32> to vector<16x256xbf16>
    %cst_259 = arith.constant 0.000000e+00 : f32
    %289 = vector.broadcast %cst_259 : f32 to vector<4x1xf32>
    %c0_260 = arith.constant 0 : index
    %c0_261 = arith.constant 0 : index
    %c0_262 = arith.constant 0 : index
    %290 = vector.load %arg10[%c0_260, %c0_261, %c0_262] : memref<16x4x16xbf16, #tpu.memory_space<vmem>>, vector<1x4x16xbf16>
    %291 = vector.shape_cast %290 : vector<1x4x16xbf16> to vector<4x16xbf16>
    %cst_263 = arith.constant dense<0.000000e+00> : vector<4x256xf32>
    %292 = tpu.matmul %291, %288, %cst_263 {dimension_numbers = #tpu.dot_dimension_numbers<[1], [0], [0], [1], [0, 0, 1, 1], [], []>} : vector<4x16xbf16>, vector<16x256xbf16>, vector<4x256xf32> -> vector<4x256xf32>
    %c0_264 = arith.constant 0 : index
    %c0_265 = arith.constant 0 : index
    %c0_266 = arith.constant 0 : index
    %293 = vector.load %arg11[%c0_264, %c0_265, %c0_266] : memref<16x1x256xbf16, #tpu.memory_space<vmem>>, vector<1x1x256xbf16>
    %294 = vector.shape_cast %293 : vector<1x1x256xbf16> to vector<1x256xbf16>
    %295 = arith.extf %294 : vector<1x256xbf16> to vector<1x256xf32>
    %296 = vector.broadcast %295 : vector<1x256xf32> to vector<4x256xf32>
    %297 = arith.mulf %292, %296 : vector<4x256xf32>
    %cst_267 = arith.constant dense<0.000000e+00> : vector<4xf32>
    %298 = vector.multi_reduction <add>, %297, %cst_267 [1] : vector<4x256xf32> to vector<4xf32>
    %299 = vector.shape_cast %298 : vector<4xf32> to vector<4x1xf32>
    %300 = arith.addf %289, %299 : vector<4x1xf32>
    %c1_268 = arith.constant 1 : index
    %c0_269 = arith.constant 0 : index
    %c0_270 = arith.constant 0 : index
    %301 = vector.load %arg10[%c1_268, %c0_269, %c0_270] : memref<16x4x16xbf16, #tpu.memory_space<vmem>>, vector<1x4x16xbf16>
    %302 = vector.shape_cast %301 : vector<1x4x16xbf16> to vector<4x16xbf16>
    %cst_271 = arith.constant dense<0.000000e+00> : vector<4x256xf32>
    %303 = tpu.matmul %302, %288, %cst_271 {dimension_numbers = #tpu.dot_dimension_numbers<[1], [0], [0], [1], [0, 0, 1, 1], [], []>} : vector<4x16xbf16>, vector<16x256xbf16>, vector<4x256xf32> -> vector<4x256xf32>
    %c1_272 = arith.constant 1 : index
    %c0_273 = arith.constant 0 : index
    %c0_274 = arith.constant 0 : index
    %304 = vector.load %arg11[%c1_272, %c0_273, %c0_274] : memref<16x1x256xbf16, #tpu.memory_space<vmem>>, vector<1x1x256xbf16>
    %305 = vector.shape_cast %304 : vector<1x1x256xbf16> to vector<1x256xbf16>
    %306 = arith.extf %305 : vector<1x256xbf16> to vector<1x256xf32>
    %307 = vector.broadcast %306 : vector<1x256xf32> to vector<4x256xf32>
    %308 = arith.mulf %303, %307 : vector<4x256xf32>
    %cst_275 = arith.constant dense<0.000000e+00> : vector<4xf32>
    %309 = vector.multi_reduction <add>, %308, %cst_275 [1] : vector<4x256xf32> to vector<4xf32>
    %310 = vector.shape_cast %309 : vector<4xf32> to vector<4x1xf32>
    %311 = arith.addf %300, %310 : vector<4x1xf32>
    %c2_276 = arith.constant 2 : index
    %c0_277 = arith.constant 0 : index
    %c0_278 = arith.constant 0 : index
    %312 = vector.load %arg10[%c2_276, %c0_277, %c0_278] : memref<16x4x16xbf16, #tpu.memory_space<vmem>>, vector<1x4x16xbf16>
    %313 = vector.shape_cast %312 : vector<1x4x16xbf16> to vector<4x16xbf16>
    %cst_279 = arith.constant dense<0.000000e+00> : vector<4x256xf32>
    %314 = tpu.matmul %313, %288, %cst_279 {dimension_numbers = #tpu.dot_dimension_numbers<[1], [0], [0], [1], [0, 0, 1, 1], [], []>} : vector<4x16xbf16>, vector<16x256xbf16>, vector<4x256xf32> -> vector<4x256xf32>
    %c2_280 = arith.constant 2 : index
    %c0_281 = arith.constant 0 : index
    %c0_282 = arith.constant 0 : index
    %315 = vector.load %arg11[%c2_280, %c0_281, %c0_282] : memref<16x1x256xbf16, #tpu.memory_space<vmem>>, vector<1x1x256xbf16>
    %316 = vector.shape_cast %315 : vector<1x1x256xbf16> to vector<1x256xbf16>
    %317 = arith.extf %316 : vector<1x256xbf16> to vector<1x256xf32>
    %318 = vector.broadcast %317 : vector<1x256xf32> to vector<4x256xf32>
    %319 = arith.mulf %314, %318 : vector<4x256xf32>
    %cst_283 = arith.constant dense<0.000000e+00> : vector<4xf32>
    %320 = vector.multi_reduction <add>, %319, %cst_283 [1] : vector<4x256xf32> to vector<4xf32>
    %321 = vector.shape_cast %320 : vector<4xf32> to vector<4x1xf32>
    %322 = arith.addf %311, %321 : vector<4x1xf32>
    %c3_284 = arith.constant 3 : index
    %c0_285 = arith.constant 0 : index
    %c0_286 = arith.constant 0 : index
    %323 = vector.load %arg10[%c3_284, %c0_285, %c0_286] : memref<16x4x16xbf16, #tpu.memory_space<vmem>>, vector<1x4x16xbf16>
    %324 = vector.shape_cast %323 : vector<1x4x16xbf16> to vector<4x16xbf16>
    %cst_287 = arith.constant dense<0.000000e+00> : vector<4x256xf32>
    %325 = tpu.matmul %324, %288, %cst_287 {dimension_numbers = #tpu.dot_dimension_numbers<[1], [0], [0], [1], [0, 0, 1, 1], [], []>} : vector<4x16xbf16>, vector<16x256xbf16>, vector<4x256xf32> -> vector<4x256xf32>
    %c3_288 = arith.constant 3 : index
    %c0_289 = arith.constant 0 : index
    %c0_290 = arith.constant 0 : index
    %326 = vector.load %arg11[%c3_288, %c0_289, %c0_290] : memref<16x1x256xbf16, #tpu.memory_space<vmem>>, vector<1x1x256xbf16>
    %327 = vector.shape_cast %326 : vector<1x1x256xbf16> to vector<1x256xbf16>
    %328 = arith.extf %327 : vector<1x256xbf16> to vector<1x256xf32>
    %329 = vector.broadcast %328 : vector<1x256xf32> to vector<4x256xf32>
    %330 = arith.mulf %325, %329 : vector<4x256xf32>
    %cst_291 = arith.constant dense<0.000000e+00> : vector<4xf32>
    %331 = vector.multi_reduction <add>, %330, %cst_291 [1] : vector<4x256xf32> to vector<4xf32>
    %332 = vector.shape_cast %331 : vector<4xf32> to vector<4x1xf32>
    %333 = arith.addf %322, %332 : vector<4x1xf32>
    %c4_292 = arith.constant 4 : index
    %c0_293 = arith.constant 0 : index
    %c0_294 = arith.constant 0 : index
    %334 = vector.load %arg10[%c4_292, %c0_293, %c0_294] : memref<16x4x16xbf16, #tpu.memory_space<vmem>>, vector<1x4x16xbf16>
    %335 = vector.shape_cast %334 : vector<1x4x16xbf16> to vector<4x16xbf16>
    %cst_295 = arith.constant dense<0.000000e+00> : vector<4x256xf32>
    %336 = tpu.matmul %335, %288, %cst_295 {dimension_numbers = #tpu.dot_dimension_numbers<[1], [0], [0], [1], [0, 0, 1, 1], [], []>} : vector<4x16xbf16>, vector<16x256xbf16>, vector<4x256xf32> -> vector<4x256xf32>
    %c4_296 = arith.constant 4 : index
    %c0_297 = arith.constant 0 : index
    %c0_298 = arith.constant 0 : index
    %337 = vector.load %arg11[%c4_296, %c0_297, %c0_298] : memref<16x1x256xbf16, #tpu.memory_space<vmem>>, vector<1x1x256xbf16>
    %338 = vector.shape_cast %337 : vector<1x1x256xbf16> to vector<1x256xbf16>
    %339 = arith.extf %338 : vector<1x256xbf16> to vector<1x256xf32>
    %340 = vector.broadcast %339 : vector<1x256xf32> to vector<4x256xf32>
    %341 = arith.mulf %336, %340 : vector<4x256xf32>
    %cst_299 = arith.constant dense<0.000000e+00> : vector<4xf32>
    %342 = vector.multi_reduction <add>, %341, %cst_299 [1] : vector<4x256xf32> to vector<4xf32>
    %343 = vector.shape_cast %342 : vector<4xf32> to vector<4x1xf32>
    %344 = arith.addf %333, %343 : vector<4x1xf32>
    %c5_300 = arith.constant 5 : index
    %c0_301 = arith.constant 0 : index
    %c0_302 = arith.constant 0 : index
    %345 = vector.load %arg10[%c5_300, %c0_301, %c0_302] : memref<16x4x16xbf16, #tpu.memory_space<vmem>>, vector<1x4x16xbf16>
    %346 = vector.shape_cast %345 : vector<1x4x16xbf16> to vector<4x16xbf16>
    %cst_303 = arith.constant dense<0.000000e+00> : vector<4x256xf32>
    %347 = tpu.matmul %346, %288, %cst_303 {dimension_numbers = #tpu.dot_dimension_numbers<[1], [0], [0], [1], [0, 0, 1, 1], [], []>} : vector<4x16xbf16>, vector<16x256xbf16>, vector<4x256xf32> -> vector<4x256xf32>
    %c5_304 = arith.constant 5 : index
    %c0_305 = arith.constant 0 : index
    %c0_306 = arith.constant 0 : index
    %348 = vector.load %arg11[%c5_304, %c0_305, %c0_306] : memref<16x1x256xbf16, #tpu.memory_space<vmem>>, vector<1x1x256xbf16>
    %349 = vector.shape_cast %348 : vector<1x1x256xbf16> to vector<1x256xbf16>
    %350 = arith.extf %349 : vector<1x256xbf16> to vector<1x256xf32>
    %351 = vector.broadcast %350 : vector<1x256xf32> to vector<4x256xf32>
    %352 = arith.mulf %347, %351 : vector<4x256xf32>
    %cst_307 = arith.constant dense<0.000000e+00> : vector<4xf32>
    %353 = vector.multi_reduction <add>, %352, %cst_307 [1] : vector<4x256xf32> to vector<4xf32>
    %354 = vector.shape_cast %353 : vector<4xf32> to vector<4x1xf32>
    %355 = arith.addf %344, %354 : vector<4x1xf32>
    %c6_308 = arith.constant 6 : index
    %c0_309 = arith.constant 0 : index
    %c0_310 = arith.constant 0 : index
    %356 = vector.load %arg10[%c6_308, %c0_309, %c0_310] : memref<16x4x16xbf16, #tpu.memory_space<vmem>>, vector<1x4x16xbf16>
    %357 = vector.shape_cast %356 : vector<1x4x16xbf16> to vector<4x16xbf16>
    %cst_311 = arith.constant dense<0.000000e+00> : vector<4x256xf32>
    %358 = tpu.matmul %357, %288, %cst_311 {dimension_numbers = #tpu.dot_dimension_numbers<[1], [0], [0], [1], [0, 0, 1, 1], [], []>} : vector<4x16xbf16>, vector<16x256xbf16>, vector<4x256xf32> -> vector<4x256xf32>
    %c6_312 = arith.constant 6 : index
    %c0_313 = arith.constant 0 : index
    %c0_314 = arith.constant 0 : index
    %359 = vector.load %arg11[%c6_312, %c0_313, %c0_314] : memref<16x1x256xbf16, #tpu.memory_space<vmem>>, vector<1x1x256xbf16>
    %360 = vector.shape_cast %359 : vector<1x1x256xbf16> to vector<1x256xbf16>
    %361 = arith.extf %360 : vector<1x256xbf16> to vector<1x256xf32>
    %362 = vector.broadcast %361 : vector<1x256xf32> to vector<4x256xf32>
    %363 = arith.mulf %358, %362 : vector<4x256xf32>
    %cst_315 = arith.constant dense<0.000000e+00> : vector<4xf32>
    %364 = vector.multi_reduction <add>, %363, %cst_315 [1] : vector<4x256xf32> to vector<4xf32>
    %365 = vector.shape_cast %364 : vector<4xf32> to vector<4x1xf32>
    %366 = arith.addf %355, %365 : vector<4x1xf32>
    %c7_316 = arith.constant 7 : index
    %c0_317 = arith.constant 0 : index
    %c0_318 = arith.constant 0 : index
    %367 = vector.load %arg10[%c7_316, %c0_317, %c0_318] : memref<16x4x16xbf16, #tpu.memory_space<vmem>>, vector<1x4x16xbf16>
    %368 = vector.shape_cast %367 : vector<1x4x16xbf16> to vector<4x16xbf16>
    %cst_319 = arith.constant dense<0.000000e+00> : vector<4x256xf32>
    %369 = tpu.matmul %368, %288, %cst_319 {dimension_numbers = #tpu.dot_dimension_numbers<[1], [0], [0], [1], [0, 0, 1, 1], [], []>} : vector<4x16xbf16>, vector<16x256xbf16>, vector<4x256xf32> -> vector<4x256xf32>
    %c7_320 = arith.constant 7 : index
    %c0_321 = arith.constant 0 : index
    %c0_322 = arith.constant 0 : index
    %370 = vector.load %arg11[%c7_320, %c0_321, %c0_322] : memref<16x1x256xbf16, #tpu.memory_space<vmem>>, vector<1x1x256xbf16>
    %371 = vector.shape_cast %370 : vector<1x1x256xbf16> to vector<1x256xbf16>
    %372 = arith.extf %371 : vector<1x256xbf16> to vector<1x256xf32>
    %373 = vector.broadcast %372 : vector<1x256xf32> to vector<4x256xf32>
    %374 = arith.mulf %369, %373 : vector<4x256xf32>
    %cst_323 = arith.constant dense<0.000000e+00> : vector<4xf32>
    %375 = vector.multi_reduction <add>, %374, %cst_323 [1] : vector<4x256xf32> to vector<4xf32>
    %376 = vector.shape_cast %375 : vector<4xf32> to vector<4x1xf32>
    %377 = arith.addf %366, %376 : vector<4x1xf32>
    %c8_324 = arith.constant 8 : index
    %c0_325 = arith.constant 0 : index
    %c0_326 = arith.constant 0 : index
    %378 = vector.load %arg10[%c8_324, %c0_325, %c0_326] : memref<16x4x16xbf16, #tpu.memory_space<vmem>>, vector<1x4x16xbf16>
    %379 = vector.shape_cast %378 : vector<1x4x16xbf16> to vector<4x16xbf16>
    %cst_327 = arith.constant dense<0.000000e+00> : vector<4x256xf32>
    %380 = tpu.matmul %379, %288, %cst_327 {dimension_numbers = #tpu.dot_dimension_numbers<[1], [0], [0], [1], [0, 0, 1, 1], [], []>} : vector<4x16xbf16>, vector<16x256xbf16>, vector<4x256xf32> -> vector<4x256xf32>
    %c8_328 = arith.constant 8 : index
    %c0_329 = arith.constant 0 : index
    %c0_330 = arith.constant 0 : index
    %381 = vector.load %arg11[%c8_328, %c0_329, %c0_330] : memref<16x1x256xbf16, #tpu.memory_space<vmem>>, vector<1x1x256xbf16>
    %382 = vector.shape_cast %381 : vector<1x1x256xbf16> to vector<1x256xbf16>
    %383 = arith.extf %382 : vector<1x256xbf16> to vector<1x256xf32>
    %384 = vector.broadcast %383 : vector<1x256xf32> to vector<4x256xf32>
    %385 = arith.mulf %380, %384 : vector<4x256xf32>
    %cst_331 = arith.constant dense<0.000000e+00> : vector<4xf32>
    %386 = vector.multi_reduction <add>, %385, %cst_331 [1] : vector<4x256xf32> to vector<4xf32>
    %387 = vector.shape_cast %386 : vector<4xf32> to vector<4x1xf32>
    %388 = arith.addf %377, %387 : vector<4x1xf32>
    %c9_332 = arith.constant 9 : index
    %c0_333 = arith.constant 0 : index
    %c0_334 = arith.constant 0 : index
    %389 = vector.load %arg10[%c9_332, %c0_333, %c0_334] : memref<16x4x16xbf16, #tpu.memory_space<vmem>>, vector<1x4x16xbf16>
    %390 = vector.shape_cast %389 : vector<1x4x16xbf16> to vector<4x16xbf16>
    %cst_335 = arith.constant dense<0.000000e+00> : vector<4x256xf32>
    %391 = tpu.matmul %390, %288, %cst_335 {dimension_numbers = #tpu.dot_dimension_numbers<[1], [0], [0], [1], [0, 0, 1, 1], [], []>} : vector<4x16xbf16>, vector<16x256xbf16>, vector<4x256xf32> -> vector<4x256xf32>
    %c9_336 = arith.constant 9 : index
    %c0_337 = arith.constant 0 : index
    %c0_338 = arith.constant 0 : index
    %392 = vector.load %arg11[%c9_336, %c0_337, %c0_338] : memref<16x1x256xbf16, #tpu.memory_space<vmem>>, vector<1x1x256xbf16>
    %393 = vector.shape_cast %392 : vector<1x1x256xbf16> to vector<1x256xbf16>
    %394 = arith.extf %393 : vector<1x256xbf16> to vector<1x256xf32>
    %395 = vector.broadcast %394 : vector<1x256xf32> to vector<4x256xf32>
    %396 = arith.mulf %391, %395 : vector<4x256xf32>
    %cst_339 = arith.constant dense<0.000000e+00> : vector<4xf32>
    %397 = vector.multi_reduction <add>, %396, %cst_339 [1] : vector<4x256xf32> to vector<4xf32>
    %398 = vector.shape_cast %397 : vector<4xf32> to vector<4x1xf32>
    %399 = arith.addf %388, %398 : vector<4x1xf32>
    %c10_340 = arith.constant 10 : index
    %c0_341 = arith.constant 0 : index
    %c0_342 = arith.constant 0 : index
    %400 = vector.load %arg10[%c10_340, %c0_341, %c0_342] : memref<16x4x16xbf16, #tpu.memory_space<vmem>>, vector<1x4x16xbf16>
    %401 = vector.shape_cast %400 : vector<1x4x16xbf16> to vector<4x16xbf16>
    %cst_343 = arith.constant dense<0.000000e+00> : vector<4x256xf32>
    %402 = tpu.matmul %401, %288, %cst_343 {dimension_numbers = #tpu.dot_dimension_numbers<[1], [0], [0], [1], [0, 0, 1, 1], [], []>} : vector<4x16xbf16>, vector<16x256xbf16>, vector<4x256xf32> -> vector<4x256xf32>
    %c10_344 = arith.constant 10 : index
    %c0_345 = arith.constant 0 : index
    %c0_346 = arith.constant 0 : index
    %403 = vector.load %arg11[%c10_344, %c0_345, %c0_346] : memref<16x1x256xbf16, #tpu.memory_space<vmem>>, vector<1x1x256xbf16>
    %404 = vector.shape_cast %403 : vector<1x1x256xbf16> to vector<1x256xbf16>
    %405 = arith.extf %404 : vector<1x256xbf16> to vector<1x256xf32>
    %406 = vector.broadcast %405 : vector<1x256xf32> to vector<4x256xf32>
    %407 = arith.mulf %402, %406 : vector<4x256xf32>
    %cst_347 = arith.constant dense<0.000000e+00> : vector<4xf32>
    %408 = vector.multi_reduction <add>, %407, %cst_347 [1] : vector<4x256xf32> to vector<4xf32>
    %409 = vector.shape_cast %408 : vector<4xf32> to vector<4x1xf32>
    %410 = arith.addf %399, %409 : vector<4x1xf32>
    %c11_348 = arith.constant 11 : index
    %c0_349 = arith.constant 0 : index
    %c0_350 = arith.constant 0 : index
    %411 = vector.load %arg10[%c11_348, %c0_349, %c0_350] : memref<16x4x16xbf16, #tpu.memory_space<vmem>>, vector<1x4x16xbf16>
    %412 = vector.shape_cast %411 : vector<1x4x16xbf16> to vector<4x16xbf16>
    %cst_351 = arith.constant dense<0.000000e+00> : vector<4x256xf32>
    %413 = tpu.matmul %412, %288, %cst_351 {dimension_numbers = #tpu.dot_dimension_numbers<[1], [0], [0], [1], [0, 0, 1, 1], [], []>} : vector<4x16xbf16>, vector<16x256xbf16>, vector<4x256xf32> -> vector<4x256xf32>
    %c11_352 = arith.constant 11 : index
    %c0_353 = arith.constant 0 : index
    %c0_354 = arith.constant 0 : index
    %414 = vector.load %arg11[%c11_352, %c0_353, %c0_354] : memref<16x1x256xbf16, #tpu.memory_space<vmem>>, vector<1x1x256xbf16>
    %415 = vector.shape_cast %414 : vector<1x1x256xbf16> to vector<1x256xbf16>
    %416 = arith.extf %415 : vector<1x256xbf16> to vector<1x256xf32>
    %417 = vector.broadcast %416 : vector<1x256xf32> to vector<4x256xf32>
    %418 = arith.mulf %413, %417 : vector<4x256xf32>
    %cst_355 = arith.constant dense<0.000000e+00> : vector<4xf32>
    %419 = vector.multi_reduction <add>, %418, %cst_355 [1] : vector<4x256xf32> to vector<4xf32>
    %420 = vector.shape_cast %419 : vector<4xf32> to vector<4x1xf32>
    %421 = arith.addf %410, %420 : vector<4x1xf32>
    %c12_356 = arith.constant 12 : index
    %c0_357 = arith.constant 0 : index
    %c0_358 = arith.constant 0 : index
    %422 = vector.load %arg10[%c12_356, %c0_357, %c0_358] : memref<16x4x16xbf16, #tpu.memory_space<vmem>>, vector<1x4x16xbf16>
    %423 = vector.shape_cast %422 : vector<1x4x16xbf16> to vector<4x16xbf16>
    %cst_359 = arith.constant dense<0.000000e+00> : vector<4x256xf32>
    %424 = tpu.matmul %423, %288, %cst_359 {dimension_numbers = #tpu.dot_dimension_numbers<[1], [0], [0], [1], [0, 0, 1, 1], [], []>} : vector<4x16xbf16>, vector<16x256xbf16>, vector<4x256xf32> -> vector<4x256xf32>
    %c12_360 = arith.constant 12 : index
    %c0_361 = arith.constant 0 : index
    %c0_362 = arith.constant 0 : index
    %425 = vector.load %arg11[%c12_360, %c0_361, %c0_362] : memref<16x1x256xbf16, #tpu.memory_space<vmem>>, vector<1x1x256xbf16>
    %426 = vector.shape_cast %425 : vector<1x1x256xbf16> to vector<1x256xbf16>
    %427 = arith.extf %426 : vector<1x256xbf16> to vector<1x256xf32>
    %428 = vector.broadcast %427 : vector<1x256xf32> to vector<4x256xf32>
    %429 = arith.mulf %424, %428 : vector<4x256xf32>
    %cst_363 = arith.constant dense<0.000000e+00> : vector<4xf32>
    %430 = vector.multi_reduction <add>, %429, %cst_363 [1] : vector<4x256xf32> to vector<4xf32>
    %431 = vector.shape_cast %430 : vector<4xf32> to vector<4x1xf32>
    %432 = arith.addf %421, %431 : vector<4x1xf32>
    %c13_364 = arith.constant 13 : index
    %c0_365 = arith.constant 0 : index
    %c0_366 = arith.constant 0 : index
    %433 = vector.load %arg10[%c13_364, %c0_365, %c0_366] : memref<16x4x16xbf16, #tpu.memory_space<vmem>>, vector<1x4x16xbf16>
    %434 = vector.shape_cast %433 : vector<1x4x16xbf16> to vector<4x16xbf16>
    %cst_367 = arith.constant dense<0.000000e+00> : vector<4x256xf32>
    %435 = tpu.matmul %434, %288, %cst_367 {dimension_numbers = #tpu.dot_dimension_numbers<[1], [0], [0], [1], [0, 0, 1, 1], [], []>} : vector<4x16xbf16>, vector<16x256xbf16>, vector<4x256xf32> -> vector<4x256xf32>
    %c13_368 = arith.constant 13 : index
    %c0_369 = arith.constant 0 : index
    %c0_370 = arith.constant 0 : index
    %436 = vector.load %arg11[%c13_368, %c0_369, %c0_370] : memref<16x1x256xbf16, #tpu.memory_space<vmem>>, vector<1x1x256xbf16>
    %437 = vector.shape_cast %436 : vector<1x1x256xbf16> to vector<1x256xbf16>
    %438 = arith.extf %437 : vector<1x256xbf16> to vector<1x256xf32>
    %439 = vector.broadcast %438 : vector<1x256xf32> to vector<4x256xf32>
    %440 = arith.mulf %435, %439 : vector<4x256xf32>
    %cst_371 = arith.constant dense<0.000000e+00> : vector<4xf32>
    %441 = vector.multi_reduction <add>, %440, %cst_371 [1] : vector<4x256xf32> to vector<4xf32>
    %442 = vector.shape_cast %441 : vector<4xf32> to vector<4x1xf32>
    %443 = arith.addf %432, %442 : vector<4x1xf32>
    %c14_372 = arith.constant 14 : index
    %c0_373 = arith.constant 0 : index
    %c0_374 = arith.constant 0 : index
    %444 = vector.load %arg10[%c14_372, %c0_373, %c0_374] : memref<16x4x16xbf16, #tpu.memory_space<vmem>>, vector<1x4x16xbf16>
    %445 = vector.shape_cast %444 : vector<1x4x16xbf16> to vector<4x16xbf16>
    %cst_375 = arith.constant dense<0.000000e+00> : vector<4x256xf32>
    %446 = tpu.matmul %445, %288, %cst_375 {dimension_numbers = #tpu.dot_dimension_numbers<[1], [0], [0], [1], [0, 0, 1, 1], [], []>} : vector<4x16xbf16>, vector<16x256xbf16>, vector<4x256xf32> -> vector<4x256xf32>
    %c14_376 = arith.constant 14 : index
    %c0_377 = arith.constant 0 : index
    %c0_378 = arith.constant 0 : index
    %447 = vector.load %arg11[%c14_376, %c0_377, %c0_378] : memref<16x1x256xbf16, #tpu.memory_space<vmem>>, vector<1x1x256xbf16>
    %448 = vector.shape_cast %447 : vector<1x1x256xbf16> to vector<1x256xbf16>
    %449 = arith.extf %448 : vector<1x256xbf16> to vector<1x256xf32>
    %450 = vector.broadcast %449 : vector<1x256xf32> to vector<4x256xf32>
    %451 = arith.mulf %446, %450 : vector<4x256xf32>
    %cst_379 = arith.constant dense<0.000000e+00> : vector<4xf32>
    %452 = vector.multi_reduction <add>, %451, %cst_379 [1] : vector<4x256xf32> to vector<4xf32>
    %453 = vector.shape_cast %452 : vector<4xf32> to vector<4x1xf32>
    %454 = arith.addf %443, %453 : vector<4x1xf32>
    %c15_380 = arith.constant 15 : index
    %c0_381 = arith.constant 0 : index
    %c0_382 = arith.constant 0 : index
    %455 = vector.load %arg10[%c15_380, %c0_381, %c0_382] : memref<16x4x16xbf16, #tpu.memory_space<vmem>>, vector<1x4x16xbf16>
    %456 = vector.shape_cast %455 : vector<1x4x16xbf16> to vector<4x16xbf16>
    %cst_383 = arith.constant dense<0.000000e+00> : vector<4x256xf32>
    %457 = tpu.matmul %456, %288, %cst_383 {dimension_numbers = #tpu.dot_dimension_numbers<[1], [0], [0], [1], [0, 0, 1, 1], [], []>} : vector<4x16xbf16>, vector<16x256xbf16>, vector<4x256xf32> -> vector<4x256xf32>
    %c15_384 = arith.constant 15 : index
    %c0_385 = arith.constant 0 : index
    %c0_386 = arith.constant 0 : index
    %458 = vector.load %arg11[%c15_384, %c0_385, %c0_386] : memref<16x1x256xbf16, #tpu.memory_space<vmem>>, vector<1x1x256xbf16>
    %459 = vector.shape_cast %458 : vector<1x1x256xbf16> to vector<1x256xbf16>
    %460 = arith.extf %459 : vector<1x256xbf16> to vector<1x256xf32>
    %461 = vector.broadcast %460 : vector<1x256xf32> to vector<4x256xf32>
    %462 = arith.mulf %457, %461 : vector<4x256xf32>
    %cst_387 = arith.constant dense<0.000000e+00> : vector<4xf32>
    %463 = vector.multi_reduction <add>, %462, %cst_387 [1] : vector<4x256xf32> to vector<4xf32>
    %464 = vector.shape_cast %463 : vector<4xf32> to vector<4x1xf32>
    %465 = arith.addf %454, %464 : vector<4x1xf32>
    %c0_388 = arith.constant 0 : index
    %c0_389 = arith.constant 0 : index
    %466 = vector.load %arg12[%c0_388, %c0_389] : memref<1x1xf32, #tpu.memory_space<vmem>>, vector<1x1xf32>
    %467 = vector.broadcast %466 : vector<1x1xf32> to vector<4x1xf32>
    %468 = arith.addf %465, %467 : vector<4x1xf32>
    %cst_390 = arith.constant 0.000000e+00 : f32
    %469 = vector.broadcast %cst_390 : f32 to vector<4x1xf32>
    %470 = arith.subf %469, %468 : vector<4x1xf32>
    %471 = math.exp %470 : vector<4x1xf32>
    %cst_391 = arith.constant 1.000000e+00 : f32
    %472 = vector.broadcast %cst_391 : f32 to vector<4x1xf32>
    %473 = arith.addf %472, %471 : vector<4x1xf32>
    %474 = tpu.reciprocal %473 {approx = true} : vector<4x1xf32> -> vector<4x1xf32>
    %cst_392 = arith.constant 1.000000e+00 : f32
    %475 = vector.broadcast %cst_392 : f32 to vector<4x1xf32>
    %476 = arith.minimumf %474, %475 : vector<4x1xf32>
    %c0_393 = arith.constant 0 : index
    %c0_394 = arith.constant 0 : index
    %c0_395 = arith.constant 0 : index
    %477 = vector.load %arg13[%c0_393, %c0_394, %c0_395] : memref<1x4x1xf32, #tpu.memory_space<vmem>>, vector<1x4x1xf32>
    %478 = vector.shape_cast %477 : vector<1x4x1xf32> to vector<4x1xf32>
    %479 = vector.shape_cast %476 : vector<4x1xf32> to vector<1x4x1xf32>
    tpu.vector_store %arg13[%c0_393, %c0_394, %c0_395], %479 {strides = array<i32>} : memref<1x4x1xf32, #tpu.memory_space<vmem>>, vector<1x4x1xf32>,
    return
  }
  func.func @transform_0(%arg0: i32) -> (i32, i32, i32) {
    %c0_i32 = arith.constant 0 : i32
    %c0_i32_0 = arith.constant 0 : i32
    %c0_i32_1 = arith.constant 0 : i32
    return %arg0, %c0_i32, %c0_i32_0 : i32, i32, i32
  }
  func.func @transform_1(%arg0: i32) -> (i32, i32) {
    %c0_i32 = arith.constant 0 : i32
    %c0_i32_0 = arith.constant 0 : i32
    %c0_i32_1 = arith.constant 0 : i32
    return %c0_i32, %c0_i32_0 : i32, i32
  }
  func.func @transform_2(%arg0: i32) -> (i32, i32) {
    %c0_i32 = arith.constant 0 : i32
    %c0_i32_0 = arith.constant 0 : i32
    %c0_i32_1 = arith.constant 0 : i32
    return %c0_i32, %c0_i32_0 : i32, i32
  }
  func.func @transform_3(%arg0: i32) -> (i32, i32, i32) {
    %c0_i32 = arith.constant 0 : i32
    %c0_i32_0 = arith.constant 0 : i32
    %c0_i32_1 = arith.constant 0 : i32
    %c0_i32_2 = arith.constant 0 : i32
    return %c0_i32, %c0_i32_0, %c0_i32_1 : i32, i32, i32
  }
  func.func @transform_4(%arg0: i32) -> (i32, i32, i32) {
    %c0_i32 = arith.constant 0 : i32
    %c0_i32_0 = arith.constant 0 : i32
    %c0_i32_1 = arith.constant 0 : i32
    %c0_i32_2 = arith.constant 0 : i32
    return %c0_i32, %c0_i32_0, %c0_i32_1 : i32, i32, i32
  }
  func.func @transform_5(%arg0: i32) -> (i32, i32) {
    %c0_i32 = arith.constant 0 : i32
    %c0_i32_0 = arith.constant 0 : i32
    %c0_i32_1 = arith.constant 0 : i32
    return %c0_i32, %c0_i32_0 : i32, i32
  }
  func.func @transform_6(%arg0: i32) -> (i32, i32, i32) {
    %c0_i32 = arith.constant 0 : i32
    %c0_i32_0 = arith.constant 0 : i32
    %c0_i32_1 = arith.constant 0 : i32
    %c0_i32_2 = arith.constant 0 : i32
    return %c0_i32, %c0_i32_0, %c0_i32_1 : i32, i32, i32
  }
  func.func @transform_7(%arg0: i32) -> (i32, i32, i32) {
    %c0_i32 = arith.constant 0 : i32
    %c0_i32_0 = arith.constant 0 : i32
    %c0_i32_1 = arith.constant 0 : i32
    %c0_i32_2 = arith.constant 0 : i32
    return %c0_i32, %c0_i32_0, %c0_i32_1 : i32, i32, i32
  }
  func.func @transform_8(%arg0: i32) -> (i32, i32) {
    %c0_i32 = arith.constant 0 : i32
    %c0_i32_0 = arith.constant 0 : i32
    %c0_i32_1 = arith.constant 0 : i32
    return %c0_i32, %c0_i32_0 : i32, i32
  }
  func.func @transform_9(%arg0: i32) -> (i32, i32, i32) {
    %c0_i32 = arith.constant 0 : i32
    %c0_i32_0 = arith.constant 0 : i32
    %c0_i32_1 = arith.constant 0 : i32
    %c0_i32_2 = arith.constant 0 : i32
    return %c0_i32, %c0_i32_0, %c0_i32_1 : i32, i32, i32
  }
  func.func @transform_10(%arg0: i32) -> (i32, i32, i32) {
    %c0_i32 = arith.constant 0 : i32
    %c0_i32_0 = arith.constant 0 : i32
    %c0_i32_1 = arith.constant 0 : i32
    %c0_i32_2 = arith.constant 0 : i32
    return %c0_i32, %c0_i32_0, %c0_i32_1 : i32, i32, i32
  }
  func.func @transform_11(%arg0: i32) -> (i32, i32) {
    %c0_i32 = arith.constant 0 : i32
    %c0_i32_0 = arith.constant 0 : i32
    %c0_i32_1 = arith.constant 0 : i32
    return %c0_i32, %c0_i32_0 : i32, i32
  }
  func.func @transform_12(%arg0: i32) -> (i32, i32, i32) {
    %c0_i32 = arith.constant 0 : i32
    %c0_i32_0 = arith.constant 0 : i32
    %c0_i32_1 = arith.constant 0 : i32
    return %arg0, %c0_i32, %c0_i32_0 : i32, i32, i32
  }
}

</mosaic_0001>

<bundles_post_ra>
// kernel: discriminator_forward.1
= control target key start
LH: loop header
LB: loop body
LE: loop exit
PB: predicated region body
PF: predicated region fallthrough
CT: control target
= control target key end

     0   :  { %s12606_s23 = smov 0   ;;  %s15490_s0 = inlined_call_operand.vmem [shape: bf16[2,256,128], index: 0, kind: input, shape index: {}]   ;;  %s15491_s1 = inlined_call_operand.vmem [shape: bf16[128,64], index: 1, kind: input, shape index: {}]   ;;  %s15492_s2 = inlined_call_operand.vmem [shape: f32[1,64], index: 2, kind: input, shape index: {}]   ;;  %s15493_s3 = inlined_call_operand.vmem [shape: bf16[16,64,256], index: 3, kind: input, shape index: {}]   ;;  %s15494_s4 = inlined_call_operand.vmem [shape: bf16[16,64,128], index: 4, kind: input, shape index: {}]   ;;  %s15495_s5 = inlined_call_operand.vmem [shape: f32[1,128], index: 5, kind: input, shape index: {}]   ;;  %s15496_s6 = inlined_call_operand.vmem [shape: bf16[16,16,64], index: 6, kind: input, shape index: {}]   ;;  %s15497_s7 = inlined_call_operand.vmem [shape: bf16[16,128,256], index: 7, kind: input, shape index: {}]   ;;  %s15498_s8 = inlined_call_operand.vmem [shape: f32[1,256], index: 8, kind: input, shape index: {}]   ;;  %s15499_s9 = inlined_call_operand.vmem [shape: bf16[16,4,16], index: 9, kind: input, shape index: {}]   ;;  %s15500_s10 = inlined_call_operand.vmem [shape: bf16[16,1,256], index: 10, kind: input, shape index: {}]   ;;  %s15501_s11 = inlined_call_operand.<no memory space> [shape: f32[1,1], index: 11, kind: input, shape index: {}]   ;;  %s15502_s12 = inlined_call_operand.vmem [shape: f32[2,4,1], index: 12, kind: output, shape index: {}]  }
   0x1   :  { %v17_v0 = vstv %s15501_s11 }
   0x2   :  { %18 = vst [vmem:[#allocation2] sm:$0x1] %v17_v0 }
   0x3 LB: > { %s9146_s24 = sadd.s32 4294967295, %s12533_s23   ;;  %p9150_p0 = scmp.ge.s32.totalorder %s12533_s23, 1  ;;  %s12533_s23 = sphi %s12606_s23, %s24_s23  }
   0x4   : > { %p364_p1 = scmp.lt.s32.totalorder %s12533_s23, 3 }
   0x6   : > { %p365_p2 = pnand %p9150_p0, %p364_p1 }
   0x8   : > { %368 = sbr.rel (%p365_p2) target bundleno = 3284 (0xcd4), region = 68 }
   0xf   : > { %v11843_v1 = vld [vmem:[%s15491_s1] sm:$0xff]   ;;  %p405_p3 = scmp.lt.s32.totalorder %s9146_s24, 1  ;;  %v11844_v2 = vld [vmem:[%s15491_s1 + $0x8] sm:$0xff]   ;;  %v11845_v3 = vld [vmem:[%s15491_s1 + $0x10] sm:$0xff]  }
  0x10   : > { %11156 = vmatprep.subr.bf16.mxu0 %v11843_v1  ;;  %v11846_v4 = vld [vmem:[%s15491_s1 + $0x18] sm:$0xff]   ;;  %v11847_v6 = vld [vmem:[%s15491_s1 + $0x20] sm:$0xff]   ;;  %v11848_v7 = vld [vmem:[%s15491_s1 + $0x28] sm:$0xff]  }
  0x11   : > { %s15547_s24 = smov (!%p405_p3, %s9146_s24), 1  ;;  %11157 = vmatpush3.bf16.msra.mxu0 %v11843_v1  ;;  %v11849_v8 = vld [vmem:[%s15491_s1 + $0x30] sm:$0xff]   ;;  %v11850_v9 = vld [vmem:[%s15491_s1 + $0x38] sm:$0xff]   ;;  %v11869_v25 = vld [vmem:[%s15493_s3 + $0x4] ss:$8 sps:$4 sm:$0xff]  }
  0x12   : > { %11158 = vmatprep.subr.bf16.mxu0 %v11844_v2  ;;  %s10283_s30 = sshll.u32 %s15547_s24, 7  ;;  %v11872_v26 = vld [vmem:[%s15493_s3 + $0x84] ss:$8 sps:$4 sm:$0xff]   ;;  %v12671_v27 = vld [vmem:[%s15492_s2] ss:$0 sm:$0xff]  ;;  %s9153_s21 = sshll.u32 %s15547_s24, 2 }
  0x13   : > { %s12629_s15 = scalar_lea.vmem %s15490_s0, %s10283_s30  ;;  %1423 = vmatprep.mubr.bf16.mxu1 %v11872_v26  ;;  %s413_s26 = scalar_lea.vmem %s15502_s12, %s9153_s21 }
  0x14   : > { %v11851_v5 = vld [vmem:[%s12629_s15] sm:$0xff]   ;;  %v11852_v10 = vld [vmem:[%s12629_s15 + $0x8] sm:$0xff]   ;;  %v11853_v11 = vld [vmem:[%s12629_s15 + $0x10] sm:$0xff]  }
  0x15   : > { %11159 = vmatpush3.bf16.msra.mxu0 %v11844_v2  ;;  %11172 = vmatprep.mubr.bf16.mxu0 %v11851_v5  ;;  %v11854_v12 = vld [vmem:[%s12629_s15 + $0x18] sm:$0xff]   ;;  %v11855_v13 = vld [vmem:[%s12629_s15 + $0x20] sm:$0xff]   ;;  %v11856_v14 = vld [vmem:[%s12629_s15 + $0x28] sm:$0xff]  }
  0x16   : > { %11160 = vmatprep.subr.bf16.mxu0 %v11845_v3  ;;  %v11857_v15 = vld [vmem:[%s12629_s15 + $0x30] sm:$0xff]   ;;  %v11858_v16 = vld [vmem:[%s12629_s15 + $0x38] sm:$0xff]   ;;  %v11859_v17 = vld [vmem:[%s12629_s15 + $0x40] sm:$0xff]  }
  0x17   : > { %v11860_v18 = vld [vmem:[%s12629_s15 + $0x48] sm:$0xff]   ;;  %v11861_v19 = vld [vmem:[%s12629_s15 + $0x50] sm:$0xff]   ;;  %v11862_v20 = vld [vmem:[%s12629_s15 + $0x58] sm:$0xff]  }
  0x18   : > { %v11863_v21 = vld [vmem:[%s12629_s15 + $0x60] sm:$0xff]   ;;  %v11864_v22 = vld [vmem:[%s12629_s15 + $0x68] sm:$0xff]   ;;  %v11865_v23 = vld [vmem:[%s12629_s15 + $0x70] sm:$0xff]  }
  0x19   : > { %11161 = vmatpush3.bf16.msra.mxu0 %v11845_v3  ;;  %v11866_v24 = vld [vmem:[%s12629_s15 + $0x78] sm:$0xff]  }
  0x1a   : > { %11162 = vmatprep.subr.bf16.mxu0 %v11846_v4 }
  0x1d   : > { %11163 = vmatpush3.bf16.msra.mxu0 %v11846_v4 }
  0x1e   : > { %11164 = vmatprep.subr.bf16.mxu0 %v11847_v6 }
  0x21   : > { %11165 = vmatpush3.bf16.msra.mxu0 %v11847_v6 }
  0x22   : > { %11166 = vmatprep.subr.bf16.mxu0 %v11848_v7 }
  0x25   : > { %11167 = vmatpush3.bf16.msra.mxu0 %v11848_v7 }
  0x26   : > { %11168 = vmatprep.subr.bf16.mxu0 %v11849_v8 }
  0x29   : > { %11169 = vmatpush3.bf16.msra.mxu0 %v11849_v8 }
  0x2a   : > { %11170 = vmatprep.subr.bf16.mxu0 %v11850_v9 }
  0x2d   : > { %11171 = vmatpush3.bf16.msra.mxu0 %v11850_v9 }
  0x30   : > { %11173 = vmatmul.mubr.bf16.vlgmr.msra.gmra.mrb[0].mxu0 %v11852_v10 }
  0x31   : > { %11176 = vmatprep.mubr.bf16.mxu0 %v11853_v11 }
  0x38   : > { %11177 = vmatmul.mubr.bf16.gmra.mrb[4].mxu0 %v11854_v12 }
  0x39   : > { %11180 = vmatprep.mubr.bf16.mxu0 %v11855_v13 }
  0x40   : > { %11181 = vmatmul.mubr.bf16.gmra.mrb[8].mxu0 %v11856_v14 }
  0x41   : > { %11184 = vmatprep.mubr.bf16.mxu0 %v11857_v15 }
  0x48   : > { %11185 = vmatmul.mubr.bf16.gmra.mrb[12].mxu0 %v11858_v16 }
  0x49   : > { %11188 = vmatprep.mubr.bf16.mxu0 %v11859_v17 }
  0x50   : > { %11189 = vmatmul.mubr.bf16.gmra.mrb[16].mxu0 %v11860_v18 }
  0x51   : > { %11192 = vmatprep.mubr.bf16.mxu0 %v11861_v19 }
  0x58   : > { %11193 = vmatmul.mubr.bf16.gmra.mrb[20].mxu0 %v11862_v20 }
  0x59   : > { %11196 = vmatprep.mubr.bf16.mxu0 %v11863_v21 }
  0x60   : > { %11197 = vmatmul.mubr.bf16.gmra.mrb[24].mxu0 %v11864_v22 }
  0x61   : > { %11200 = vmatprep.mubr.bf16.mxu0 %v11865_v23 }
  0x68   : > { %11201 = vmatmul.mubr.bf16.gmra.mrb[28].mxu0 %v11866_v24 }
  0x69   : > { %967 = vmatprep.mubr.bf16.mxu0 %v11869_v25 }
 0x103   : > { %v11174_v28 = vpop.f32.mrb[0].mxu0 }
 0x104   : > { %v657_v29 = vadd.f32 %v11174_v28, %v12671_v27  ;;  %v648_v30 = vpop.f32.mrb[1].mxu0 }
 0x105   : > { %v649_v31 = vadd.f32 %v12671_v27, %v648_v30  ;;  %v11175_v32 = vpop.f32.mrb[2].mxu0 }
 0x106   : > { %v809_v33 = vmul.f32 0.2, %v657_v29  ;;  %v660_v34 = vadd.f32 %v11175_v32, %v12671_v27  ;;  %v651_v35 = vpop.f32.mrb[3].mxu0  ;;  %vm777_vm0 = vcmp.gt.f32.partialorder %v657_v29, 0.0 }
 0x107   : > { %v807_v36 = vmul.f32 0.2, %v649_v31  ;;  %v652_v37 = vadd.f32 %v12671_v27, %v651_v35  ;;  %vm775_vm1 = vcmp.gt.f32.partialorder %v649_v31, 0.0 }
 0x108   : > { %vm778_vm2 = vcmp.gt.f32.partialorder %v660_v34, 0.0  ;;  %v810_v38 = vmul.f32 0.2, %v660_v34  ;;  %v841_v40 = vsel %vm777_vm0, %v657_v29, %v809_v33 }
 0x109   : > { %vm776_vm3 = vcmp.gt.f32.partialorder %v652_v37, 0.0  ;;  %v808_v39 = vmul.f32 0.2, %v652_v37  ;;  %v839_v42 = vsel %vm775_vm1, %v649_v31, %v807_v36 }
 0x10a   : > { %v842_v41 = vsel %vm778_vm2, %v660_v34, %v810_v38 }
 0x10b   : > { %v12677_v43 = vpack.c.bf16 %v842_v41, %v841_v40  ;;  %v840_v44 = vsel %vm776_vm3, %v652_v37, %v808_v39  ;;  %v11178_v45 = vpop.f32.mrb[4].mxu0 }
 0x10c   : > { %v12679_v46 = vpack.c.bf16 %v840_v44, %v839_v42  ;;  %v673_v47 = vadd.f32 %v11178_v45, %v12671_v27  ;;  %v664_v48 = vpop.f32.mrb[5].mxu0 }
 0x10d   : > { %v665_v49 = vadd.f32 %v12671_v27, %v664_v48  ;;  %v11179_v50 = vpop.f32.mrb[6].mxu0 }
 0x10e   : > { %v813_v51 = vmul.f32 0.2, %v673_v47  ;;  %v676_v52 = vadd.f32 %v11179_v50, %v12671_v27  ;;  %v667_v53 = vpop.f32.mrb[7].mxu0  ;;  %vm781_vm4 = vcmp.gt.f32.partialorder %v673_v47, 0.0 }
 0x10f   : > { %v811_v54 = vmul.f32 0.2, %v665_v49  ;;  %v668_v55 = vadd.f32 %v12671_v27, %v667_v53  ;;  %vm779_vm5 = vcmp.gt.f32.partialorder %v665_v49, 0.0 }
 0x110   : > { %vm782_vm6 = vcmp.gt.f32.partialorder %v676_v52, 0.0  ;;  %v814_v56 = vmul.f32 0.2, %v676_v52  ;;  %v845_v58 = vsel %vm781_vm4, %v673_v47, %v813_v51 }
 0x111   : > { %vm780_vm7 = vcmp.gt.f32.partialorder %v668_v55, 0.0  ;;  %v812_v57 = vmul.f32 0.2, %v668_v55  ;;  %v843_v60 = vsel %vm779_vm5, %v665_v49, %v811_v54 }
 0x112   : > { %v846_v59 = vsel %vm782_vm6, %v676_v52, %v814_v56 }
 0x113   : > { %v12685_v61 = vpack.c.bf16 %v846_v59, %v845_v58  ;;  %v844_v62 = vsel %vm780_vm7, %v668_v55, %v812_v57  ;;  %v11182_v63 = vpop.f32.mrb[8].mxu0 }
 0x114   : > { %v12687_v0 = vpack.c.bf16 %v844_v62, %v843_v60  ;;  %v689_v1 = vadd.f32 %v11182_v63, %v12671_v27  ;;  %v680_v2 = vpop.f32.mrb[9].mxu0 }
 0x115   : > { %v681_v3 = vadd.f32 %v12671_v27, %v680_v2  ;;  %v11183_v4 = vpop.f32.mrb[10].mxu0 }
 0x116   : > { %v817_v5 = vmul.f32 0.2, %v689_v1  ;;  %v692_v6 = vadd.f32 %v11183_v4, %v12671_v27  ;;  %v683_v7 = vpop.f32.mrb[11].mxu0  ;;  %vm785_vm8 = vcmp.gt.f32.partialorder %v689_v1, 0.0 }
 0x117   : > { %v815_v8 = vmul.f32 0.2, %v681_v3  ;;  %v684_v9 = vadd.f32 %v12671_v27, %v683_v7  ;;  %vm783_vm9 = vcmp.gt.f32.partialorder %v681_v3, 0.0 }
 0x118   : > { %vm786_vm10 = vcmp.gt.f32.partialorder %v692_v6, 0.0  ;;  %v818_v10 = vmul.f32 0.2, %v692_v6  ;;  %v849_v12 = vsel %vm785_vm8, %v689_v1, %v817_v5 }
 0x119   : > { %vm784_vm11 = vcmp.gt.f32.partialorder %v684_v9, 0.0  ;;  %v816_v11 = vmul.f32 0.2, %v684_v9  ;;  %v847_v14 = vsel %vm783_vm9, %v681_v3, %v815_v8 }
 0x11a   : > { %v850_v13 = vsel %vm786_vm10, %v692_v6, %v818_v10 }
 0x11b   : > { %v12693_v15 = vpack.c.bf16 %v850_v13, %v849_v12  ;;  %v848_v16 = vsel %vm784_vm11, %v684_v9, %v816_v11  ;;  %v11186_v17 = vpop.f32.mrb[12].mxu0 }
 0x11c   : > { %v12695_v18 = vpack.c.bf16 %v848_v16, %v847_v14  ;;  %v705_v19 = vadd.f32 %v11186_v17, %v12671_v27  ;;  %v696_v20 = vpop.f32.mrb[13].mxu0 }
 0x11d   : > { %v697_v21 = vadd.f32 %v12671_v27, %v696_v20  ;;  %v11187_v22 = vpop.f32.mrb[14].mxu0 }
 0x11e   : > { %v821_v23 = vmul.f32 0.2, %v705_v19  ;;  %v708_v24 = vadd.f32 %v11187_v22, %v12671_v27  ;;  %v699_v25 = vpop.f32.mrb[15].mxu0  ;;  %vm789_vm12 = vcmp.gt.f32.partialorder %v705_v19, 0.0 }
 0x11f   : > { %v819_v26 = vmul.f32 0.2, %v697_v21  ;;  %v700_v28 = vadd.f32 %v12671_v27, %v699_v25  ;;  %vm787_vm13 = vcmp.gt.f32.partialorder %v697_v21, 0.0 }
 0x120   : > { %vm790_vm14 = vcmp.gt.f32.partialorder %v708_v24, 0.0  ;;  %v822_v29 = vmul.f32 0.2, %v708_v24  ;;  %v853_v31 = vsel %vm789_vm12, %v705_v19, %v821_v23 }
 0x121   : > { %vm788_vm15 = vcmp.gt.f32.partialorder %v700_v28, 0.0  ;;  %v820_v30 = vmul.f32 0.2, %v700_v28  ;;  %v851_v33 = vsel %vm787_vm13, %v697_v21, %v819_v26 }
 0x122   : > { %v854_v32 = vsel %vm790_vm14, %v708_v24, %v822_v29 }
 0x123   : > { %v12701_v34 = vpack.c.bf16 %v854_v32, %v853_v31  ;;  %v852_v35 = vsel %vm788_vm15, %v700_v28, %v820_v30  ;;  %v11190_v36 = vpop.f32.mrb[16].mxu0 }
 0x124   : > { %v12703_v37 = vpack.c.bf16 %v852_v35, %v851_v33  ;;  %v721_v38 = vadd.f32 %v11190_v36, %v12671_v27  ;;  %v712_v39 = vpop.f32.mrb[17].mxu0 }
 0x125   : > { %15508 = vst [vmem:[#allocation3_spill] sm:$0xff] %v12701_v34  ;;  %v713_v40 = vadd.f32 %v12671_v27, %v712_v39  ;;  %v11191_v41 = vpop.f32.mrb[18].mxu0 }
 0x126   : > { %v825_v42 = vmul.f32 0.2, %v721_v38  ;;  %v724_v44 = vadd.f32 %v11191_v41, %v12671_v27  ;;  %v715_v45 = vpop.f32.mrb[19].mxu0  ;;  %vm793_vm0 = vcmp.gt.f32.partialorder %v721_v38, 0.0 }
 0x127   : > { %v823_v47 = vmul.f32 0.2, %v713_v40  ;;  %v716_v48 = vadd.f32 %v12671_v27, %v715_v45  ;;  %vm791_vm1 = vcmp.gt.f32.partialorder %v713_v40, 0.0 }
 0x128   : > { %vm794_vm2 = vcmp.gt.f32.partialorder %v724_v44, 0.0  ;;  %v826_v49 = vmul.f32 0.2, %v724_v44  ;;  %v857_v51 = vsel %vm793_vm0, %v721_v38, %v825_v42  ;;  %vm1163_vm0 = vcmask 523264  }
 0x129   : > { %vm792_vm3 = vcmp.gt.f32.partialorder %v716_v48, 0.0  ;;  %v824_v50 = vmul.f32 0.2, %v716_v48  ;;  %v855_v53 = vsel %vm791_vm1, %v713_v40, %v823_v47  ;;  %vm12536_vm1 = vmmov 0  }
 0x12a   : > { %v858_v52 = vsel %vm794_vm2, %v724_v44, %v826_v49 }
 0x12b   : > { %v12709_v54 = vpack.c.bf16 %v858_v52, %v857_v51  ;;  %v856_v55 = vsel %vm792_vm3, %v716_v48, %v824_v50  ;;  %v11194_v56 = vpop.f32.mrb[20].mxu0 }
 0x12c   : > { %v12711_v57 = vpack.c.bf16 %v856_v55, %v855_v53  ;;  %v737_v58 = vadd.f32 %v11194_v56, %v12671_v27  ;;  %v728_v59 = vpop.f32.mrb[21].mxu0  ;;  %v11867_v56 = vld [vmem:[%s15493_s3] ss:$8 sps:$4 sm:$0xff]  }
 0x12d   : > { %v729_v60 = vadd.f32 %v12671_v27, %v728_v59  ;;  %v11195_v62 = vpop.f32.mrb[22].mxu0  ;;  %v11873_v59 = vld [vmem:[%s15493_s3 + $0x14] ss:$8 sps:$4 sm:$0xff]  }
 0x12e   : > { %v829_v63 = vmul.f32 0.2, %v737_v58  ;;  %v740_v1 = vadd.f32 %v11195_v62, %v12671_v27  ;;  %v731_v2 = vpop.f32.mrb[23].mxu0  ;;  %10308 = vmatprep.subr.bf16.mxu0 %v12711_v57  ;;  %10404 = vmatprep.subr.bf16.mxu1 %v12711_v57  ;;  %vm797_vm4 = vcmp.gt.f32.partialorder %v737_v58, 0.0  ;;  %v11875_v62 = vld [vmem:[%s15493_s3 + $0x10] ss:$8 sps:$4 sm:$0xff]  }
 0x12f   : > { %v827_v3 = vmul.f32 0.2, %v729_v60  ;;  %v732_v4 = vadd.f32 %v12671_v27, %v731_v2  ;;  %10309 = vmatpush3.bf16.msra.mxu0 %v12679_v46  ;;  %10405 = vmatpush3.bf16.msra.mxu1 %v12679_v46  ;;  %vm795_vm5 = vcmp.gt.f32.partialorder %v729_v60, 0.0  ;;  %v11882_v2 = vld [vmem:[%s15493_s3 + $0xa4] ss:$8 sps:$4 sm:$0xff]  }
 0x130   : > { %vm798_vm6 = vcmp.gt.f32.partialorder %v740_v1, 0.0  ;;  %v830_v5 = vmul.f32 0.2, %v740_v1  ;;  %10310 = vmatprep.subr.bf16.mxu0 %v12709_v54  ;;  %10406 = vmatprep.subr.bf16.mxu1 %v12709_v54  ;;  %v861_v7 = vsel %vm797_vm4, %v737_v58, %v829_v63  ;;  %v11870_v58 = vld [vmem:[%s15493_s3 + $0x80] ss:$8 sps:$4 sm:$0xff]  }
 0x131   : > { %vm796_vm7 = vcmp.gt.f32.partialorder %v732_v4, 0.0  ;;  %v828_v6 = vmul.f32 0.2, %v732_v4  ;;  %v859_v9 = vsel %vm795_vm5, %v729_v60, %v827_v3  ;;  %v11876_v60 = vld [vmem:[%s15493_s3 + $0x94] ss:$8 sps:$4 sm:$0xff]  }
 0x132   : > { %v862_v8 = vsel %vm798_vm6, %v740_v1, %v830_v5  ;;  %v11878_v63 = vld [vmem:[%s15493_s3 + $0x90] ss:$8 sps:$4 sm:$0xff]   ;;  %v11879_v1 = vld [vmem:[%s15493_s3 + $0x24] ss:$8 sps:$4 sm:$0xff]   ;;  %v11881_v3 = vld [vmem:[%s15493_s3 + $0x20] ss:$8 sps:$4 sm:$0xff]  }
 0x133   : > { %v12723_v10 = vpack.c.bf16 %v862_v8, %v861_v7  ;;  %v860_v11 = vsel %vm796_vm7, %v732_v4, %v828_v6  ;;  %v11198_v12 = vpop.f32.mrb[24].mxu0  ;;  %10311 = vmatpush3.bf16.msra.mxu0 %v12677_v43  ;;  %10407 = vmatpush3.bf16.msra.mxu1 %v12677_v43  ;;  %v11884_v4 = vld [vmem:[%s15493_s3 + $0xa0] ss:$8 sps:$4 sm:$0xff]   ;;  %v11885_v5 = vld [vmem:[%s15493_s3 + $0x34] ss:$8 sps:$4 sm:$0xff]  }
 0x134   : > { %v12727_v13 = vpack.c.bf16 %v860_v11, %v859_v9  ;;  %v753_v14 = vadd.f32 %v11198_v12, %v12671_v27  ;;  %v744_v16 = vpop.f32.mrb[25].mxu0  ;;  %v11888_v6 = vld [vmem:[%s15493_s3 + $0xb4] ss:$8 sps:$4 sm:$0xff]   ;;  %v11887_v7 = vld [vmem:[%s15493_s3 + $0x30] ss:$8 sps:$4 sm:$0xff]  }
 0x135   : > { %v745_v17 = vadd.f32 %v12671_v27, %v744_v16  ;;  %v11199_v19 = vpop.f32.mrb[26].mxu0  ;;  %v11890_v8 = vld [vmem:[%s15493_s3 + $0xb0] ss:$8 sps:$4 sm:$0xff]   ;;  %v11893_v9 = vld [vmem:[%s15493_s3 + $0x44] ss:$8 sps:$4 sm:$0xff]  }
 0x136   : > { %v833_v20 = vmul.f32 0.2, %v753_v14  ;;  %v756_v21 = vadd.f32 %v11199_v19, %v12671_v27  ;;  %v747_v22 = vpop.f32.mrb[27].mxu0  ;;  %10312 = vmatprep.subr.bf16.mxu0 %v12727_v13  ;;  %10408 = vmatprep.subr.bf16.mxu1 %v12727_v13  ;;  %vm801_vm8 = vcmp.gt.f32.partialorder %v753_v14, 0.0  ;;  %v11896_v11 = vld [vmem:[%s15493_s3 + $0xc4] ss:$8 sps:$4 sm:$0xff]  }
 0x137   : > { %v831_v23 = vmul.f32 0.2, %v745_v17  ;;  %v748_v24 = vadd.f32 %v12671_v27, %v747_v22  ;;  %10313 = vmatpush3.bf16.msra.mxu0 %v12687_v0  ;;  %10409 = vmatpush3.bf16.msra.mxu1 %v12687_v0  ;;  %vm799_vm9 = vcmp.gt.f32.partialorder %v745_v17, 0.0  ;;  %v11891_v12 = vld [vmem:[%s15493_s3 + $0x40] ss:$8 sps:$4 sm:$0xff]  }
 0x138   : > { %vm802_vm10 = vcmp.gt.f32.partialorder %v756_v21, 0.0  ;;  %v834_v25 = vmul.f32 0.2, %v756_v21  ;;  %10314 = vmatprep.subr.bf16.mxu0 %v12723_v10  ;;  %10410 = vmatprep.subr.bf16.mxu1 %v12723_v10  ;;  %v865_v28 = vsel %vm801_vm8, %v753_v14, %v833_v20  ;;  %v11894_v14 = vld [vmem:[%s15493_s3 + $0xc0] ss:$8 sps:$4 sm:$0xff]  }
 0x139   : > { %vm800_vm11 = vcmp.gt.f32.partialorder %v748_v24, 0.0  ;;  %v832_v26 = vmul.f32 0.2, %v748_v24  ;;  %v863_v30 = vsel %vm799_vm9, %v745_v17, %v831_v23  ;;  %v11897_v16 = vld [vmem:[%s15493_s3 + $0x54] ss:$8 sps:$4 sm:$0xff]  }
 0x13a   : > { %v866_v29 = vsel %vm802_vm10, %v756_v21, %v834_v25  ;;  %v11900_v17 = vld [vmem:[%s15493_s3 + $0xd4] ss:$8 sps:$4 sm:$0xff]   ;;  %v11899_v19 = vld [vmem:[%s15493_s3 + $0x50] ss:$8 sps:$4 sm:$0xff]   ;;  %v11903_v21 = vld [vmem:[%s15493_s3 + $0x64] ss:$8 sps:$4 sm:$0xff]  }
 0x13b   : > { %v12739_v31 = vpack.c.bf16 %v866_v29, %v865_v28  ;;  %v864_v32 = vsel %vm800_vm11, %v748_v24, %v832_v26  ;;  %v11202_v33 = vpop.f32.mrb[28].mxu0  ;;  %10315 = vmatpush3.bf16.msra.mxu0 %v12685_v61  ;;  %10411 = vmatpush3.bf16.msra.mxu1 %v12685_v61  ;;  %v11902_v20 = vld [vmem:[%s15493_s3 + $0xd0] ss:$8 sps:$4 sm:$0xff]   ;;  %v11906_v22 = vld [vmem:[%s15493_s3 + $0xe4] ss:$8 sps:$4 sm:$0xff]  }
 0x13c   : > { %v12743_v35 = vpack.c.bf16 %v864_v32, %v863_v30  ;;  %v769_v36 = vadd.f32 %v11202_v33, %v12671_v27  ;;  %v760_v38 = vpop.f32.mrb[29].mxu0  ;;  %v11905_v23 = vld [vmem:[%s15493_s3 + $0x60] ss:$8 sps:$4 sm:$0xff]   ;;  %v11909_v25 = vld [vmem:[%s15493_s3 + $0x74] ss:$8 sps:$4 sm:$0xff]  }
 0x13d   : > { %v761_v39 = vadd.f32 %v12671_v27, %v760_v38  ;;  %v11203_v40 = vpop.f32.mrb[30].mxu0  ;;  %v11908_v24 = vld [vmem:[%s15493_s3 + $0xe0] ss:$8 sps:$4 sm:$0xff]   ;;  %v11912_v26 = vld [vmem:[%s15493_s3 + $0xf4] ss:$8 sps:$4 sm:$0xff]  }
 0x13e   : > { %v837_v41 = vmul.f32 0.2, %v769_v36  ;;  %v772_v42 = vadd.f32 %v11203_v40, %v12671_v27  ;;  %v763_v44 = vpop.f32.mrb[31].mxu0  ;;  %10316 = vmatprep.subr.bf16.mxu0 %v12743_v35  ;;  %10412 = vmatprep.subr.bf16.mxu1 %v12743_v35  ;;  %vm805_vm12 = vcmp.gt.f32.partialorder %v769_v36, 0.0  ;;  %v11911_v28 = vld [vmem:[%s15493_s3 + $0x70] ss:$8 sps:$4 sm:$0xff]  }
 0x13f   : > { %v835_v45 = vmul.f32 0.2, %v761_v39  ;;  %v764_v47 = vadd.f32 %v12671_v27, %v763_v44  ;;  %10317 = vmatpush3.bf16.msra.mxu0 %v12695_v18  ;;  %10413 = vmatpush3.bf16.msra.mxu1 %v12695_v18  ;;  %vm803_vm13 = vcmp.gt.f32.partialorder %v761_v39, 0.0  ;;  %v11914_v29 = vld [vmem:[%s15493_s3 + $0xf0] ss:$8 sps:$4 sm:$0xff]  }
 0x140   : > { %vm806_vm14 = vcmp.gt.f32.partialorder %v772_v42, 0.0  ;;  %v838_v48 = vmul.f32 0.2, %v772_v42  ;;  %10318 = vmatprep.subr.bf16.mxu0 %v12739_v31  ;;  %10414 = vmatprep.subr.bf16.mxu1 %v12739_v31  ;;  %v869_v50 = vsel %vm805_vm12, %v769_v36, %v837_v41  ;;  %v11917_v30 = vld [vmem:[%s15493_s3 + $0x104] ss:$8 sps:$4 sm:$0xff]  }
 0x141   : > { %vm804_vm15 = vcmp.gt.f32.partialorder %v764_v47, 0.0  ;;  %v836_v49 = vmul.f32 0.2, %v764_v47  ;;  %v867_v52 = vsel %vm803_vm13, %v761_v39, %v835_v45  ;;  %v11915_v32 = vld [vmem:[%s15493_s3 + $0x100] ss:$8 sps:$4 sm:$0xff]  }
 0x142   : > { %v870_v51 = vsel %vm806_vm14, %v772_v42, %v838_v48  ;;  %v11918_v33 = vld [vmem:[%s15493_s3 + $0x114] ss:$8 sps:$4 sm:$0xff]   ;;  %v11920_v36 = vld [vmem:[%s15493_s3 + $0x110] ss:$8 sps:$4 sm:$0xff]   ;;  %v11921_v38 = vld [vmem:[%s15493_s3 + $0x124] ss:$8 sps:$4 sm:$0xff]  }
 0x143   : > { %v12755_v53 = vpack.c.bf16 %v870_v51, %v869_v50  ;;  %v868_v55 = vsel %vm804_vm15, %v764_v47, %v836_v49  ;;  %10319 = vmatpush3.bf16.msra.mxu0 %v12693_v15  ;;  %10415 = vmatpush3.bf16.msra.mxu1 %v12693_v15  ;;  %v11923_v39 = vld [vmem:[%s15493_s3 + $0x120] ss:$8 sps:$4 sm:$0xff]   ;;  %v11924_v40 = vld [vmem:[%s15493_s3 + $0x134] ss:$8 sps:$4 sm:$0xff]   ;;  %v11926_v41 = vld [vmem:[%s15493_s3 + $0x130] ss:$8 sps:$4 sm:$0xff]  }
 0x144   : > { %v12759_v27 = vpack.c.bf16 %v868_v55, %v867_v52  ;;  %v11929_v42 = vld [vmem:[%s15493_s3 + $0x184] ss:$8 sps:$4 sm:$0xff]   ;;  %v11927_v44 = vld [vmem:[%s15493_s3 + $0x180] ss:$8 sps:$4 sm:$0xff]   ;;  %v11930_v45 = vld [vmem:[%s15493_s3 + $0x194] ss:$8 sps:$4 sm:$0xff]  }
 0x145   : > { %15509 = vst [vmem:[#allocation4_spill] sm:$0xff] %v12755_v53  ;;  %v11932_v47 = vld [vmem:[%s15493_s3 + $0x190] ss:$8 sps:$4 sm:$0xff]   ;;  %v11933_v48 = vld [vmem:[%s15493_s3 + $0x1a4] ss:$8 sps:$4 sm:$0xff]   ;;  %vm7862_vm14 = vcmask 130048  }
 0x146   : > { %10320 = vmatprep.subr.bf16.mxu0 %v12759_v27  ;;  %10416 = vmatprep.subr.bf16.mxu1 %v12759_v27  ;;  %v11935_v49 = vld [vmem:[%s15493_s3 + $0x1a0] ss:$8 sps:$4 sm:$0xff]   ;;  %v11936_v50 = vld [vmem:[%s15493_s3 + $0x1b4] ss:$8 sps:$4 sm:$0xff]   ;;  %v11938_v52 = vld [vmem:[%s15493_s3 + $0x1b0] ss:$8 sps:$4 sm:$0xff]  }
 0x147   : > { %10321 = vmatpush3.bf16.msra.mxu0 %v12703_v37  ;;  %10417 = vmatpush3.bf16.msra.mxu1 %v12703_v37  ;;  %v11987_v51 = vld [vmem:[%s15494_s4 + $0x20] sm:$0xff]   ;;  %vm7930_vm15 = vcmask 1043456  }
 0x148   : > { %10322 = vmatprep.subr.bf16.mxu0 %v12755_v53  ;;  %10418 = vmatprep.subr.bf16.mxu1 %v12755_v53  ;;  %v11941_v55 = vld [vmem:[%s15493_s3 + $0x1c4] ss:$8 sps:$4 sm:$0xff]  }
 0x14b   : > { %10323 = vmatpush3.bf16.msra.mxu0 %v12701_v34  ;;  %10419 = vmatpush3.bf16.msra.mxu1 %v12701_v34 }
 0x14c   : > { %10348 = vmatprep.subr.bf16.mxu0 %v12711_v57  ;;  %10452 = vmatprep.subr.bf16.mxu1 %v12711_v57 }
 0x14e   : > { %968 = vmatmul.mubr.bf16.vlgmr.msra.gmra.mrb[32].mxu0 %v11867_v56  ;;  %1424 = vmatmul.mubr.bf16.vlgmr.msra.gmra.mrb[0].mxu1 %v11870_v58  ;;  %v11988_v56 = vld [vmem:[%s15494_s4 + $0x28] sm:$0xff]   ;;  %v11992_v58 = vld [vmem:[%s15494_s4 + $0x30] sm:$0xff]  }
 0x14f   : > { %10349 = vmatpush3.bf16.msra.mxu0 %v12679_v46  ;;  %10453 = vmatpush3.bf16.msra.mxu1 %v12679_v46 }
 0x150   : > { %10350 = vmatprep.subr.bf16.mxu0 %v12709_v54  ;;  %10454 = vmatprep.subr.bf16.mxu1 %v12709_v54 }
 0x151   : > { %975 = vmatprep.mubr.bf16.mxu0 %v11873_v59  ;;  %1431 = vmatprep.mubr.bf16.mxu1 %v11876_v60  ;;  %v11939_v59 = vld [vmem:[%s15493_s3 + $0x1c0] ss:$8 sps:$4 sm:$0xff]   ;;  %v11942_v60 = vld [vmem:[%s15493_s3 + $0x1d4] ss:$8 sps:$4 sm:$0xff]  }
 0x153   : > { %10351 = vmatpush3.bf16.msra.mxu0 %v12677_v43  ;;  %10455 = vmatpush3.bf16.msra.mxu1 %v12677_v43 }
 0x154   : > { %10352 = vmatprep.subr.bf16.mxu0 %v12727_v13  ;;  %10456 = vmatprep.subr.bf16.mxu1 %v12727_v13 }
 0x156   : > { %976 = vmatmul.mubr.bf16.gmra.mrb[36].mxu0 %v11875_v62  ;;  %1432 = vmatmul.mubr.bf16.gmra.mrb[4].mxu1 %v11878_v63  ;;  %v11993_v62 = vld [vmem:[%s15494_s4 + $0x38] sm:$0xff]  }
 0x157   : > { %10353 = vmatpush3.bf16.msra.mxu0 %v12687_v0  ;;  %10457 = vmatpush3.bf16.msra.mxu1 %v12687_v0  ;;  %v11944_v63 = vld [vmem:[%s15493_s3 + $0x1d0] ss:$8 sps:$4 sm:$0xff]  }
 0x158   : > { %10354 = vmatprep.subr.bf16.mxu0 %v12723_v10  ;;  %10458 = vmatprep.subr.bf16.mxu1 %v12723_v10 }
 0x159   : > { %983 = vmatprep.mubr.bf16.mxu0 %v11879_v1  ;;  %1439 = vmatprep.mubr.bf16.mxu1 %v11882_v2  ;;  %v11945_v1 = vld [vmem:[%s15493_s3 + $0x1e4] ss:$8 sps:$4 sm:$0xff]  }
 0x15a   : > { %v13022_v2 = vld [vmem:[%s15494_s4] sm:$0xff]  }
 0x15b   : > { %10355 = vmatpush3.bf16.msra.mxu0 %v12685_v61  ;;  %10459 = vmatpush3.bf16.msra.mxu1 %v12685_v61 }
 0x15c   : > { %10356 = vmatprep.subr.bf16.mxu0 %v12743_v35  ;;  %10460 = vmatprep.subr.bf16.mxu1 %v12743_v35 }
 0x15e   : > { %984 = vmatmul.mubr.bf16.gmra.mrb[40].mxu0 %v11881_v3  ;;  %1440 = vmatmul.mubr.bf16.gmra.mrb[8].mxu1 %v11884_v4  ;;  %v11947_v3 = vld [vmem:[%s15493_s3 + $0x1e0] ss:$8 sps:$4 sm:$0xff]   ;;  %v11948_v4 = vld [vmem:[%s15493_s3 + $0x1f4] ss:$8 sps:$4 sm:$0xff]  }
 0x15f   : > { %10357 = vmatpush3.bf16.msra.mxu0 %v12695_v18  ;;  %10461 = vmatpush3.bf16.msra.mxu1 %v12695_v18 }
 0x160   : > { %10358 = vmatprep.subr.bf16.mxu0 %v12739_v31  ;;  %10462 = vmatprep.subr.bf16.mxu1 %v12739_v31 }
 0x161   : > { %991 = vmatprep.mubr.bf16.mxu0 %v11885_v5  ;;  %1447 = vmatprep.mubr.bf16.mxu1 %v11888_v6  ;;  %v11950_v5 = vld [vmem:[%s15493_s3 + $0x1f0] ss:$8 sps:$4 sm:$0xff]   ;;  %v11953_v6 = vld [vmem:[%s15493_s3 + $0x204] ss:$8 sps:$4 sm:$0xff]  }
 0x163   : > { %10359 = vmatpush3.bf16.msra.mxu0 %v12693_v15  ;;  %10463 = vmatpush3.bf16.msra.mxu1 %v12693_v15 }
 0x164   : > { %10360 = vmatprep.subr.bf16.mxu0 %v12759_v27  ;;  %10464 = vmatprep.subr.bf16.mxu1 %v12759_v27 }
 0x166   : > { %992 = vmatmul.mubr.bf16.gmra.mrb[44].mxu0 %v11887_v7  ;;  %1448 = vmatmul.mubr.bf16.gmra.mrb[12].mxu1 %v11890_v8  ;;  %v11951_v7 = vld [vmem:[%s15493_s3 + $0x200] ss:$8 sps:$4 sm:$0xff]   ;;  %v11954_v8 = vld [vmem:[%s15493_s3 + $0x214] ss:$8 sps:$4 sm:$0xff]  }
 0x167   : > { %10361 = vmatpush3.bf16.msra.mxu0 %v12703_v37  ;;  %10465 = vmatpush3.bf16.msra.mxu1 %v12703_v37 }
 0x168   : > { %10362 = vmatprep.subr.bf16.mxu0 %v12755_v53  ;;  %10466 = vmatprep.subr.bf16.mxu1 %v12755_v53 }
 0x169   : > { %1093 = vmatprep.mubr.bf16.mxu0 %v11893_v9  ;;  %1659 = vmatprep.mubr.bf16.mxu1 %v11896_v11  ;;  %v11956_v9 = vld [vmem:[%s15493_s3 + $0x210] ss:$8 sps:$4 sm:$0xff]   ;;  %v11957_v11 = vld [vmem:[%s15493_s3 + $0x224] ss:$8 sps:$4 sm:$0xff]  }
 0x16b   : > { %10363 = vmatpush3.bf16.msra.mxu0 %v12701_v34  ;;  %10467 = vmatpush3.bf16.msra.mxu1 %v12701_v34 }
 0x16c   : > { %10500 = vmatprep.subr.bf16.mxu1 %v12711_v57  ;;  %11204 = vmatprep.subr.bf16.mxu0 %v11987_v51 }
 0x16e   : > { %1094 = vmatmul.mubr.bf16.vlgmr.msra.gmra.mrb[48].mxu0 %v11891_v12  ;;  %1660 = vmatmul.mubr.bf16.vlgmr.msra.gmra.mrb[16].mxu1 %v11894_v14  ;;  %v11959_v12 = vld [vmem:[%s15493_s3 + $0x220] ss:$8 sps:$4 sm:$0xff]   ;;  %v11960_v14 = vld [vmem:[%s15493_s3 + $0x234] ss:$8 sps:$4 sm:$0xff]  }
 0x16f   : > { %10501 = vmatpush3.bf16.msra.mxu1 %v12679_v46  ;;  %1101 = vmatprep.mubr.bf16.mxu0 %v11897_v16  ;;  %v11962_v16 = vld [vmem:[%s15493_s3 + $0x230] ss:$8 sps:$4 sm:$0xff]  }
 0x170   : > { %10502 = vmatprep.subr.bf16.mxu1 %v12709_v54  ;;  %1667 = vmatprep.mubr.bf16.mxu1 %v11900_v17  ;;  %v11965_v17 = vld [vmem:[%s15493_s3 + $0x244] ss:$8 sps:$4 sm:$0xff]  }
 0x171   : > { %11205 = vmatpush3.bf16.msra.mxu0 %v11987_v51 }
 0x172   : > { %11206 = vmatprep.subr.bf16.mxu0 %v11988_v56 }
 0x173   : > { %10503 = vmatpush3.bf16.msra.mxu1 %v12677_v43 }
 0x174   : > { %10504 = vmatprep.subr.bf16.mxu1 %v12727_v13 }
 0x175   : > { %11207 = vmatpush3.bf16.msra.mxu0 %v11988_v56 }
 0x176   : > { %1102 = vmatmul.mubr.bf16.gmra.mrb[52].mxu0 %v11899_v19  ;;  %1668 = vmatmul.mubr.bf16.gmra.mrb[20].mxu1 %v11902_v20  ;;  %v11963_v19 = vld [vmem:[%s15493_s3 + $0x240] ss:$8 sps:$4 sm:$0xff]   ;;  %v11966_v20 = vld [vmem:[%s15493_s3 + $0x254] ss:$8 sps:$4 sm:$0xff]  }
 0x177   : > { %10505 = vmatpush3.bf16.msra.mxu1 %v12687_v0  ;;  %1109 = vmatprep.mubr.bf16.mxu0 %v11903_v21  ;;  %v11968_v21 = vld [vmem:[%s15493_s3 + $0x250] ss:$8 sps:$4 sm:$0xff]  }
 0x178   : > { %10506 = vmatprep.subr.bf16.mxu1 %v12723_v10  ;;  %1675 = vmatprep.mubr.bf16.mxu1 %v11906_v22  ;;  %v11969_v22 = vld [vmem:[%s15493_s3 + $0x264] ss:$8 sps:$4 sm:$0xff]  }
 0x179   : > { %11208 = vmatprep.subr.bf16.mxu0 %v11992_v58 }
 0x17a   : > { %11209 = vmatpush3.bf16.msra.mxu0 %v11992_v58 }
 0x17b   : > { %10507 = vmatpush3.bf16.msra.mxu1 %v12685_v61  ;;  %11210 = vmatprep.subr.bf16.mxu0 %v11993_v62 }
 0x17c   : > { %10508 = vmatprep.subr.bf16.mxu1 %v12743_v35 }
 0x17e   : > { %1110 = vmatmul.mubr.bf16.gmra.mrb[56].mxu0 %v11905_v23  ;;  %1676 = vmatmul.mubr.bf16.gmra.mrb[24].mxu1 %v11908_v24  ;;  %v11971_v23 = vld [vmem:[%s15493_s3 + $0x260] ss:$8 sps:$4 sm:$0xff]   ;;  %v11972_v24 = vld [vmem:[%s15493_s3 + $0x274] ss:$8 sps:$4 sm:$0xff]  }
 0x17f   : > { %10509 = vmatpush3.bf16.msra.mxu1 %v12695_v18  ;;  %1117 = vmatprep.mubr.bf16.mxu0 %v11909_v25 }
 0x180   : > { %10510 = vmatprep.subr.bf16.mxu1 %v12739_v31  ;;  %1683 = vmatprep.mubr.bf16.mxu1 %v11912_v26 }
 0x181   : > { %11211 = vmatpush3.bf16.msra.mxu0 %v11993_v62 }
 0x182   : > { %11220 = vmatprep.subr.bf16.mxu0 %v13022_v2 }
 0x183   : > { %10511 = vmatpush3.bf16.msra.mxu1 %v12693_v15 }
 0x184   : > { %10512 = vmatprep.subr.bf16.mxu1 %v12759_v27 }
 0x186   : > { %1118 = vmatmul.mubr.bf16.gmra.mrb[60].mxu0 %v11911_v28  ;;  %1684 = vmatmul.mubr.bf16.gmra.mrb[28].mxu1 %v11914_v29  ;;  %v11974_v28 = vld [vmem:[%s15493_s3 + $0x270] ss:$8 sps:$4 sm:$0xff]  }
 0x187   : > { %10513 = vmatpush3.bf16.msra.mxu1 %v12703_v37  ;;  %1895 = vmatprep.mubr.bf16.mxu1 %v11917_v30 }
 0x188   : > { %10514 = vmatprep.subr.bf16.mxu1 %v12755_v53 }
 0x18b   : > { %10515 = vmatpush3.bf16.msra.mxu1 %v12701_v34 }
 0x18c   : > { %10596 = vmatprep.subr.bf16.mxu1 %v12711_v57 }
 0x18e   : > { %1896 = vmatmul.mubr.bf16.vlgmr.msra.gmra.mrb[32].mxu1 %v11915_v32  ;;  %v11977_v32 = vld [vmem:[%s15493_s3 + $0x2c4] ss:$8 sps:$4 sm:$0xff]  }
 0x18f   : > { %10597 = vmatpush3.bf16.msra.mxu1 %v12679_v46  ;;  %1903 = vmatprep.mubr.bf16.mxu1 %v11918_v33 }
 0x190   : > { %10598 = vmatprep.subr.bf16.mxu1 %v12709_v54 }
 0x193   : > { %10599 = vmatpush3.bf16.msra.mxu1 %v12677_v43 }
 0x194   : > { %10600 = vmatprep.subr.bf16.mxu1 %v12727_v13 }
 0x196   : > { %1904 = vmatmul.mubr.bf16.gmra.mrb[36].mxu1 %v11920_v36 }
 0x197   : > { %10601 = vmatpush3.bf16.msra.mxu1 %v12687_v0  ;;  %1911 = vmatprep.mubr.bf16.mxu1 %v11921_v38 }
 0x198   : > { %10602 = vmatprep.subr.bf16.mxu1 %v12723_v10 }
 0x19b   : > { %10603 = vmatpush3.bf16.msra.mxu1 %v12685_v61 }
 0x19c   : > { %10604 = vmatprep.subr.bf16.mxu1 %v12743_v35 }
 0x19e   : > { %1912 = vmatmul.mubr.bf16.gmra.mrb[40].mxu1 %v11923_v39 }
 0x19f   : > { %10605 = vmatpush3.bf16.msra.mxu1 %v12695_v18  ;;  %1919 = vmatprep.mubr.bf16.mxu1 %v11924_v40 }
 0x1a0   : > { %10606 = vmatprep.subr.bf16.mxu1 %v12739_v31 }
 0x1a3   : > { %10607 = vmatpush3.bf16.msra.mxu1 %v12693_v15 }
 0x1a4   : > { %10608 = vmatprep.subr.bf16.mxu1 %v12759_v27 }
 0x1a6   : > { %1920 = vmatmul.mubr.bf16.gmra.mrb[44].mxu1 %v11926_v41 }
 0x1a7   : > { %10609 = vmatpush3.bf16.msra.mxu1 %v12703_v37  ;;  %2367 = vmatprep.mubr.bf16.mxu1 %v11929_v42 }
 0x1a8   : > { %10610 = vmatprep.subr.bf16.mxu1 %v12755_v53 }
 0x1ab   : > { %10611 = vmatpush3.bf16.msra.mxu1 %v12701_v34 }
 0x1ac   : > { %10644 = vmatprep.subr.bf16.mxu1 %v12711_v57 }
 0x1ae   : > { %2368 = vmatmul.mubr.bf16.vlgmr.msra.gmra.mrb[48].mxu1 %v11927_v44 }
 0x1af   : > { %10645 = vmatpush3.bf16.msra.mxu1 %v12679_v46  ;;  %2375 = vmatprep.mubr.bf16.mxu1 %v11930_v45 }
 0x1b0   : > { %10646 = vmatprep.subr.bf16.mxu1 %v12709_v54 }
 0x1b3   : > { %10647 = vmatpush3.bf16.msra.mxu1 %v12677_v43 }
 0x1b4   : > { %10648 = vmatprep.subr.bf16.mxu1 %v12727_v13 }
 0x1b6   : > { %2376 = vmatmul.mubr.bf16.gmra.mrb[52].mxu1 %v11932_v47 }
 0x1b7   : > { %10649 = vmatpush3.bf16.msra.mxu1 %v12687_v0  ;;  %2383 = vmatprep.mubr.bf16.mxu1 %v11933_v48 }
 0x1b8   : > { %10650 = vmatprep.subr.bf16.mxu1 %v12723_v10 }
 0x1bb   : > { %10651 = vmatpush3.bf16.msra.mxu1 %v12685_v61 }
 0x1bc   : > { %10652 = vmatprep.subr.bf16.mxu1 %v12743_v35 }
 0x1be   : > { %2384 = vmatmul.mubr.bf16.gmra.mrb[56].mxu1 %v11935_v49 }
 0x1bf   : > { %10653 = vmatpush3.bf16.msra.mxu1 %v12695_v18  ;;  %2391 = vmatprep.mubr.bf16.mxu1 %v11936_v50  ;;  %v11975_v50 = vld [vmem:[%s15493_s3 + $0x2c0] ss:$8 sps:$4 sm:$0xff]  }
 0x1c0   : > { %10654 = vmatprep.subr.bf16.mxu1 %v12739_v31 }
 0x1c3   : > { %10655 = vmatpush3.bf16.msra.mxu1 %v12693_v15 }
 0x1c4   : > { %10656 = vmatprep.subr.bf16.mxu1 %v12759_v27 }
 0x1c6   : > { %2392 = vmatmul.mubr.bf16.gmra.mrb[60].mxu1 %v11938_v52 }
 0x1c7   : > { %10657 = vmatpush3.bf16.msra.mxu1 %v12703_v37  ;;  %2603 = vmatprep.mubr.bf16.mxu1 %v11941_v55  ;;  %v11978_v55 = vld [vmem:[%s15493_s3 + $0x2d4] ss:$8 sps:$4 sm:$0xff]  }
 0x1c8   : > { %10658 = vmatprep.subr.bf16.mxu1 %v12755_v53 }
 0x1cb   : > { %10659 = vmatpush3.bf16.msra.mxu1 %v12701_v34 }
 0x1cc   : > { %10692 = vmatprep.subr.bf16.mxu1 %v12711_v57 }
 0x1ce   : > { %2604 = vmatmul.mubr.bf16.vlgmr.msra.gmra.mrb[64].mxu1 %v11939_v59 }
 0x1cf   : > { %10693 = vmatpush3.bf16.msra.mxu1 %v12679_v46  ;;  %2611 = vmatprep.mubr.bf16.mxu1 %v11942_v60 }
 0x1d0   : > { %10694 = vmatprep.subr.bf16.mxu1 %v12709_v54 }
 0x1d3   : > { %10695 = vmatpush3.bf16.msra.mxu1 %v12677_v43 }
 0x1d4   : > { %10696 = vmatprep.subr.bf16.mxu1 %v12727_v13 }
 0x1d6   : > { %2612 = vmatmul.mubr.bf16.gmra.mrb[68].mxu1 %v11944_v63 }
 0x1d7   : > { %10697 = vmatpush3.bf16.msra.mxu1 %v12687_v0  ;;  %2619 = vmatprep.mubr.bf16.mxu1 %v11945_v1 }
 0x1d8   : > { %10698 = vmatprep.subr.bf16.mxu1 %v12723_v10 }
 0x1db   : > { %10699 = vmatpush3.bf16.msra.mxu1 %v12685_v61 }
 0x1dc   : > { %10700 = vmatprep.subr.bf16.mxu1 %v12743_v35 }
 0x1de   : > { %2620 = vmatmul.mubr.bf16.gmra.mrb[72].mxu1 %v11947_v3 }
 0x1df   : > { %10701 = vmatpush3.bf16.msra.mxu1 %v12695_v18  ;;  %2627 = vmatprep.mubr.bf16.mxu1 %v11948_v4 }
 0x1e0   : > { %10702 = vmatprep.subr.bf16.mxu1 %v12739_v31 }
 0x1e3   : > { %10703 = vmatpush3.bf16.msra.mxu1 %v12693_v15 }
 0x1e4   : > { %10704 = vmatprep.subr.bf16.mxu1 %v12759_v27 }
 0x1e6   : > { %2628 = vmatmul.mubr.bf16.gmra.mrb[76].mxu1 %v11950_v5 }
 0x1e7   : > { %10705 = vmatpush3.bf16.msra.mxu1 %v12703_v37  ;;  %2839 = vmatprep.mubr.bf16.mxu1 %v11953_v6 }
 0x1e8   : > { %10706 = vmatprep.subr.bf16.mxu1 %v12755_v53 }
 0x1eb   : > { %10707 = vmatpush3.bf16.msra.mxu1 %v12701_v34 }
 0x1ec   : > { %10740 = vmatprep.subr.bf16.mxu1 %v12711_v57 }
 0x1ee   : > { %2840 = vmatmul.mubr.bf16.vlgmr.msra.gmra.mrb[80].mxu1 %v11951_v7 }
 0x1ef   : > { %10741 = vmatpush3.bf16.msra.mxu1 %v12679_v46  ;;  %2847 = vmatprep.mubr.bf16.mxu1 %v11954_v8  ;;  %v11980_v8 = vld [vmem:[%s15493_s3 + $0x2d0] ss:$8 sps:$4 sm:$0xff]  }
 0x1f0   : > { %10742 = vmatprep.subr.bf16.mxu1 %v12709_v54 }
 0x1f3   : > { %10743 = vmatpush3.bf16.msra.mxu1 %v12677_v43 }
 0x1f4   : > { %10744 = vmatprep.subr.bf16.mxu1 %v12727_v13 }
 0x1f6   : > { %2848 = vmatmul.mubr.bf16.gmra.mrb[84].mxu1 %v11956_v9 }
 0x1f7   : > { %10745 = vmatpush3.bf16.msra.mxu1 %v12687_v0  ;;  %2855 = vmatprep.mubr.bf16.mxu1 %v11957_v11 }
 0x1f8   : > { %10746 = vmatprep.subr.bf16.mxu1 %v12723_v10 }
 0x1fb   : > { %10747 = vmatpush3.bf16.msra.mxu1 %v12685_v61 }
 0x1fc   : > { %10748 = vmatprep.subr.bf16.mxu1 %v12743_v35 }
 0x1fe   : > { %2856 = vmatmul.mubr.bf16.gmra.mrb[88].mxu1 %v11959_v12  ;;  %v11981_v12 = vld [vmem:[%s15493_s3 + $0x2e4] ss:$8 sps:$4 sm:$0xff]  }
 0x1ff   : > { %10749 = vmatpush3.bf16.msra.mxu1 %v12695_v18  ;;  %2863 = vmatprep.mubr.bf16.mxu1 %v11960_v14 }
 0x200   : > { %10750 = vmatprep.subr.bf16.mxu1 %v12739_v31 }
 0x203   : > { %10751 = vmatpush3.bf16.msra.mxu1 %v12693_v15 }
 0x204   : > { %10752 = vmatprep.subr.bf16.mxu1 %v12759_v27 }
 0x206   : > { %2864 = vmatmul.mubr.bf16.gmra.mrb[92].mxu1 %v11962_v16 }
 0x207   : > { %10753 = vmatpush3.bf16.msra.mxu1 %v12703_v37  ;;  %3075 = vmatprep.mubr.bf16.mxu1 %v11965_v17 }
 0x208   : > { %10754 = vmatprep.subr.bf16.mxu1 %v12755_v53 }
 0x20b   : > { %10755 = vmatpush3.bf16.msra.mxu1 %v12701_v34 }
 0x20c   : > { %10836 = vmatprep.subr.bf16.mxu1 %v12711_v57 }
 0x20e   : > { %3076 = vmatmul.mubr.bf16.vlgmr.msra.gmra.mrb[96].mxu1 %v11963_v19 }
 0x20f   : > { %10837 = vmatpush3.bf16.msra.mxu1 %v12679_v46  ;;  %3083 = vmatprep.mubr.bf16.mxu1 %v11966_v20 }
 0x210   : > { %10838 = vmatprep.subr.bf16.mxu1 %v12709_v54 }
 0x213   : > { %10839 = vmatpush3.bf16.msra.mxu1 %v12677_v43 }
 0x214   : > { %10840 = vmatprep.subr.bf16.mxu1 %v12727_v13 }
 0x216   : > { %3084 = vmatmul.mubr.bf16.gmra.mrb[100].mxu1 %v11968_v21 }
 0x217   : > { %10841 = vmatpush3.bf16.msra.mxu1 %v12687_v0  ;;  %3091 = vmatprep.mubr.bf16.mxu1 %v11969_v22 }
 0x218   : > { %10842 = vmatprep.subr.bf16.mxu1 %v12723_v10 }
 0x21b   : > { %10843 = vmatpush3.bf16.msra.mxu1 %v12685_v61 }
 0x21c   : > { %10844 = vmatprep.subr.bf16.mxu1 %v12743_v35 }
 0x21e   : > { %3092 = vmatmul.mubr.bf16.gmra.mrb[104].mxu1 %v11971_v23 }
 0x21f   : > { %10845 = vmatpush3.bf16.msra.mxu1 %v12695_v18  ;;  %3099 = vmatprep.mubr.bf16.mxu1 %v11972_v24 }
 0x220   : > { %10846 = vmatprep.subr.bf16.mxu1 %v12739_v31 }
 0x221   : > { %v10324_v25 = vpop.f32.mrb[32].mxu0  ;;  %v10420_v26 = vpop.f32.mrb[0].mxu1 }
 0x222   : > { %v10325_v29 = vpop.f32.mrb[33].mxu0  ;;  %v10421_v30 = vpop.f32.mrb[1].mxu1 }
 0x223   : > { %10847 = vmatpush3.bf16.msra.mxu1 %v12693_v15  ;;  %v13124_v33 = vadd.f32 %v10325_v29, %v10324_v25  ;;  %v10327_v36 = vpop.f32.mrb[34].mxu0  ;;  %v13126_v38 = vadd.f32 %v10421_v30, %v10420_v26  ;;  %v10423_v39 = vpop.f32.mrb[2].mxu1  ;;  %v11983_v29 = vld [vmem:[%s15493_s3 + $0x2e0] ss:$8 sps:$4 sm:$0xff]  }
 0x224   : > { %10848 = vmatprep.subr.bf16.mxu1 %v12759_v27  ;;  %v10328_v40 = vpop.f32.mrb[35].mxu0  ;;  %v10424_v41 = vpop.f32.mrb[3].mxu1 }
 0x225   : > { %v13129_v42 = vadd.f32 %v10328_v40, %v10327_v36  ;;  %v13131_v44 = vadd.f32 %v10424_v41, %v10423_v39  ;;  %v11984_v36 = vld [vmem:[%s15493_s3 + $0x2f4] ss:$8 sps:$4 sm:$0xff]  }
 0x226   : > { %3100 = vmatmul.mubr.bf16.gmra.mrb[108].mxu1 %v11974_v28 }
 0x227   : > { %10849 = vmatpush3.bf16.msra.mxu1 %v12703_v37  ;;  %3547 = vmatprep.mubr.bf16.mxu1 %v11977_v32  ;;  %v1000_v45 = vpack.c.bf16 %v13129_v42, %v13124_v33  ;;  %v1456_v47 = vpack.c.bf16 %v13131_v44, %v13126_v38  ;;  %v12008_v42 = vld [vmem:[%s15494_s4 + $0x48] sm:$0xff]  }
 0x228   : > { %10850 = vmatprep.subr.bf16.mxu1 %v12755_v53  ;;  %v12015_v38 = vld [vmem:[%s15494_s4 + $0x68] sm:$0xff]  }
 0x229   : > { %v10330_v48 = vpop.f32.mrb[36].mxu0  ;;  %v10426_v49 = vpop.f32.mrb[4].mxu1 }
 0x22a   : > { %v10331_v51 = vpop.f32.mrb[37].mxu0  ;;  %v10427_v52 = vpop.f32.mrb[5].mxu1 }
 0x22b   : > { %10851 = vmatpush3.bf16.msra.mxu1 %v12701_v34  ;;  %v13146_v56 = vadd.f32 %v10331_v51, %v10330_v48  ;;  %v10333_v58 = vpop.f32.mrb[38].mxu0  ;;  %v13148_v59 = vadd.f32 %v10427_v52, %v10426_v49  ;;  %v10429_v60 = vpop.f32.mrb[6].mxu1 }
 0x22c   : > { %10884 = vmatprep.subr.bf16.mxu1 %v12711_v57  ;;  %v10334_v62 = vpop.f32.mrb[39].mxu0  ;;  %v10430_v63 = vpop.f32.mrb[7].mxu1 }
 0x22d   : > { %v13151_v1 = vadd.f32 %v10334_v62, %v10333_v58  ;;  %v13153_v3 = vadd.f32 %v10430_v63, %v10429_v60  ;;  %v11986_v63 = vld [vmem:[%s15493_s3 + $0x2f0] ss:$8 sps:$4 sm:$0xff]  }
 0x22e   : > { %3548 = vmatmul.mubr.bf16.vlgmr.msra.gmra.mrb[112].mxu1 %v11975_v50 }
 0x22f   : > { %10885 = vmatpush3.bf16.msra.mxu1 %v12679_v46  ;;  %3555 = vmatprep.mubr.bf16.mxu1 %v11978_v55  ;;  %v1001_v4 = vpack.c.bf16 %v13151_v1, %v13146_v56  ;;  %v1457_v5 = vpack.c.bf16 %v13153_v3, %v13148_v59  ;;  %v12012_v56 = vld [vmem:[%s15494_s4 + $0x50] sm:$0xff]  }
 0x230   : > { %10886 = vmatprep.subr.bf16.mxu1 %v12709_v54 }
 0x231   : > { %v10336_v6 = vpop.f32.mrb[40].mxu0  ;;  %v10432_v7 = vpop.f32.mrb[8].mxu1 }
 0x232   : > { %v10337_v9 = vpop.f32.mrb[41].mxu0  ;;  %v10433_v11 = vpop.f32.mrb[9].mxu1 }
 0x233   : > { %10887 = vmatpush3.bf16.msra.mxu1 %v12677_v43  ;;  %v13168_v14 = vadd.f32 %v10337_v9, %v10336_v6  ;;  %v10339_v16 = vpop.f32.mrb[42].mxu0  ;;  %v13170_v17 = vadd.f32 %v10433_v11, %v10432_v7  ;;  %v10435_v19 = vpop.f32.mrb[10].mxu1  ;;  %v11991_v9 = vld [vmem:[%s15493_s3 + $0x304] ss:$8 sps:$4 sm:$0xff]  }
 0x234   : > { %10888 = vmatprep.subr.bf16.mxu1 %v12727_v13  ;;  %v10340_v20 = vpop.f32.mrb[43].mxu0  ;;  %v10436_v21 = vpop.f32.mrb[11].mxu1 }
 0x235   : > { %v13173_v22 = vadd.f32 %v10340_v20, %v10339_v16  ;;  %v13175_v23 = vadd.f32 %v10436_v21, %v10435_v19 }
 0x236   : > { %3556 = vmatmul.mubr.bf16.gmra.mrb[116].mxu1 %v11980_v8 }
 0x237   : > { %10889 = vmatpush3.bf16.msra.mxu1 %v12687_v0  ;;  %3563 = vmatprep.mubr.bf16.mxu1 %v11981_v12  ;;  %v1002_v24 = vpack.c.bf16 %v13173_v22, %v13168_v14  ;;  %v1458_v25 = vpack.c.bf16 %v13175_v23, %v13170_v17 }
 0x238   : > { %10890 = vmatprep.subr.bf16.mxu1 %v12723_v10 }
 0x239   : > { %v10342_v26 = vpop.f32.mrb[44].mxu0  ;;  %v10438_v28 = vpop.f32.mrb[12].mxu1 }
 0x23a   : > { %v10343_v30 = vpop.f32.mrb[45].mxu0  ;;  %v10439_v32 = vpop.f32.mrb[13].mxu1 }
 0x23b   : > { %10891 = vmatpush3.bf16.msra.mxu1 %v12685_v61  ;;  %v13190_v39 = vadd.f32 %v10343_v30, %v10342_v26  ;;  %v10345_v40 = vpop.f32.mrb[46].mxu0  ;;  %v13192_v41 = vadd.f32 %v10439_v32, %v10438_v28  ;;  %v10441_v48 = vpop.f32.mrb[14].mxu1 }
 0x23c   : > { %10892 = vmatprep.subr.bf16.mxu1 %v12743_v35  ;;  %v10346_v49 = vpop.f32.mrb[47].mxu0  ;;  %v10442_v50 = vpop.f32.mrb[15].mxu1 }
 0x23d   : > { %v13195_v51 = vadd.f32 %v10346_v49, %v10345_v40  ;;  %v13197_v52 = vadd.f32 %v10442_v50, %v10441_v48 }
 0x23e   : > { %3564 = vmatmul.mubr.bf16.gmra.mrb[120].mxu1 %v11983_v29 }
 0x23f   : > { %10893 = vmatpush3.bf16.msra.mxu1 %v12695_v18  ;;  %3571 = vmatprep.mubr.bf16.mxu1 %v11984_v36  ;;  %v1003_v55 = vpack.c.bf16 %v13195_v51, %v13190_v39  ;;  %v1459_v58 = vpack.c.bf16 %v13197_v52, %v13192_v41  ;;  %v11989_v36 = vld [vmem:[%s15493_s3 + $0x300] ss:$8 sps:$4 sm:$0xff]  }
 0x240   : > { %10894 = vmatprep.subr.bf16.mxu1 %v12739_v31 }
 0x241   : > { %v10364_v60 = vpop.f32.mrb[48].mxu0  ;;  %v10468_v62 = vpop.f32.mrb[16].mxu1 }
 0x242   : > { %v10365_v6 = vpop.f32.mrb[49].mxu0  ;;  %v10469_v7 = vpop.f32.mrb[17].mxu1 }
 0x243   : > { %10895 = vmatpush3.bf16.msra.mxu1 %v12693_v15  ;;  %v10366_v8 = vadd.f32 %v10365_v6, %v10364_v60  ;;  %v10367_v11 = vpop.f32.mrb[50].mxu0  ;;  %v13212_v12 = vadd.f32 %v10469_v7, %v10468_v62  ;;  %v10471_v16 = vpop.f32.mrb[18].mxu1  ;;  %v11994_v60 = vld [vmem:[%s15493_s3 + $0x314] ss:$8 sps:$4 sm:$0xff]  }
 0x244   : > { %10896 = vmatprep.subr.bf16.mxu1 %v12759_v27  ;;  %v10368_v19 = vpop.f32.mrb[51].mxu0  ;;  %v10472_v20 = vpop.f32.mrb[19].mxu1 }
 0x245   : > { %v10369_v21 = vadd.f32 %v10368_v19, %v10367_v11  ;;  %v13215_v26 = vadd.f32 %v10472_v20, %v10471_v16  ;;  %v11998_v16 = vld [vmem:[%s15494_s4 + $0x8] sm:$0xff]  }
 0x246   : > { %3572 = vmatmul.mubr.bf16.gmra.mrb[124].mxu1 %v11986_v63 }
 0x247   : > { %10897 = vmatpush3.bf16.msra.mxu1 %v12703_v37  ;;  %3783 = vmatprep.mubr.bf16.mxu1 %v11991_v9  ;;  %v1126_v28 = vpack.c.bf16 %v10369_v21, %v10366_v8  ;;  %v1692_v29 = vpack.c.bf16 %v13215_v26, %v13212_v12  ;;  %v12019_v12 = vld [vmem:[%s15494_s4 + $0x88] sm:$0xff]  }
 0x248   : > { %10898 = vmatprep.subr.bf16.mxu1 %v12755_v53 }
 0x249   : > { %v10370_v30 = vpop.f32.mrb[52].mxu0  ;;  %11212 = vmatprep.mubr.msk.bf16.mxu0 %vm1163_vm0, %v1126_v28  ;;  %v10474_v32 = vpop.f32.mrb[20].mxu1 }
 0x24a   : > { %v10371_v40 = vpop.f32.mrb[53].mxu0  ;;  %v10475_v48 = vpop.f32.mrb[21].mxu1 }
 0x24b   : > { %10899 = vmatpush3.bf16.msra.mxu1 %v12701_v34  ;;  %v10372_v49 = vadd.f32 %v10371_v40, %v10370_v30  ;;  %v10373_v50 = vpop.f32.mrb[54].mxu0  ;;  %v13229_v62 = vadd.f32 %v10475_v48, %v10474_v32  ;;  %v10477_v63 = vpop.f32.mrb[22].mxu1  ;;  %v11996_v30 = vld [vmem:[%s15493_s3 + $0x310] ss:$8 sps:$4 sm:$0xff]   ;;  %v11999_v48 = vld [vmem:[%s15493_s3 + $0x324] ss:$8 sps:$4 sm:$0xff]  }
 0x24c   : > { %10932 = vmatprep.subr.bf16.mxu1 %v12711_v57  ;;  %v10374_v6 = vpop.f32.mrb[55].mxu0  ;;  %v10478_v7 = vpop.f32.mrb[23].mxu1 }
 0x24d   : > { %v10375_v8 = vadd.f32 %v10374_v6, %v10373_v50  ;;  %v13232_v9 = vadd.f32 %v10478_v7, %v10477_v63 }
 0x24e   : > { %3784 = vmatmul.mubr.bf16.vlgmr.msra.gmra.mrb[128].mxu1 %v11989_v36 }
 0x24f   : > { %10933 = vmatpush3.bf16.msra.mxu1 %v12679_v46  ;;  %v1127_v11 = vpack.c.bf16 %v10375_v8, %v10372_v49  ;;  %3791 = vmatprep.mubr.bf16.mxu1 %v11994_v60  ;;  %v1693_v19 = vpack.c.bf16 %v13232_v9, %v13229_v62 }
 0x250   : > { %10934 = vmatprep.subr.bf16.mxu1 %v12709_v54 }
 0x251   : > { %v10376_v20 = vpop.f32.mrb[56].mxu0  ;;  %11213 = vmatmul.mubr.msk.bf16.vlgmr.msra.gmra.mrb[64].mxu0 %vm1163_vm0, %v1127_v11  ;;  %v10480_v21 = vpop.f32.mrb[24].mxu1  ;;  %v12003_v11 = vld [vmem:[%s15494_s4 + $0x18] sm:$0xff]  }
 0x252   : > { %v10377_v28 = vpop.f32.mrb[57].mxu0  ;;  %11221 = vmatpush3.bf16.msra.mxu0 %v13022_v2  ;;  %v10481_v32 = vpop.f32.mrb[25].mxu1  ;;  %v12002_v2 = vld [vmem:[%s15494_s4 + $0x10] sm:$0xff]  }
 0x253   : > { %10935 = vmatpush3.bf16.msra.mxu1 %v12677_v43  ;;  %v10378_v36 = vadd.f32 %v10377_v28, %v10376_v20  ;;  %v10379_v40 = vpop.f32.mrb[58].mxu0  ;;  %11222 = vmatprep.subr.bf16.mxu0 %v11998_v16  ;;  %v13250_v49 = vadd.f32 %v10481_v32, %v10480_v21  ;;  %v10483_v50 = vpop.f32.mrb[26].mxu1 }
 0x254   : > { %10936 = vmatprep.subr.bf16.mxu1 %v12727_v13  ;;  %v10380_v60 = vpop.f32.mrb[59].mxu0  ;;  %v10484_v63 = vpop.f32.mrb[27].mxu1 }
 0x255   : > { %v10381_v6 = vadd.f32 %v10380_v60, %v10379_v40  ;;  %v13256_v7 = vadd.f32 %v10484_v63, %v10483_v50 }
 0x256   : > { %3792 = vmatmul.mubr.bf16.gmra.mrb[132].mxu1 %v11996_v30  ;;  %11223 = vmatpush3.bf16.msra.mxu0 %v11998_v16  ;;  %v12001_v16 = vld [vmem:[%s15493_s3 + $0x320] ss:$8 sps:$4 sm:$0xff]  }
 0x257   : > { %10937 = vmatpush3.bf16.msra.mxu1 %v12687_v0  ;;  %v1128_v8 = vpack.c.bf16 %v10381_v6, %v10378_v36  ;;  %3799 = vmatprep.mubr.bf16.mxu1 %v11999_v48  ;;  %v1694_v20 = vpack.c.bf16 %v13256_v7, %v13250_v49  ;;  %v12004_v48 = vld [vmem:[%s15493_s3 + $0x334] ss:$8 sps:$4 sm:$0xff]  }
 0x258   : > { %10938 = vmatprep.subr.bf16.mxu1 %v12723_v10  ;;  %11224 = vmatprep.subr.bf16.mxu0 %v12002_v2  ;;  %v12021_v49 = vld [vmem:[%s15494_s4 + $0x98] sm:$0xff]  }
 0x259   : > { %v10382_v21 = vpop.f32.mrb[60].mxu0  ;;  %11216 = vmatprep.mubr.msk.bf16.mxu0 %vm1163_vm0, %v1128_v8  ;;  %v10486_v28 = vpop.f32.mrb[28].mxu1 }
 0x25a   : > { %v10383_v30 = vpop.f32.mrb[61].mxu0  ;;  %11225 = vmatpush3.bf16.msra.mxu0 %v12002_v2  ;;  %v10487_v32 = vpop.f32.mrb[29].mxu1  ;;  %v12007_v2 = vld [vmem:[%s15494_s4 + $0x40] sm:$0xff]  }
 0x25b   : > { %v10384_v36 = vadd.f32 %v10383_v30, %v10382_v21  ;;  %v10385_v40 = vpop.f32.mrb[62].mxu0  ;;  %10939 = vmatpush3.bf16.msra.mxu1 %v12685_v61  ;;  %11226 = vmatprep.subr.bf16.mxu0 %v12003_v11  ;;  %v13273_v50 = vadd.f32 %v10487_v32, %v10486_v28  ;;  %v10489_v60 = vpop.f32.mrb[30].mxu1 }
 0x25c   : > { %v10386_v63 = vpop.f32.mrb[63].mxu0  ;;  %10940 = vmatprep.subr.bf16.mxu1 %v12743_v35  ;;  %v10490_v6 = vpop.f32.mrb[31].mxu1 }
 0x25d   : > { %v10387_v8 = vadd.f32 %v10386_v63, %v10385_v40  ;;  %v13279_v21 = vadd.f32 %v10490_v6, %v10489_v60  ;;  %v12009_v6 = vld [vmem:[%s15493_s3 + $0x340] ss:$8 sps:$4 sm:$0xff]  }
 0x25e   : > { %3800 = vmatmul.mubr.bf16.gmra.mrb[136].mxu1 %v12001_v16  ;;  %11227 = vmatpush3.bf16.msra.mxu0 %v12003_v11  ;;  %v12006_v11 = vld [vmem:[%s15493_s3 + $0x330] ss:$8 sps:$4 sm:$0xff]  }
 0x25f   : > { %v1129_v30 = vpack.c.bf16 %v10387_v8, %v10384_v36  ;;  %10941 = vmatpush3.bf16.msra.mxu1 %v12695_v18  ;;  %3807 = vmatprep.mubr.bf16.mxu1 %v12004_v48  ;;  %v1695_v28 = vpack.c.bf16 %v13279_v21, %v13273_v50  ;;  %v12011_v36 = vld [vmem:[%s15493_s3 + $0x344] ss:$8 sps:$4 sm:$0xff]   ;;  %v12022_v21 = vld [vmem:[%s15493_s3 + $0x140] ss:$8 sps:$4 sm:$0xff]  }
 0x260   : > { %10942 = vmatprep.subr.bf16.mxu1 %v12739_v31  ;;  %11236 = vmatprep.subr.bf16.mxu0 %v12007_v2  ;;  %v12034_v50 = vld [vmem:[%s15494_s4 + $0xa0] sm:$0xff]  }
 0x261   : > { %11217 = vmatmul.mubr.msk.bf16.gmra.mrb[68].mxu0 %vm1163_vm0, %v1129_v30  ;;  %v10516_v32 = vpop.f32.mrb[32].mxu1 }
 0x262   : > { %11228 = vmatprep.mubr.msk.bf16.mxu0 %vm1163_vm0, %v1000_v45  ;;  %v10517_v16 = vpop.f32.mrb[33].mxu1 }
 0x263   : > { %10943 = vmatpush3.bf16.msra.mxu1 %v12693_v15  ;;  %v13297_v40 = vadd.f32 %v10517_v16, %v10516_v32  ;;  %v10519_v48 = vpop.f32.mrb[34].mxu1 }
 0x264   : > { %10944 = vmatprep.subr.bf16.mxu1 %v12759_v27  ;;  %v10520_v60 = vpop.f32.mrb[35].mxu1 }
 0x265   : > { %v13300_v33 = vadd.f32 %v10520_v60, %v10519_v48  ;;  %v12016_v48 = vld [vmem:[%s15494_s4 + $0x70] sm:$0xff]  }
 0x266   : > { %3808 = vmatmul.mubr.bf16.gmra.mrb[140].mxu1 %v12006_v11  ;;  %v12014_v11 = vld [vmem:[%s15494_s4 + $0x60] sm:$0xff]  }
 0x267   : > { %10945 = vmatpush3.bf16.msra.mxu1 %v12703_v37  ;;  %4019 = vmatprep.mubr.bf16.mxu1 %v12011_v36  ;;  %v1928_v45 = vpack.c.bf16 %v13300_v33, %v13297_v40  ;;  %v12035_v40 = vld [vmem:[%s15494_s4 + $0xa8] sm:$0xff]   ;;  %v12027_v33 = vld [vmem:[%s15493_s3 + $0x150] ss:$8 sps:$4 sm:$0xff]  }
 0x268   : > { %10946 = vmatprep.subr.bf16.mxu1 %v12755_v53 }
 0x269   : > { %11229 = vmatmul.mubr.msk.bf16.vlgmr.msra.gmra.mrb[64].mxu0 %vm1163_vm0, %v1001_v4  ;;  %v10522_v63 = vpop.f32.mrb[36].mxu1 }
 0x26a   : > { %11237 = vmatpush3.bf16.msra.mxu0 %v12007_v2  ;;  %11232 = vmatprep.mubr.msk.bf16.mxu0 %vm1163_vm0, %v1002_v24  ;;  %v10523_v8 = vpop.f32.mrb[37].mxu1  ;;  %v12013_v24 = vld [vmem:[%s15494_s4 + $0x58] sm:$0xff]  }
 0x26b   : > { %10947 = vmatpush3.bf16.msra.mxu1 %v12701_v34  ;;  %11238 = vmatprep.subr.bf16.mxu0 %v12008_v42  ;;  %v13324_v1 = vadd.f32 %v10523_v8, %v10522_v63  ;;  %v10525_v4 = vpop.f32.mrb[38].mxu1  ;;  %v12018_v63 = vld [vmem:[%s15494_s4 + $0x80] sm:$0xff]  }
 0x26c   : > { %10980 = vmatprep.subr.bf16.mxu1 %v12711_v57  ;;  %v10526_v14 = vpop.f32.mrb[39].mxu1 }
 0x26d   : > { %v13327_v22 = vadd.f32 %v10526_v14, %v10525_v4  ;;  %v12031_v14 = vld [vmem:[%s15493_s3 + $0x174] ss:$8 sps:$4 sm:$0xff]  }
 0x26e   : > { %11239 = vmatpush3.bf16.msra.mxu0 %v12008_v42  ;;  %4020 = vmatmul.mubr.bf16.vlgmr.msra.gmra.mrb[144].mxu1 %v12009_v6 }
 0x26f   : > { %10981 = vmatpush3.bf16.msra.mxu1 %v12679_v46  ;;  %11240 = vmatprep.subr.bf16.mxu0 %v12012_v56  ;;  %v1929_v2 = vpack.c.bf16 %v13327_v22, %v13324_v1  ;;  %v12030_v1 = vld [vmem:[%s15493_s3 + $0x160] ss:$8 sps:$4 sm:$0xff]   ;;  %v12033_v22 = vld [vmem:[%s15493_s3 + $0x170] ss:$8 sps:$4 sm:$0xff]  }
 0x270   : > { %10982 = vmatprep.subr.bf16.mxu1 %v12709_v54 }
 0x271   : > { %11233 = vmatmul.mubr.msk.bf16.gmra.mrb[68].mxu0 %vm1163_vm0, %v1003_v55  ;;  %v10528_v30 = vpop.f32.mrb[40].mxu1 }
 0x272   : > { %11241 = vmatpush3.bf16.msra.mxu0 %v12012_v56  ;;  %11244 = vmatprep.mubr.msk.bf16.mxu0 %vm1163_vm0, %v1456_v47  ;;  %v10529_v32 = vpop.f32.mrb[41].mxu1  ;;  %v12020_v56 = vld [vmem:[%s15494_s4 + $0x90] sm:$0xff]  }
 0x273   : > { %10983 = vmatpush3.bf16.msra.mxu1 %v12677_v43  ;;  %11242 = vmatprep.subr.bf16.mxu0 %v12013_v24  ;;  %v13348_v16 = vadd.f32 %v10529_v32, %v10528_v30  ;;  %v10531_v39 = vpop.f32.mrb[42].mxu1 }
 0x274   : > { %10984 = vmatprep.subr.bf16.mxu1 %v12727_v13  ;;  %v10532_v51 = vpop.f32.mrb[43].mxu1 }
 0x275   : > { %v13351_v55 = vadd.f32 %v10532_v51, %v10531_v39 }
 0x276   : > { %11243 = vmatpush3.bf16.msra.mxu0 %v12013_v24 }
 0x277   : > { %10985 = vmatpush3.bf16.msra.mxu1 %v12687_v0  ;;  %11252 = vmatprep.subr.bf16.mxu0 %v12014_v11  ;;  %v1930_v44 = vpack.c.bf16 %v13351_v55, %v13348_v16 }
 0x278   : > { %10986 = vmatprep.subr.bf16.mxu1 %v12723_v10 }
 0x279   : > { %11245 = vmatmul.mubr.msk.bf16.vlgmr.msra.gmra.mrb[64].mxu0 %vm1163_vm0, %v1457_v5  ;;  %v10534_v47 = vpop.f32.mrb[44].mxu1  ;;  %v12017_v5 = vld [vmem:[%s15494_s4 + $0x78] sm:$0xff]  }
 0x27a   : > { %11253 = vmatpush3.bf16.msra.mxu0 %v12014_v11  ;;  %11248 = vmatprep.mubr.msk.bf16.mxu0 %vm1163_vm0, %v1458_v25  ;;  %v10535_v36 = vpop.f32.mrb[45].mxu1 }
 0x27b   : > { %10987 = vmatpush3.bf16.msra.mxu1 %v12685_v61  ;;  %11254 = vmatprep.subr.bf16.mxu0 %v12015_v38  ;;  %v10536_v60 = vadd.f32 %v10535_v36, %v10534_v47  ;;  %v10537_v42 = vpop.f32.mrb[46].mxu1 }
 0x27c   : > { %10988 = vmatprep.subr.bf16.mxu1 %v12743_v35  ;;  %v10538_v59 = vpop.f32.mrb[47].mxu1 }
 0x27d   : > { %v10539_v3 = vadd.f32 %v10538_v59, %v10537_v42  ;;  %v12036_v42 = vld [vmem:[%s15494_s4 + $0xb0] sm:$0xff]  }
 0x27e   : > { %11255 = vmatpush3.bf16.msra.mxu0 %v12015_v38 }
 0x27f   : > { %10989 = vmatpush3.bf16.msra.mxu1 %v12695_v18  ;;  %11256 = vmatprep.subr.bf16.mxu0 %v12016_v48  ;;  %v1931_v17 = vpack.c.bf16 %v10539_v3, %v10536_v60 }
 0x280   : > { %10990 = vmatprep.subr.bf16.mxu1 %v12739_v31 }
 0x281   : > { %11249 = vmatmul.mubr.msk.bf16.gmra.mrb[68].mxu0 %vm1163_vm0, %v1459_v58  ;;  %v10612_v23 = vpop.f32.mrb[48].mxu1 }
 0x282   : > { %11257 = vmatpush3.bf16.msra.mxu0 %v12016_v48  ;;  %11260 = vmatprep.mubr.msk.bf16.mxu0 %vm1163_vm0, %v1692_v29  ;;  %v10613_v25 = vpop.f32.mrb[49].mxu1 }
 0x283   : > { %10991 = vmatpush3.bf16.msra.mxu1 %v12693_v15  ;;  %11258 = vmatprep.subr.bf16.mxu0 %v12017_v5  ;;  %v13390_v6 = vadd.f32 %v10613_v25, %v10612_v23  ;;  %v10615_v41 = vpop.f32.mrb[50].mxu1  ;;  %v12037_v25 = vld [vmem:[%s15494_s4 + $0xb8] sm:$0xff]  }
 0x284   : > { %10992 = vmatprep.subr.bf16.mxu1 %v12759_v27  ;;  %v10616_v52 = vpop.f32.mrb[51].mxu1 }
 0x285   : > { %v13393_v58 = vadd.f32 %v10616_v52, %v10615_v41 }
 0x286   : > { %11259 = vmatpush3.bf16.msra.mxu0 %v12017_v5 }
 0x287   : > { %10993 = vmatpush3.bf16.msra.mxu1 %v12703_v37  ;;  %11268 = vmatprep.subr.bf16.mxu0 %v12018_v63 }
 0x288   : > { %10994 = vmatprep.subr.bf16.mxu1 %v12755_v53 }
 0x289   : > { %11261 = vmatmul.mubr.msk.bf16.vlgmr.msra.gmra.mrb[64].mxu0 %vm1163_vm0, %v1693_v19  ;;  %v10618_v29 = vpop.f32.mrb[52].mxu1 }
 0x28a   : > { %11269 = vmatpush3.bf16.msra.mxu0 %v12018_v63  ;;  %11264 = vmatprep.mubr.msk.bf16.mxu0 %vm1163_vm0, %v1694_v20  ;;  %v10619_v8 = vpop.f32.mrb[53].mxu1  ;;  %v12024_v20 = vld [vmem:[%s15493_s3 + $0x144] ss:$8 sps:$4 sm:$0xff]  }
 0x28b   : > { %10995 = vmatpush3.bf16.msra.mxu1 %v12701_v34  ;;  %11270 = vmatprep.subr.bf16.mxu0 %v12019_v12  ;;  %v13414_v4 = vadd.f32 %v10619_v8, %v10618_v29  ;;  %v10621_v62 = vpop.f32.mrb[54].mxu1 }
 0x28c   : > { %v10622_v9 = vpop.f32.mrb[55].mxu1 }
 0x28d   : > { %v13416_v19 = vadd.f32 %v10622_v9, %v10621_v62  ;;  %v13519_v9 = vld [vmem:[%s15494_s4 + $0xc0] sm:$0xff]  }
 0x28e   : > { %11271 = vmatpush3.bf16.msra.mxu0 %v12019_v12 }
 0x28f   : > { %11272 = vmatprep.subr.bf16.mxu0 %v12020_v56 }
 0x291   : > { %11265 = vmatmul.mubr.msk.bf16.gmra.mrb[68].mxu0 %vm1163_vm0, %v1695_v28  ;;  %v12025_v28 = vld [vmem:[%s15493_s3 + $0x154] ss:$8 sps:$4 sm:$0xff]   ;;  %v10624_v24 = vpop.f32.mrb[56].mxu1 }
 0x292   : > { %11273 = vmatpush3.bf16.msra.mxu0 %v12020_v56  ;;  %11276 = vmatprep.mubr.msk.bf16.mxu0 %vm1163_vm0, %v1928_v45  ;;  %v12028_v45 = vld [vmem:[%s15493_s3 + $0x164] ss:$8 sps:$4 sm:$0xff]  }
 0x293   : > { %11274 = vmatprep.subr.bf16.mxu0 %v12021_v49 }
 0x296   : > { %11275 = vmatpush3.bf16.msra.mxu0 %v12021_v49 }
 0x297   : > { %10548 = vmatprep.subr.bf16.mxu0 %v12711_v57 }
 0x299   : > { %11277 = vmatmul.mubr.msk.bf16.vlgmr.msra.gmra.mrb[64].mxu0 %vm1163_vm0, %v1929_v2  ;;  %v10625_v2 = vpop.f32.mrb[57].mxu1 }
 0x29a   : > { %10549 = vmatpush3.bf16.msra.mxu0 %v12679_v46  ;;  %11280 = vmatprep.mubr.msk.bf16.mxu0 %vm1163_vm0, %v1930_v44  ;;  %v10627_v30 = vpop.f32.mrb[58].mxu1  ;;  %v13486_v11 = vadd.f32 %v10625_v2, %v10624_v24 }
 0x29b   : > { %10550 = vmatprep.subr.bf16.mxu0 %v12709_v54  ;;  %v10628_v32 = vpop.f32.mrb[59].mxu1 }
 0x29c   : > { %v13488_v16 = vadd.f32 %v10628_v32, %v10627_v30  ;;  %v10630_v51 = vpop.f32.mrb[60].mxu1 }
 0x29d   : > { %v10631_v55 = vpop.f32.mrb[61].mxu1 }
 0x29e   : > { %10551 = vmatpush3.bf16.msra.mxu0 %v12677_v43  ;;  %v10633_v38 = vpop.f32.mrb[62].mxu1  ;;  %v13492_v47 = vadd.f32 %v10631_v55, %v10630_v51 }
 0x29f   : > { %10552 = vmatprep.subr.bf16.mxu0 %v12727_v13  ;;  %v10634_v44 = vpop.f32.mrb[63].mxu1 }
 0x2a0   : > { %v13494_v36 = vadd.f32 %v10634_v44, %v10633_v38 }
 0x2a1   : > { %11281 = vmatmul.mubr.msk.bf16.gmra.mrb[68].mxu0 %vm1163_vm0, %v1931_v17  ;;  %v10660_v60 = vpop.f32.mrb[64].mxu1 }
 0x2a2   : > { %10553 = vmatpush3.bf16.msra.mxu0 %v12687_v0  ;;  %2131 = vmatprep.mubr.bf16.mxu0 %v12024_v20  ;;  %v10661_v59 = vpop.f32.mrb[65].mxu1 }
 0x2a3   : > { %10554 = vmatprep.subr.bf16.mxu0 %v12723_v10  ;;  %v10663_v3 = vpop.f32.mrb[66].mxu1  ;;  %v13501_v17 = vadd.f32 %v10661_v59, %v10660_v60 }
 0x2a4   : > { %v10664_v5 = vpop.f32.mrb[67].mxu1 }
 0x2a5   : > { %v13503_v23 = vadd.f32 %v10664_v5, %v10663_v3 }
 0x2a6   : > { %10555 = vmatpush3.bf16.msra.mxu0 %v12685_v61 }
 0x2a7   : > { %10556 = vmatprep.subr.bf16.mxu0 %v12743_v35 }
 0x2a9   : > { %v10666_v41 = vpop.f32.mrb[68].mxu1 }
 0x2aa   : > { %10557 = vmatpush3.bf16.msra.mxu0 %v12695_v18  ;;  %v10667_v52 = vpop.f32.mrb[69].mxu1 }
 0x2ab   : > { %10558 = vmatprep.subr.bf16.mxu0 %v12739_v31  ;;  %v10669_v12 = vpop.f32.mrb[70].mxu1  ;;  %v13510_v29 = vadd.f32 %v10667_v52, %v10666_v41 }
 0x2ac   : > { %v10670_v8 = vpop.f32.mrb[71].mxu1 }
 0x2ad   : > { %v13512_v56 = vadd.f32 %v10670_v8, %v10669_v12 }
 0x2ae   : > { %10559 = vmatpush3.bf16.msra.mxu0 %v12693_v15 }
 0x2af   : > { %10560 = vmatprep.subr.bf16.mxu0 %v12759_v27 }
 0x2b1   : > { %v10672_v49 = vpop.f32.mrb[72].mxu1 }
 0x2b2   : > { %10561 = vmatpush3.bf16.msra.mxu0 %v12703_v37  ;;  %v10673_v20 = vpop.f32.mrb[73].mxu1 }
 0x2b3   : > { %10562 = vmatprep.subr.bf16.mxu0 %v12755_v53 }
 0x2b6   : > { %10563 = vmatpush3.bf16.msra.mxu0 %v12701_v34 }
 0x2b7   : > { %11284 = vmatprep.subr.bf16.mxu0 %v12034_v50 }
 0x2b9   : > { %2132 = vmatmul.mubr.bf16.vlgmr.msra.gmra.mrb[72].mxu0 %v12022_v21 }
 0x2ba   : > { %2139 = vmatprep.mubr.bf16.mxu0 %v12025_v28  ;;  %11285 = vmatpush3.bf16.msra.mxu0 %v12034_v50  ;;  %v10675_v50 = vpop.f32.mrb[74].mxu1  ;;  %v13522_v28 = vadd.f32 %v10673_v20, %v10672_v49 }
 0x2bb   : > { %11286 = vmatprep.subr.bf16.mxu0 %v12035_v40  ;;  %v10676_v21 = vpop.f32.mrb[75].mxu1 }
 0x2be   : > { %11287 = vmatpush3.bf16.msra.mxu0 %v12035_v40  ;;  %v13524_v40 = vadd.f32 %v10676_v21, %v10675_v50 }
 0x2bf   : > { %11288 = vmatprep.subr.bf16.mxu0 %v12036_v42 }
 0x2c1   : > { %2140 = vmatmul.mubr.bf16.gmra.mrb[76].mxu0 %v12027_v33 }
 0x2c2   : > { %2147 = vmatprep.mubr.bf16.mxu0 %v12028_v45  ;;  %11289 = vmatpush3.bf16.msra.mxu0 %v12036_v42  ;;  %v10678_v45 = vpop.f32.mrb[76].mxu1 }
 0x2c3   : > { %11290 = vmatprep.subr.bf16.mxu0 %v12037_v25 }
 0x2c6   : > { %11291 = vmatpush3.bf16.msra.mxu0 %v12037_v25 }
 0x2c7   : > { %11300 = vmatprep.subr.bf16.mxu0 %v13519_v9 }
 0x2c9   : > { %2148 = vmatmul.mubr.bf16.gmra.mrb[80].mxu0 %v12030_v1  ;;  %v10679_v1 = vpop.f32.mrb[77].mxu1 }
 0x2ca   : > { %2155 = vmatprep.mubr.bf16.mxu0 %v12031_v14  ;;  %v10681_v14 = vpop.f32.mrb[78].mxu1  ;;  %v13528_v24 = vadd.f32 %v10679_v1, %v10678_v45 }
 0x2d1   : > { %2156 = vmatmul.mubr.bf16.gmra.mrb[84].mxu0 %v12033_v22  ;;  %v10682_v22 = vpop.f32.mrb[79].mxu1 }
 0x2d2   : > { %v13530_v2 = vadd.f32 %v10682_v22, %v10681_v14  ;;  %v10708_v32 = vpop.f32.mrb[80].mxu1 }
 0x2d3   : > { %v10709_v51 = vpop.f32.mrb[81].mxu1 }
 0x2d4   : > { %v10711_v55 = vpop.f32.mrb[82].mxu1  ;;  %v13534_v44 = vadd.f32 %v10709_v51, %v10708_v32 }
 0x2d5   : > { %v10712_v38 = vpop.f32.mrb[83].mxu1 }
 0x2d6   : > { %v13536_v60 = vadd.f32 %v10712_v38, %v10711_v55  ;;  %v10714_v59 = vpop.f32.mrb[84].mxu1 }
 0x2d7   : > { %v10715_v3 = vpop.f32.mrb[85].mxu1 }
 0x2d8   : > { %v10717_v5 = vpop.f32.mrb[86].mxu1  ;;  %v13540_v41 = vadd.f32 %v10715_v3, %v10714_v59 }
 0x2d9   : > { %v10718_v25 = vpop.f32.mrb[87].mxu1 }
 0x2da   : > { %v13542_v52 = vadd.f32 %v10718_v25, %v10717_v5  ;;  %v10720_v8 = vpop.f32.mrb[88].mxu1 }
 0x2db   : > { %v10721_v49 = vpop.f32.mrb[89].mxu1 }
 0x2dc   : > { %v10723_v20 = vpop.f32.mrb[90].mxu1  ;;  %v13546_v21 = vadd.f32 %v10721_v49, %v10720_v8 }
 0x2dd   : > { %v10724_v50 = vpop.f32.mrb[91].mxu1 }
 0x2de   : > { %v13548_v45 = vadd.f32 %v10724_v50, %v10723_v20  ;;  %v10726_v14 = vpop.f32.mrb[92].mxu1 }
 0x2df   : > { %v10727_v22 = vpop.f32.mrb[93].mxu1 }
 0x2e0   : > { %v10729_v32 = vpop.f32.mrb[94].mxu1  ;;  %v13552_v55 = vadd.f32 %v10727_v22, %v10726_v14 }
 0x2e1   : > { %v10730_v51 = vpop.f32.mrb[95].mxu1 }
 0x2e2   : > { %v13554_v38 = vadd.f32 %v10730_v51, %v10729_v32  ;;  %v10756_v3 = vpop.f32.mrb[96].mxu1 }
 0x2e3   : > { %v10757_v5 = vpop.f32.mrb[97].mxu1 }
 0x2e4   : > { %v10759_v25 = vpop.f32.mrb[98].mxu1  ;;  %v13558_v49 = vadd.f32 %v10757_v5, %v10756_v3 }
 0x2e5   : > { %v10760_v8 = vpop.f32.mrb[99].mxu1 }
 0x2e6   : > { %v13560_v20 = vadd.f32 %v10760_v8, %v10759_v25 }
 0x2e9   : > { %v10762_v1 = vpop.f32.mrb[100].mxu1 }
 0x2ea   : > { %v10763_v12 = vpop.f32.mrb[101].mxu1 }
 0x2eb   : > { %v10765_v14 = vpop.f32.mrb[102].mxu1  ;;  %v13564_v22 = vadd.f32 %v10763_v12, %v10762_v1 }
 0x2ec   : > { %v10766_v32 = vpop.f32.mrb[103].mxu1 }
 0x2ed   : > { %v13566_v51 = vadd.f32 %v10766_v32, %v10765_v14 }
 0x2f1   : > { %v10768_v42 = vpop.f32.mrb[104].mxu1 }
 0x2f2   : > { %v10769_v30 = vpop.f32.mrb[105].mxu1 }
 0x2f3   : > { %v10771_v3 = vpop.f32.mrb[106].mxu1  ;;  %v13570_v25 = vadd.f32 %v10769_v30, %v10768_v42 }
 0x2f4   : > { %v10772_v5 = vpop.f32.mrb[107].mxu1 }
 0x2f5   : > { %v13572_v8 = vadd.f32 %v10772_v5, %v10771_v3 }
 0x2f9   : > { %v10774_v33 = vpop.f32.mrb[108].mxu1 }
 0x2fa   : > { %v10775_v12 = vpop.f32.mrb[109].mxu1 }
 0x2fb   : > { %v13576_v1 = vadd.f32 %v10775_v12, %v10774_v33  ;;  %v10777_v14 = vpop.f32.mrb[110].mxu1 }
 0x2fc   : > { %v10778_v32 = vpop.f32.mrb[111].mxu1 }
 0x2fd   : > { %v13578_v62 = vadd.f32 %v10778_v32, %v10777_v14  ;;  %v12039_v32 = vld [vmem:[%s15494_s4 + $0xc8] sm:$0xff]  }
 0x38c   : > { %v10564_v63 = vpop.f32.mrb[72].mxu0 }
 0x38d   : > { %v10565_v48 = vpop.f32.mrb[73].mxu0 }
 0x38e   : > { %v10566_v30 = vadd.f32 %v10565_v48, %v10564_v63  ;;  %v10567_v42 = vpop.f32.mrb[74].mxu0  ;;  %v12066_v48 = vld [vmem:[%s15493_s3 + $0x354] ss:$8 sps:$4 sm:$0xff]  }
 0x38f   : > { %v10568_v3 = vpop.f32.mrb[75].mxu0  ;;  %4027 = vmatprep.mubr.bf16.mxu1 %v12066_v48 }
 0x390   : > { %v10569_v5 = vadd.f32 %v10568_v3, %v10567_v42  ;;  %v12040_v42 = vld [vmem:[%s15494_s4 + $0xd0] sm:$0xff]  }
 0x392   : > { %v2164_v39 = vpack.c.bf16 %v10569_v5, %v10566_v30 }
 0x394   : > { %v10570_v7 = vpop.f32.mrb[76].mxu0  ;;  %11292 = vmatprep.mubr.msk.bf16.mxu0 %vm1163_vm0, %v2164_v39  ;;  %v12068_v39 = vld [vmem:[%s15493_s3 + $0x350] ss:$8 sps:$4 sm:$0xff]  }
 0x395   : > { %v10571_v50 = vpop.f32.mrb[77].mxu0  ;;  %4028 = vmatmul.mubr.bf16.gmra.mrb[148].mxu1 %v12068_v39  ;;  %v12071_v39 = vld [vmem:[%s15493_s3 + $0x360] ss:$8 sps:$4 sm:$0xff]  }
 0x396   : > { %v10572_v33 = vadd.f32 %v10571_v50, %v10570_v7  ;;  %v10573_v12 = vpop.f32.mrb[78].mxu0  ;;  %v10852_v7 = vpop.f32.mrb[112].mxu1 }
 0x397   : > { %v10574_v26 = vpop.f32.mrb[79].mxu0 }
 0x398   : > { %v10575_v34 = vadd.f32 %v10574_v26, %v10573_v12  ;;  %v10853_v26 = vpop.f32.mrb[113].mxu1 }
 0x399   : > { %v13600_v3 = vadd.f32 %v10853_v26, %v10852_v7  ;;  %v10855_v5 = vpop.f32.mrb[114].mxu1 }
 0x39a   : > { %v2165_v14 = vpack.c.bf16 %v10575_v34, %v10572_v33  ;;  %v12069_v34 = vld [vmem:[%s15493_s3 + $0x364] ss:$8 sps:$4 sm:$0xff]   ;;  %v10856_v12 = vpop.f32.mrb[115].mxu1 }
 0x39b   : > { %15510 = vst [vmem:[#allocation5_spill] sm:$0xff] %v13600_v3  ;;  %4035 = vmatprep.mubr.bf16.mxu1 %v12069_v34  ;;  %v10858_v7 = vpop.f32.mrb[116].mxu1 }
 0x39c   : > { %v10576_v59 = vpop.f32.mrb[80].mxu0  ;;  %11293 = vmatmul.mubr.msk.bf16.vlgmr.msra.gmra.mrb[64].mxu0 %vm1163_vm0, %v2165_v14  ;;  %v13602_v14 = vadd.f32 %v10856_v12, %v10855_v5 }
 0x39d   : > { %v10577_v63 = vpop.f32.mrb[81].mxu0  ;;  %11301 = vmatpush3.bf16.msra.mxu0 %v13519_v9  ;;  %4036 = vmatmul.mubr.bf16.gmra.mrb[152].mxu1 %v12071_v39  ;;  %v15511_v39 = vpack.c.bf16 %v13393_v58, %v13390_v6  ;;  %v12078_v6 = vld [vmem:[%s15493_s3 + $0x394] ss:$8 sps:$4 sm:$0xff]   ;;  %v15513_v58 = vpack.c.bf16 %v13488_v16, %v13486_v11  ;;  %v15514_v11 = vpack.c.bf16 %v13494_v36, %v13492_v47  ;;  %v12081_v16 = vld [vmem:[%s15493_s3 + $0x3a4] ss:$8 sps:$4 sm:$0xff]  }
 0x39e   : > { %v10578_v50 = vadd.f32 %v10577_v63, %v10576_v59  ;;  %v10579_v30 = vpop.f32.mrb[82].mxu0  ;;  %11302 = vmatprep.subr.bf16.mxu0 %v12039_v32  ;;  %v12041_v59 = vld [vmem:[%s15494_s4 + $0xd8] sm:$0xff]   ;;  %v10859_v63 = vpop.f32.mrb[117].mxu1  ;;  %v12047_v47 = vld [vmem:[%s15494_s4 + $0x108] sm:$0xff]  }
 0x39f   : > { %v10580_v33 = vpop.f32.mrb[83].mxu0  ;;  %v13616_v34 = vadd.f32 %v10859_v63, %v10858_v7  ;;  %v12083_v36 = vld [vmem:[%s15493_s3 + $0x3a0] ss:$8 sps:$4 sm:$0xff]  }
 0x3a0   : > { %v10581_v9 = vadd.f32 %v10580_v33, %v10579_v30 }
 0x3a1   : > { %11303 = vmatpush3.bf16.msra.mxu0 %v12039_v32  ;;  %v12072_v32 = vld [vmem:[%s15493_s3 + $0x374] ss:$8 sps:$4 sm:$0xff]  }
 0x3a2   : > { %v2166_v53 = vpack.c.bf16 %v10581_v9, %v10578_v50  ;;  %11304 = vmatprep.subr.bf16.mxu0 %v12040_v42  ;;  %v10861_v50 = vpop.f32.mrb[118].mxu1  ;;  %v12042_v9 = vld [vmem:[%s15494_s4 + $0xe0] sm:$0xff]   ;;  %4043 = vmatprep.mubr.bf16.mxu1 %v12072_v32  ;;  %v15512_v32 = vpack.c.bf16 %v13416_v19, %v13414_v4  ;;  %v12045_v4 = vld [vmem:[%s15494_s4 + $0xf8] sm:$0xff]  }
 0x3a3   : > { %v10862_v5 = vpop.f32.mrb[119].mxu1  ;;  %v12080_v19 = vld [vmem:[%s15493_s3 + $0x390] ss:$8 sps:$4 sm:$0xff]  }
 0x3a4   : > { %v10582_v26 = vpop.f32.mrb[84].mxu0  ;;  %11296 = vmatprep.mubr.msk.bf16.mxu0 %vm1163_vm0, %v2166_v53  ;;  %v13621_v48 = vadd.f32 %v10862_v5, %v10861_v50  ;;  %v12044_v50 = vld [vmem:[%s15494_s4 + $0xf0] sm:$0xff]   ;;  %v12046_v5 = vld [vmem:[%s15494_s4 + $0x100] sm:$0xff]  }
 0x3a5   : > { %v10583_v30 = vpop.f32.mrb[85].mxu0  ;;  %11305 = vmatpush3.bf16.msra.mxu0 %v12040_v42  ;;  %v12074_v42 = vld [vmem:[%s15493_s3 + $0x370] ss:$8 sps:$4 sm:$0xff]  }
 0x3a6   : > { %v10584_v33 = vadd.f32 %v10583_v30, %v10582_v26  ;;  %v10585_v12 = vpop.f32.mrb[86].mxu0  ;;  %11306 = vmatprep.subr.bf16.mxu0 %v12041_v59  ;;  %v12077_v26 = vld [vmem:[%s15493_s3 + $0x384] ss:$8 sps:$4 sm:$0xff]   ;;  %4044 = vmatmul.mubr.bf16.gmra.mrb[156].mxu1 %v12074_v42  ;;  %v15515_v30 = vpack.c.bf16 %v13503_v23, %v13501_v17  ;;  %v15516_v17 = vpack.c.bf16 %v13512_v56, %v13510_v29  ;;  %v12084_v23 = vld [vmem:[%s15493_s3 + $0x3b4] ss:$8 sps:$4 sm:$0xff]  }
 0x3a7   : > { %v10586_v53 = vpop.f32.mrb[87].mxu0  ;;  %4255 = vmatprep.mubr.bf16.mxu1 %v12077_v26  ;;  %v12049_v29 = vld [vmem:[%s15494_s4 + $0x118] sm:$0xff]  }
 0x3a8   : > { %v10587_v3 = vadd.f32 %v10586_v53, %v10585_v12  ;;  %v12048_v12 = vld [vmem:[%s15494_s4 + $0x110] sm:$0xff]   ;;  %v12053_v53 = vld [vmem:[%s15494_s4 + $0x138] sm:$0xff]  }
 0x3a9   : > { %11307 = vmatpush3.bf16.msra.mxu0 %v12041_v59  ;;  %v12075_v59 = vld [vmem:[%s15493_s3 + $0x380] ss:$8 sps:$4 sm:$0xff]   ;;  %v12086_v56 = vld [vmem:[%s15493_s3 + $0x3b0] ss:$8 sps:$4 sm:$0xff]   ;;  %v12063_v42 = vld [vmem:[%s15493_s3 + $0x2b4] ss:$8 sps:$4 sm:$0xff]  }
 0x3aa   : > { %v2167_v63 = vpack.c.bf16 %v10587_v3, %v10584_v33  ;;  %11316 = vmatprep.subr.bf16.mxu0 %v12042_v9  ;;  %v12043_v3 = vld [vmem:[%s15494_s4 + $0xe8] sm:$0xff]   ;;  %v15517_v33 = vpack.c.bf16 %v13524_v40, %v13522_v28  ;;  %v15518_v28 = vpack.c.bf16 %v13530_v2, %v13528_v24  ;;  %v15519_v40 = vpack.c.bf16 %v13536_v60, %v13534_v44  ;;  %v12052_v60 = vld [vmem:[%s15494_s4 + $0x130] sm:$0xff]  }
 0x3ab   : > { %v12051_v24 = vld [vmem:[%s15494_s4 + $0x128] sm:$0xff]   ;;  %v15520_v2 = vpack.c.bf16 %v13542_v52, %v13540_v41  ;;  %v15521_v44 = vpack.c.bf16 %v13548_v45, %v13546_v21  ;;  %v15522_v41 = vpack.c.bf16 %v13554_v38, %v13552_v55  ;;  %v15523_v52 = vpack.c.bf16 %v13560_v20, %v13558_v49  ;;  %v12087_v49 = vld [vmem:[%s15494_s4 + $0x140] sm:$0xff]   ;;  %v12065_v26 = vld [vmem:[%s15493_s3 + $0x2b0] ss:$8 sps:$4 sm:$0xff]  }
 0x3ac   : > { %11297 = vmatmul.mubr.msk.bf16.gmra.mrb[68].mxu0 %vm1163_vm0, %v2167_v63  ;;  %v15524_v21 = vpack.c.bf16 %v13566_v51, %v13564_v22  ;;  %v15525_v45 = vpack.c.bf16 %v13572_v8, %v13570_v25  ;;  %v12056_v55 = vld [vmem:[%s15493_s3 + $0x284] ss:$8 sps:$4 sm:$0xff]   ;;  %v15526_v38 = vpack.c.bf16 %v13578_v62, %v13576_v1  ;;  %v12054_v20 = vld [vmem:[%s15493_s3 + $0x280] ss:$8 sps:$4 sm:$0xff]   ;;  %v12057_v51 = vld [vmem:[%s15493_s3 + $0x294] ss:$8 sps:$4 sm:$0xff]  }
 0x3ad   : > { %11308 = vmatprep.mubr.msk.bf16.mxu0 %vm1163_vm0, %v15511_v39  ;;  %v15527_v62 = vld [vmem:[#allocation4_spill] sm:$0xff]  ;;  %v15528_v22 = vld [vmem:[#allocation3_spill] sm:$0xff]  ;;  %v10864_v39 = vpop.f32.mrb[120].mxu1 }
 0x3ae   : > { %4256 = vmatmul.mubr.bf16.vlgmr.msra.gmra.mrb[160].mxu1 %v12075_v59  ;;  %v12088_v25 = vld [vmem:[%s15494_s4 + $0x148] sm:$0xff]   ;;  %v12059_v8 = vld [vmem:[%s15493_s3 + $0x290] ss:$8 sps:$4 sm:$0xff]  }
 0x3af   : > { %4263 = vmatprep.mubr.bf16.mxu1 %v12078_v6  ;;  %v12060_v1 = vld [vmem:[%s15493_s3 + $0x2a4] ss:$8 sps:$4 sm:$0xff]   ;;  %v12062_v63 = vld [vmem:[%s15493_s3 + $0x2a0] ss:$8 sps:$4 sm:$0xff]  }
 0x3b4   : > { %11309 = vmatmul.mubr.msk.bf16.vlgmr.msra.gmra.mrb[64].mxu0 %vm1163_vm0, %v15512_v32 }
 0x3b5   : > { %11317 = vmatpush3.bf16.msra.mxu0 %v12042_v9  ;;  %11312 = vmatprep.mubr.msk.bf16.mxu0 %vm1163_vm0, %v15513_v58  ;;  %v12050_v9 = vld [vmem:[%s15494_s4 + $0x120] sm:$0xff]  }
 0x3b6   : > { %11318 = vmatprep.subr.bf16.mxu0 %v12043_v3  ;;  %4264 = vmatmul.mubr.bf16.gmra.mrb[164].mxu1 %v12080_v19 }
 0x3b7   : > { %4271 = vmatprep.mubr.bf16.mxu1 %v12081_v16 }
 0x3b9   : > { %11319 = vmatpush3.bf16.msra.mxu0 %v12043_v3  ;;  %v10865_v3 = vpop.f32.mrb[121].mxu1 }
 0x3ba   : > { %11320 = vmatprep.subr.bf16.mxu0 %v12044_v50  ;;  %v10867_v59 = vpop.f32.mrb[122].mxu1  ;;  %v13796_v6 = vadd.f32 %v10865_v3, %v10864_v39 }
 0x3bb   : > { %v10868_v32 = vpop.f32.mrb[123].mxu1 }
 0x3bc   : > { %11313 = vmatmul.mubr.msk.bf16.gmra.mrb[68].mxu0 %vm1163_vm0, %v15514_v11  ;;  %v13798_v58 = vadd.f32 %v10868_v32, %v10867_v59 }
 0x3bd   : > { %11321 = vmatpush3.bf16.msra.mxu0 %v12044_v50  ;;  %11324 = vmatprep.mubr.msk.bf16.mxu0 %vm1163_vm0, %v15515_v30 }
 0x3be   : > { %11322 = vmatprep.subr.bf16.mxu0 %v12045_v4  ;;  %4272 = vmatmul.mubr.bf16.gmra.mrb[168].mxu1 %v12083_v36 }
 0x3bf   : > { %4279 = vmatprep.mubr.bf16.mxu1 %v12084_v23 }
 0x3c1   : > { %11323 = vmatpush3.bf16.msra.mxu0 %v12045_v4  ;;  %v10870_v4 = vpop.f32.mrb[124].mxu1 }
 0x3c2   : > { %11332 = vmatprep.subr.bf16.mxu0 %v12046_v5  ;;  %v10871_v19 = vpop.f32.mrb[125].mxu1 }
 0x3c3   : > { %v10873_v11 = vpop.f32.mrb[126].mxu1  ;;  %v13802_v30 = vadd.f32 %v10871_v19, %v10870_v4 }
 0x3c4   : > { %11325 = vmatmul.mubr.msk.bf16.vlgmr.msra.gmra.mrb[64].mxu0 %vm1163_vm0, %v15516_v17  ;;  %v10874_v16 = vpop.f32.mrb[127].mxu1  ;;  %v12089_v17 = vld [vmem:[%s15494_s4 + $0x150] sm:$0xff]  }
 0x3c5   : > { %11333 = vmatpush3.bf16.msra.mxu0 %v12046_v5  ;;  %11328 = vmatprep.mubr.msk.bf16.mxu0 %vm1163_vm0, %v15517_v33  ;;  %v13804_v5 = vadd.f32 %v10874_v16, %v10873_v11  ;;  %v10900_v36 = vpop.f32.mrb[128].mxu1 }
 0x3c6   : > { %11334 = vmatprep.subr.bf16.mxu0 %v12047_v47  ;;  %4280 = vmatmul.mubr.bf16.gmra.mrb[172].mxu1 %v12086_v56  ;;  %v10901_v23 = vpop.f32.mrb[129].mxu1 }
 0x3c7   : > { %v10903_v33 = vpop.f32.mrb[130].mxu1 }
 0x3c9   : > { %11335 = vmatpush3.bf16.msra.mxu0 %v12047_v47 }
 0x3ca   : > { %11336 = vmatprep.subr.bf16.mxu0 %v12048_v12 }
 0x3cc   : > { %11329 = vmatmul.mubr.msk.bf16.gmra.mrb[68].mxu0 %vm1163_vm0, %v15518_v28  ;;  %v12090_v28 = vld [vmem:[%s15494_s4 + $0x158] sm:$0xff]  }
 0x3cd   : > { %11337 = vmatpush3.bf16.msra.mxu0 %v12048_v12  ;;  %11340 = vmatprep.mubr.msk.bf16.mxu0 %vm1163_vm0, %v15519_v40  ;;  %v10904_v12 = vpop.f32.mrb[131].mxu1 }
 0x3ce   : > { %11338 = vmatprep.subr.bf16.mxu0 %v12049_v29  ;;  %v13813_v56 = vadd.f32 %v10904_v12, %v10903_v33 }
 0x3d1   : > { %11339 = vmatpush3.bf16.msra.mxu0 %v12049_v29  ;;  %v13811_v29 = vadd.f32 %v10901_v23, %v10900_v36 }
 0x3d2   : > { %11348 = vmatprep.subr.bf16.mxu0 %v12050_v9 }
 0x3d4   : > { %11341 = vmatmul.mubr.msk.bf16.vlgmr.msra.gmra.mrb[64].mxu0 %vm1163_vm0, %v15520_v2 }
 0x3d5   : > { %11349 = vmatpush3.bf16.msra.mxu0 %v12050_v9  ;;  %11344 = vmatprep.mubr.msk.bf16.mxu0 %vm1163_vm0, %v15521_v44  ;;  %v10906_v9 = vpop.f32.mrb[132].mxu1 }
 0x3d6   : > { %11350 = vmatprep.subr.bf16.mxu0 %v12051_v24 }
 0x3d9   : > { %11351 = vmatpush3.bf16.msra.mxu0 %v12051_v24  ;;  %v10907_v24 = vpop.f32.mrb[133].mxu1 }
 0x3da   : > { %11352 = vmatprep.subr.bf16.mxu0 %v12052_v60  ;;  %v10909_v2 = vpop.f32.mrb[134].mxu1  ;;  %v13820_v44 = vadd.f32 %v10907_v24, %v10906_v9 }
 0x3dc   : > { %11345 = vmatmul.mubr.msk.bf16.gmra.mrb[68].mxu0 %vm1163_vm0, %v15522_v41 }
 0x3dd   : > { %11353 = vmatpush3.bf16.msra.mxu0 %v12052_v60  ;;  %11356 = vmatprep.mubr.msk.bf16.mxu0 %vm1163_vm0, %v15523_v52  ;;  %v10910_v60 = vpop.f32.mrb[135].mxu1  ;;  %v13829_v52 = vld [vmem:[%s15494_s4 + $0x160] sm:$0xff]  }
 0x3de   : > { %11354 = vmatprep.subr.bf16.mxu0 %v12053_v53 }
 0x3e1   : > { %11355 = vmatpush3.bf16.msra.mxu0 %v12053_v53  ;;  %v13822_v53 = vadd.f32 %v10910_v60, %v10909_v2 }
 0x3e2   : > { %10788 = vmatprep.subr.bf16.mxu0 %v12711_v57 }
 0x3e4   : > { %11357 = vmatmul.mubr.msk.bf16.vlgmr.msra.gmra.mrb[64].mxu0 %vm1163_vm0, %v15524_v21  ;;  %v10912_v21 = vpop.f32.mrb[136].mxu1 }
 0x3e5   : > { %10789 = vmatpush3.bf16.msra.mxu0 %v12679_v46  ;;  %11360 = vmatprep.mubr.msk.bf16.mxu0 %vm1163_vm0, %v15525_v45  ;;  %v10913_v45 = vpop.f32.mrb[137].mxu1 }
 0x3e6   : > { %10790 = vmatprep.subr.bf16.mxu0 %v12709_v54 }
 0x3e9   : > { %10791 = vmatpush3.bf16.msra.mxu0 %v12677_v43 }
 0x3ea   : > { %10792 = vmatprep.subr.bf16.mxu0 %v12727_v13 }
 0x3ec   : > { %11361 = vmatmul.mubr.msk.bf16.gmra.mrb[68].mxu0 %vm1163_vm0, %v15526_v38 }
 0x3ed   : > { %10793 = vmatpush3.bf16.msra.mxu0 %v12687_v0  ;;  %3311 = vmatprep.mubr.bf16.mxu0 %v12056_v55  ;;  %v10915_v55 = vpop.f32.mrb[138].mxu1 }
 0x3ee   : > { %10794 = vmatprep.subr.bf16.mxu0 %v12723_v10  ;;  %v10916_v38 = vpop.f32.mrb[139].mxu1 }
 0x3f1   : > { %10795 = vmatpush3.bf16.msra.mxu0 %v12685_v61 }
 0x3f2   : > { %10796 = vmatprep.subr.bf16.mxu0 %v12743_v35 }
 0x3f5   : > { %10797 = vmatpush3.bf16.msra.mxu0 %v12695_v18 }
 0x3f6   : > { %10798 = vmatprep.subr.bf16.mxu0 %v12739_v31 }
 0x3f9   : > { %10799 = vmatpush3.bf16.msra.mxu0 %v12693_v15 }
 0x3fa   : > { %10800 = vmatprep.subr.bf16.mxu0 %v12759_v27 }
 0x3fd   : > { %10801 = vmatpush3.bf16.msra.mxu0 %v12703_v37 }
 0x3fe   : > { %10802 = vmatprep.subr.bf16.mxu0 %v15527_v62 }
 0x401   : > { %10803 = vmatpush3.bf16.msra.mxu0 %v15528_v22 }
 0x402   : > { %11364 = vmatprep.subr.bf16.mxu0 %v12087_v49 }
 0x404   : > { %3312 = vmatmul.mubr.bf16.vlgmr.msra.gmra.mrb[88].mxu0 %v12054_v20  ;;  %v13834_v20 = vadd.f32 %v10916_v38, %v10915_v55 }
 0x405   : > { %3319 = vmatprep.mubr.bf16.mxu0 %v12057_v51  ;;  %11365 = vmatpush3.bf16.msra.mxu0 %v12087_v49  ;;  %v13832_v49 = vadd.f32 %v10913_v45, %v10912_v21 }
 0x406   : > { %11366 = vmatprep.subr.bf16.mxu0 %v12088_v25 }
 0x409   : > { %11367 = vmatpush3.bf16.msra.mxu0 %v12088_v25  ;;  %v10918_v25 = vpop.f32.mrb[140].mxu1 }
 0x40a   : > { %11368 = vmatprep.subr.bf16.mxu0 %v12089_v17 }
 0x40c   : > { %3320 = vmatmul.mubr.bf16.gmra.mrb[92].mxu0 %v12059_v8  ;;  %v10919_v8 = vpop.f32.mrb[141].mxu1 }
 0x40d   : > { %3327 = vmatprep.mubr.bf16.mxu0 %v12060_v1  ;;  %11369 = vmatpush3.bf16.msra.mxu0 %v12089_v17  ;;  %v10921_v1 = vpop.f32.mrb[142].mxu1 }
 0x40e   : > { %11370 = vmatprep.subr.bf16.mxu0 %v12090_v28 }
 0x411   : > { %11371 = vmatpush3.bf16.msra.mxu0 %v12090_v28 }
 0x412   : > { %11380 = vmatprep.subr.bf16.mxu0 %v13829_v52 }
 0x414   : > { %3328 = vmatmul.mubr.bf16.gmra.mrb[96].mxu0 %v12062_v63  ;;  %v10922_v63 = vpop.f32.mrb[143].mxu1 }
 0x415   : > { %3335 = vmatprep.mubr.bf16.mxu0 %v12063_v42  ;;  %v13838_v42 = vadd.f32 %v10919_v8, %v10918_v25  ;;  %v10948_v3 = vpop.f32.mrb[144].mxu1 }
 0x416   : > { %v10949_v59 = vpop.f32.mrb[145].mxu1 }
 0x417   : > { %v10951_v32 = vpop.f32.mrb[146].mxu1  ;;  %v13844_v19 = vadd.f32 %v10949_v59, %v10948_v3 }
 0x418   : > { %v10952_v4 = vpop.f32.mrb[147].mxu1 }
 0x419   : > { %v13846_v11 = vadd.f32 %v10952_v4, %v10951_v32 }
 0x41c   : > { %3336 = vmatmul.mubr.bf16.gmra.mrb[100].mxu0 %v12065_v26  ;;  %v13840_v26 = vadd.f32 %v10922_v63, %v10921_v1 }
 0x468   : > { %v10954_v36 = vpop.f32.mrb[148].mxu1 }
 0x469   : > { %v10955_v17 = vpop.f32.mrb[149].mxu1 }
 0x46a   : > { %v10957_v23 = vpop.f32.mrb[150].mxu1  ;;  %v13850_v12 = vadd.f32 %v10955_v17, %v10954_v36 }
 0x46b   : > { %v10958_v33 = vpop.f32.mrb[151].mxu1 }
 0x46c   : > { %v13852_v28 = vadd.f32 %v10958_v33, %v10957_v23 }
 0x470   : > { %v10960_v24 = vpop.f32.mrb[152].mxu1 }
 0x471   : > { %v10961_v2 = vpop.f32.mrb[153].mxu1 }
 0x472   : > { %v10963_v60 = vpop.f32.mrb[154].mxu1  ;;  %v13856_v45 = vadd.f32 %v10961_v2, %v10960_v24 }
 0x473   : > { %v10964_v21 = vpop.f32.mrb[155].mxu1 }
 0x474   : > { %v13858_v55 = vadd.f32 %v10964_v21, %v10963_v60 }
 0x479   : > { %v10966_v25 = vpop.f32.mrb[156].mxu1 }
 0x47a   : > { %v10967_v8 = vpop.f32.mrb[157].mxu1 }
 0x47b   : > { %v10969_v1 = vpop.f32.mrb[158].mxu1  ;;  %v13862_v3 = vadd.f32 %v10967_v8, %v10966_v25 }
 0x47c   : > { %v10970_v63 = vpop.f32.mrb[159].mxu1 }
 0x47d   : > { %v13864_v59 = vadd.f32 %v10970_v63, %v10969_v1 }
 0x481   : > { %v10996_v4 = vpop.f32.mrb[160].mxu1 }
 0x482   : > { %v10997_v36 = vpop.f32.mrb[161].mxu1 }
 0x483   : > { %v10999_v17 = vpop.f32.mrb[162].mxu1  ;;  %v13868_v33 = vadd.f32 %v10997_v36, %v10996_v4 }
 0x484   : > { %v11000_v23 = vpop.f32.mrb[163].mxu1 }
 0x485   : > { %v13870_v24 = vadd.f32 %v11000_v23, %v10999_v17 }
 0x489   : > { %v11002_v60 = vpop.f32.mrb[164].mxu1 }
 0x48a   : > { %v11003_v21 = vpop.f32.mrb[165].mxu1 }
 0x48b   : > { %v11005_v25 = vpop.f32.mrb[166].mxu1  ;;  %v13874_v8 = vadd.f32 %v11003_v21, %v11002_v60 }
 0x48c   : > { %v11006_v1 = vpop.f32.mrb[167].mxu1 }
 0x48d   : > { %v13876_v63 = vadd.f32 %v11006_v1, %v11005_v25 }
 0x491   : > { %v11008_v38 = vpop.f32.mrb[168].mxu1 }
 0x492   : > { %v11009_v9 = vpop.f32.mrb[169].mxu1 }
 0x493   : > { %v11011_v4 = vpop.f32.mrb[170].mxu1  ;;  %v13880_v17 = vadd.f32 %v11009_v9, %v11008_v38 }
 0x494   : > { %v11012_v36 = vpop.f32.mrb[171].mxu1 }
 0x495   : > { %v13882_v23 = vadd.f32 %v11012_v36, %v11011_v4 }
 0x499   : > { %v11014_v16 = vpop.f32.mrb[172].mxu1 }
 0x49a   : > { %v11015_v60 = vpop.f32.mrb[173].mxu1 }
 0x49b   : > { %v13886_v21 = vadd.f32 %v11015_v60, %v11014_v16  ;;  %v11017_v25 = vpop.f32.mrb[174].mxu1 }
 0x49c   : > { %v11018_v1 = vpop.f32.mrb[175].mxu1 }
 0x49d   : > { %v13888_v39 = vadd.f32 %v11018_v1, %v11017_v25  ;;  %v12092_v1 = vld [vmem:[%s15494_s4 + $0x168] sm:$0xff]  }
 0x4d7   : > { %v10804_v51 = vpop.f32.mrb[88].mxu0 }
 0x4d8   : > { %v10805_v41 = vpop.f32.mrb[89].mxu0 }
 0x4d9   : > { %v10806_v9 = vadd.f32 %v10805_v41, %v10804_v51  ;;  %v10807_v38 = vpop.f32.mrb[90].mxu0 }
 0x4da   : > { %v10808_v4 = vpop.f32.mrb[91].mxu0 }
 0x4db   : > { %v10809_v36 = vadd.f32 %v10808_v4, %v10807_v38 }
 0x4dd   : > { %v3344_v40 = vpack.c.bf16 %v10809_v36, %v10806_v9  ;;  %v12095_v36 = vld [vmem:[%s15494_s4 + $0x180] sm:$0xff]  }
 0x4df   : > { %v10810_v47 = vpop.f32.mrb[92].mxu0  ;;  %11372 = vmatprep.mubr.msk.bf16.mxu0 %vm1163_vm0, %v3344_v40 }
 0x4e0   : > { %v10811_v2 = vpop.f32.mrb[93].mxu0 }
 0x4e1   : > { %v10812_v16 = vadd.f32 %v10811_v2, %v10810_v47  ;;  %v10813_v60 = vpop.f32.mrb[94].mxu0  ;;  %v12093_v47 = vld [vmem:[%s15494_s4 + $0x170] sm:$0xff]   ;;  %v12094_v2 = vld [vmem:[%s15494_s4 + $0x178] sm:$0xff]  }
 0x4e2   : > { %v10814_v50 = vpop.f32.mrb[95].mxu0 }
 0x4e3   : > { %v10815_v7 = vadd.f32 %v10814_v50, %v10813_v60 }
 0x4e5   : > { %v3345_v25 = vpack.c.bf16 %v10815_v7, %v10812_v16 }
 0x4e7   : > { %v10816_v32 = vpop.f32.mrb[96].mxu0  ;;  %11373 = vmatmul.mubr.msk.bf16.vlgmr.msra.gmra.mrb[64].mxu0 %vm1163_vm0, %v3345_v25 }
 0x4e8   : > { %v10817_v41 = vpop.f32.mrb[97].mxu0  ;;  %11381 = vmatpush3.bf16.msra.mxu0 %v13829_v52 }
 0x4e9   : > { %v10818_v51 = vadd.f32 %v10817_v41, %v10816_v32  ;;  %v10819_v9 = vpop.f32.mrb[98].mxu0  ;;  %11382 = vmatprep.subr.bf16.mxu0 %v12092_v1 }
 0x4ea   : > { %v10820_v40 = vpop.f32.mrb[99].mxu0 }
 0x4eb   : > { %v10821_v50 = vadd.f32 %v10820_v40, %v10819_v9  ;;  %v15531_v9 = vpack.c.bf16 %v13621_v48, %v13616_v34  ;;  %v12098_v40 = vld [vmem:[%s15494_s4 + $0x198] sm:$0xff]   ;;  %v15533_v48 = vpack.c.bf16 %v13804_v5, %v13802_v30  ;;  %v15534_v34 = vpack.c.bf16 %v13813_v56, %v13811_v29  ;;  %v12101_v29 = vld [vmem:[%s15494_s4 + $0x1b0] sm:$0xff]  }
 0x4ec   : > { %11383 = vmatpush3.bf16.msra.mxu0 %v12092_v1  ;;  %v15529_v1 = vld [vmem:[#allocation5_spill] sm:$0xff]  ;;  %v15535_v30 = vpack.c.bf16 %v13822_v53, %v13820_v44  ;;  %v15536_v5 = vpack.c.bf16 %v13834_v20, %v13832_v49  ;;  %v15537_v44 = vpack.c.bf16 %v13840_v26, %v13838_v42  ;;  %v15538_v53 = vpack.c.bf16 %v13846_v11, %v13844_v19  ;;  %v12103_v49 = vld [vmem:[%s15494_s4 + $0x1c0] sm:$0xff]   ;;  %v12104_v20 = vld [vmem:[%s15494_s4 + $0x1c8] sm:$0xff]  }
 0x4ed   : > { %v3346_v7 = vpack.c.bf16 %v10821_v50, %v10818_v51  ;;  %11384 = vmatprep.subr.bf16.mxu0 %v12093_v47  ;;  %v15530_v41 = vpack.c.bf16 %v13602_v14, %v15529_v1  ;;  %v12096_v51 = vld [vmem:[%s15494_s4 + $0x188] sm:$0xff]   ;;  %v12097_v14 = vld [vmem:[%s15494_s4 + $0x190] sm:$0xff]   ;;  %v12102_v56 = vld [vmem:[%s15494_s4 + $0x1b8] sm:$0xff]   ;;  %v15539_v42 = vpack.c.bf16 %v13852_v28, %v13850_v12  ;;  %v15540_v26 = vpack.c.bf16 %v13858_v55, %v13856_v45 }
 0x4ee   : > { %v12105_v19 = vld [vmem:[%s15494_s4 + $0x1d0] sm:$0xff]   ;;  %v12106_v11 = vld [vmem:[%s15494_s4 + $0x1d8] sm:$0xff]   ;;  %v15541_v12 = vpack.c.bf16 %v13864_v59, %v13862_v3  ;;  %v15542_v28 = vpack.c.bf16 %v13870_v24, %v13868_v33  ;;  %v15543_v45 = vpack.c.bf16 %v13876_v63, %v13874_v8  ;;  %v15544_v55 = vpack.c.bf16 %v13882_v23, %v13880_v17 }
 0x4ef   : > { %v10822_v38 = vpop.f32.mrb[100].mxu0  ;;  %11376 = vmatprep.mubr.msk.bf16.mxu0 %vm1163_vm0, %v3346_v7  ;;  %v15545_v3 = vpack.c.bf16 %v13888_v39, %v13886_v21 }
 0x4f0   : > { %v10823_v52 = vpop.f32.mrb[101].mxu0  ;;  %11385 = vmatpush3.bf16.msra.mxu0 %v12093_v47  ;;  %v15532_v47 = vpack.c.bf16 %v13798_v58, %v13796_v6  ;;  %v12099_v6 = vld [vmem:[%s15494_s4 + $0x1a0] sm:$0xff]   ;;  %v12100_v58 = vld [vmem:[%s15494_s4 + $0x1a8] sm:$0xff]  }
 0x4f1   : > { %v10824_v32 = vadd.f32 %v10823_v52, %v10822_v38  ;;  %v10825_v4 = vpop.f32.mrb[102].mxu0  ;;  %11386 = vmatprep.subr.bf16.mxu0 %v12094_v2 }
 0x4f2   : > { %v10826_v16 = vpop.f32.mrb[103].mxu0 }
 0x4f3   : > { %v10827_v60 = vadd.f32 %v10826_v16, %v10825_v4 }
 0x4f4   : > { %11387 = vmatpush3.bf16.msra.mxu0 %v12094_v2 }
 0x4f5   : > { %v3347_v25 = vpack.c.bf16 %v10827_v60, %v10824_v32  ;;  %11396 = vmatprep.subr.bf16.mxu0 %v12095_v36 }
 0x4f7   : > { %11377 = vmatmul.mubr.msk.bf16.gmra.mrb[68].mxu0 %vm1163_vm0, %v3347_v25 }
 0x4f8   : > { %11388 = vmatprep.mubr.msk.bf16.mxu0 %vm1163_vm0, %v15530_v41 }
 0x4ff   : > { %11389 = vmatmul.mubr.msk.bf16.vlgmr.msra.gmra.mrb[64].mxu0 %vm1163_vm0, %v15531_v9 }
 0x500   : > { %11397 = vmatpush3.bf16.msra.mxu0 %v12095_v36  ;;  %11392 = vmatprep.mubr.msk.bf16.mxu0 %vm1163_vm0, %v15532_v47  ;;  %v12535_v47 = vmov 0.0  }
 0x501   : > { %11398 = vmatprep.subr.bf16.mxu0 %v12096_v51  ;;  %11460 = vmatprep.subr.bf16.mxu1 %v12535_v47 }
 0x502   : > { %11468 = vmatprep.mubr.msk.bf16.mxu1 %vm12536_vm1, %v12535_v47 }
 0x504   : > { %11399 = vmatpush3.bf16.msra.mxu0 %v12096_v51 }
 0x505   : > { %11400 = vmatprep.subr.bf16.mxu0 %v12097_v14 }
 0x507   : > { %11393 = vmatmul.mubr.msk.bf16.gmra.mrb[68].mxu0 %vm1163_vm0, %v15533_v48 }
 0x508   : > { %11401 = vmatpush3.bf16.msra.mxu0 %v12097_v14  ;;  %11404 = vmatprep.mubr.msk.bf16.mxu0 %vm1163_vm0, %v15534_v34  ;;  %v9675_v14 = vld [vmem:[%s15495_s5] ss:$0 sm:$0xff] }
 0x509   : > { %11402 = vmatprep.subr.bf16.mxu0 %v12098_v40 }
 0x50c   : > { %11403 = vmatpush3.bf16.msra.mxu0 %v12098_v40 }
 0x50d   : > { %11412 = vmatprep.subr.bf16.mxu0 %v12099_v6 }
 0x50f   : > { %11405 = vmatmul.mubr.msk.bf16.vlgmr.msra.gmra.mrb[64].mxu0 %vm1163_vm0, %v15535_v30 }
 0x510   : > { %11413 = vmatpush3.bf16.msra.mxu0 %v12099_v6  ;;  %11408 = vmatprep.mubr.msk.bf16.mxu0 %vm1163_vm0, %v15536_v5 }
 0x511   : > { %11414 = vmatprep.subr.bf16.mxu0 %v12100_v58 }
 0x514   : > { %11415 = vmatpush3.bf16.msra.mxu0 %v12100_v58 }
 0x515   : > { %11416 = vmatprep.subr.bf16.mxu0 %v12101_v29 }
 0x517   : > { %11409 = vmatmul.mubr.msk.bf16.gmra.mrb[68].mxu0 %vm1163_vm0, %v15537_v44 }
 0x518   : > { %11417 = vmatpush3.bf16.msra.mxu0 %v12101_v29  ;;  %11420 = vmatprep.mubr.msk.bf16.mxu0 %vm1163_vm0, %v15538_v53 }
 0x519   : > { %11418 = vmatprep.subr.bf16.mxu0 %v12102_v56 }
 0x51c   : > { %11419 = vmatpush3.bf16.msra.mxu0 %v12102_v56 }
 0x51d   : > { %11428 = vmatprep.subr.bf16.mxu0 %v12103_v49 }
 0x51f   : > { %11421 = vmatmul.mubr.msk.bf16.vlgmr.msra.gmra.mrb[64].mxu0 %vm1163_vm0, %v15539_v42 }
 0x520   : > { %11429 = vmatpush3.bf16.msra.mxu0 %v12103_v49  ;;  %11424 = vmatprep.mubr.msk.bf16.mxu0 %vm1163_vm0, %v15540_v26 }
 0x521   : > { %11430 = vmatprep.subr.bf16.mxu0 %v12104_v20 }
 0x524   : > { %11431 = vmatpush3.bf16.msra.mxu0 %v12104_v20 }
 0x525   : > { %11432 = vmatprep.subr.bf16.mxu0 %v12105_v19 }
 0x527   : > { %11425 = vmatmul.mubr.msk.bf16.gmra.mrb[68].mxu0 %vm1163_vm0, %v15541_v12 }
 0x528   : > { %11433 = vmatpush3.bf16.msra.mxu0 %v12105_v19  ;;  %11436 = vmatprep.mubr.msk.bf16.mxu0 %vm1163_vm0, %v15542_v28 }
 0x529   : > { %11434 = vmatprep.subr.bf16.mxu0 %v12106_v11 }
 0x52c   : > { %11435 = vmatpush3.bf16.msra.mxu0 %v12106_v11 }
 0x52d   : > { %11028 = vmatprep.subr.bf16.mxu0 %v12711_v57  ;;  %v12109_v57 = vld [vmem:[%s15493_s3 + $0x3c4] ss:$8 sps:$4 sm:$0xff]  }
 0x52f   : > { %11437 = vmatmul.mubr.msk.bf16.vlgmr.msra.gmra.mrb[64].mxu0 %vm1163_vm0, %v15543_v45 }
 0x530   : > { %11029 = vmatpush3.bf16.msra.mxu0 %v12679_v46  ;;  %11440 = vmatprep.mubr.msk.bf16.mxu0 %vm1163_vm0, %v15544_v55  ;;  %v12107_v46 = vld [vmem:[%s15493_s3 + $0x3c0] ss:$8 sps:$4 sm:$0xff]  }
 0x531   : > { %11030 = vmatprep.subr.bf16.mxu0 %v12709_v54  ;;  %v12118_v54 = vld [vmem:[%s15493_s3 + $0x3f0] ss:$8 sps:$4 sm:$0xff]  }
 0x534   : > { %11031 = vmatpush3.bf16.msra.mxu0 %v12677_v43  ;;  %v12119_v43 = vld [vmem:[%s15494_s4 + $0x1e0] sm:$0xff]  }
 0x535   : > { %11032 = vmatprep.subr.bf16.mxu0 %v12727_v13  ;;  %v12121_v13 = vld [vmem:[%s15494_s4 + $0x1f0] sm:$0xff]  }
 0x537   : > { %11441 = vmatmul.mubr.msk.bf16.gmra.mrb[68].mxu0 %vm1163_vm0, %v15545_v3 }
 0x538   : > { %11033 = vmatpush3.bf16.msra.mxu0 %v12687_v0  ;;  %4491 = vmatprep.mubr.bf16.mxu0 %v12109_v57  ;;  %v12112_v0 = vld [vmem:[%s15493_s3 + $0x3d0] ss:$8 sps:$4 sm:$0xff]  }
 0x539   : > { %11034 = vmatprep.subr.bf16.mxu0 %v12723_v10  ;;  %v12120_v10 = vld [vmem:[%s15494_s4 + $0x1e8] sm:$0xff]  }
 0x53c   : > { %11035 = vmatpush3.bf16.msra.mxu0 %v12685_v61  ;;  %v12110_v61 = vld [vmem:[%s15493_s3 + $0x3d4] ss:$8 sps:$4 sm:$0xff]  }
 0x53d   : > { %11036 = vmatprep.subr.bf16.mxu0 %v12743_v35 }
 0x540   : > { %11037 = vmatpush3.bf16.msra.mxu0 %v12695_v18  ;;  %v12115_v18 = vld [vmem:[%s15493_s3 + $0x3e0] ss:$8 sps:$4 sm:$0xff]  }
 0x541   : > { %11038 = vmatprep.subr.bf16.mxu0 %v12739_v31  ;;  %v12122_v31 = vld [vmem:[%s15494_s4 + $0x1f8] sm:$0xff]  }
 0x544   : > { %11039 = vmatpush3.bf16.msra.mxu0 %v12693_v15  ;;  %v12113_v15 = vld [vmem:[%s15493_s3 + $0x3e4] ss:$8 sps:$4 sm:$0xff]  }
 0x545   : > { %11040 = vmatprep.subr.bf16.mxu0 %v12759_v27 }
 0x548   : > { %11041 = vmatpush3.bf16.msra.mxu0 %v12703_v37  ;;  %v12116_v37 = vld [vmem:[%s15493_s3 + $0x3f4] ss:$8 sps:$4 sm:$0xff]  }
 0x549   : > { %11042 = vmatprep.subr.bf16.mxu0 %v15527_v62 }
 0x54c   : > { %11043 = vmatpush3.bf16.msra.mxu0 %v15528_v22 }
 0x54d   : > { %11444 = vmatprep.subr.bf16.mxu0 %v12119_v43 }
 0x54f   : > { %4492 = vmatmul.mubr.bf16.vlgmr.msra.gmra.mrb[104].mxu0 %v12107_v46 }
 0x550   : > { %4499 = vmatprep.mubr.bf16.mxu0 %v12110_v61  ;;  %11445 = vmatpush3.bf16.msra.mxu0 %v12119_v43 }
 0x551   : > { %11446 = vmatprep.subr.bf16.mxu0 %v12120_v10 }
 0x554   : > { %11447 = vmatpush3.bf16.msra.mxu0 %v12120_v10 }
 0x555   : > { %11448 = vmatprep.subr.bf16.mxu0 %v12121_v13 }
 0x557   : > { %4500 = vmatmul.mubr.bf16.gmra.mrb[108].mxu0 %v12112_v0 }
 0x558   : > { %4507 = vmatprep.mubr.bf16.mxu0 %v12113_v15  ;;  %11449 = vmatpush3.bf16.msra.mxu0 %v12121_v13 }
 0x559   : > { %11450 = vmatprep.subr.bf16.mxu0 %v12122_v31 }
 0x55c   : > { %11451 = vmatpush3.bf16.msra.mxu0 %v12122_v31 }
 0x55d   : > { %11484 = vmatprep.subr.bf16.mxu0 %v12535_v47 }
 0x55f   : > { %4508 = vmatmul.mubr.bf16.gmra.mrb[112].mxu0 %v12115_v18 }
 0x560   : > { %4515 = vmatprep.mubr.bf16.mxu0 %v12116_v37 }
 0x567   : > { %4516 = vmatmul.mubr.bf16.gmra.mrb[116].mxu0 %v12118_v54 }
 0x622   : > { %v11044_v35 = vpop.f32.mrb[104].mxu0 }
 0x623   : > { %v11045_v27 = vpop.f32.mrb[105].mxu0 }
 0x624   : > { %v11046_v62 = vadd.f32 %v11045_v27, %v11044_v35  ;;  %v11047_v22 = vpop.f32.mrb[106].mxu0 }
 0x625   : > { %v11048_v39 = vpop.f32.mrb[107].mxu0 }
 0x626   : > { %v11049_v59 = vadd.f32 %v11048_v39, %v11047_v22  ;;  %v12124_v22 = vld [vmem:[%s15496_s6 + $0x10] sm:$0xff]   ;;  %v12125_v39 = vld [vmem:[%s15496_s6 + $0x8] sm:$0xff]  }
 0x628   : > { %v4524_v33 = vpack.c.bf16 %v11049_v59, %v11046_v62  ;;  %v12123_v62 = vld [vmem:[%s15496_s6] sm:$0xff]   ;;  %v12126_v59 = vld [vmem:[%s15496_s6 + $0x18] sm:$0xff]  }
 0x62a   : > { %v11050_v24 = vpop.f32.mrb[108].mxu0  ;;  %11452 = vmatprep.mubr.msk.bf16.mxu0 %vm1163_vm0, %v4524_v33  ;;  %v12127_v33 = vld [vmem:[%s15496_s6 + $0x20] sm:$0xff]  }
 0x62b   : > { %v11051_v8 = vpop.f32.mrb[109].mxu0 }
 0x62c   : > { %v11052_v63 = vadd.f32 %v11051_v8, %v11050_v24  ;;  %v11053_v17 = vpop.f32.mrb[110].mxu0  ;;  %v12128_v24 = vld [vmem:[%s15496_s6 + $0x28] sm:$0xff]   ;;  %v12129_v8 = vld [vmem:[%s15496_s6 + $0x30] sm:$0xff]  }
 0x62d   : > { %v11054_v23 = vpop.f32.mrb[111].mxu0 }
 0x62e   : > { %v11055_v21 = vadd.f32 %v11054_v23, %v11053_v17  ;;  %v12140_v17 = vld [vmem:[%s15497_s7 + $0x84] ss:$8 sps:$4 sm:$0xff]   ;;  %v12141_v23 = vld [vmem:[%s15497_s7 + $0x90] ss:$8 sps:$4 sm:$0xff]  }
 0x630   : > { %v4525_v50 = vpack.c.bf16 %v11055_v21, %v11052_v63  ;;  %v12138_v63 = vld [vmem:[%s15497_s7 + $0x80] ss:$8 sps:$4 sm:$0xff]   ;;  %v12143_v21 = vld [vmem:[%s15497_s7 + $0x94] ss:$8 sps:$4 sm:$0xff]  }
 0x632   : > { %11453 = vmatmul.mubr.msk.bf16.vlgmr.msra.gmra.mrb[64].mxu0 %vm1163_vm0, %v4525_v50  ;;  %v11056_v7 = vpop.f32.mrb[112].mxu0  ;;  %v12130_v50 = vld [vmem:[%s15496_s6 + $0x38] sm:$0xff]  }
 0x633   : > { %v11057_v2 = vpop.f32.mrb[113].mxu0 }
 0x634   : > { %v11058_v38 = vadd.f32 %v11057_v2, %v11056_v7  ;;  %v11059_v52 = vpop.f32.mrb[114].mxu0  ;;  %v12144_v7 = vld [vmem:[%s15497_s7 + $0xa0] ss:$8 sps:$4 sm:$0xff]   ;;  %v12146_v2 = vld [vmem:[%s15497_s7 + $0xa4] ss:$8 sps:$4 sm:$0xff]  }
 0x635   : > { %v11060_v32 = vpop.f32.mrb[115].mxu0 }
 0x636   : > { %v11061_v4 = vadd.f32 %v11060_v32, %v11059_v52  ;;  %v12147_v52 = vld [vmem:[%s15497_s7 + $0xb0] ss:$8 sps:$4 sm:$0xff]   ;;  %v12152_v32 = vld [vmem:[%s15497_s7 + $0xc4] ss:$8 sps:$4 sm:$0xff]  }
 0x638   : > { %v4526_v36 = vpack.c.bf16 %v11061_v4, %v11058_v38  ;;  %v12149_v38 = vld [vmem:[%s15497_s7 + $0xb4] ss:$8 sps:$4 sm:$0xff]   ;;  %v12150_v4 = vld [vmem:[%s15497_s7 + $0xc0] ss:$8 sps:$4 sm:$0xff]  }
 0x63a   : > { %v11062_v16 = vpop.f32.mrb[116].mxu0  ;;  %11456 = vmatprep.mubr.msk.bf16.mxu0 %vm1163_vm0, %v4526_v36  ;;  %v12155_v36 = vld [vmem:[%s15497_s7 + $0xd4] ss:$8 sps:$4 sm:$0xff]  }
 0x63b   : > { %v11063_v60 = vpop.f32.mrb[117].mxu0 }
 0x63c   : > { %v11064_v25 = vadd.f32 %v11063_v60, %v11062_v16  ;;  %v11065_v1 = vpop.f32.mrb[118].mxu0  ;;  %v12153_v16 = vld [vmem:[%s15497_s7 + $0xd0] ss:$8 sps:$4 sm:$0xff]   ;;  %v12158_v60 = vld [vmem:[%s15497_s7 + $0xe4] ss:$8 sps:$4 sm:$0xff]  }
 0x63d   : > { %v11066_v41 = vpop.f32.mrb[119].mxu0 }
 0x63e   : > { %v11067_v51 = vadd.f32 %v11066_v41, %v11065_v1  ;;  %v12156_v1 = vld [vmem:[%s15497_s7 + $0xe0] ss:$8 sps:$4 sm:$0xff]   ;;  %v12161_v41 = vld [vmem:[%s15497_s7 + $0xf4] ss:$8 sps:$4 sm:$0xff]  }
 0x640   : > { %v4527_v9 = vpack.c.bf16 %v11067_v51, %v11064_v25  ;;  %v12131_v25 = vld [vmem:[%s15496_s6 + $0x40] sm:$0xff]   ;;  %v12159_v51 = vld [vmem:[%s15497_s7 + $0xf0] ss:$8 sps:$4 sm:$0xff]  }
 0x642   : > { %11457 = vmatmul.mubr.msk.bf16.gmra.mrb[68].mxu0 %vm1163_vm0, %v4527_v9  ;;  %v12164_v9 = vld [vmem:[%s15497_s7 + $0x4] ss:$8 sps:$4 sm:$0xff]  }
 0x643   : > { %11492 = vmatprep.mubr.msk.bf16.mxu0 %vm12536_vm1, %v12535_v47 }
 0x705   : > { %v11454_v40 = vpop.f32.mrb[64].mxu0 }
 0x706   : > { %v4655_v48 = vadd.f32 %v11454_v40, %v9675_v14  ;;  %v4607_v34 = vpop.f32.mrb[65].mxu0  ;;  %v12132_v40 = vld [vmem:[%s15496_s6 + $0x48] sm:$0xff]  }
 0x707   : > { %v4653_v6 = vadd.f32 %v9675_v14, %v4607_v34  ;;  %v11455_v58 = vpop.f32.mrb[66].mxu0  ;;  %v12134_v34 = vld [vmem:[%s15496_s6 + $0x58] sm:$0xff]  }
 0x708   : > { %v4671_v30 = vmul.f32 0.2, %v4655_v48  ;;  %v4656_v5 = vadd.f32 %v11455_v58, %v9675_v14  ;;  %v4610_v29 = vpop.f32.mrb[67].mxu0  ;;  %vm4663_vm2 = vcmp.gt.f32.partialorder %v4655_v48, 0.0  ;;  %v12136_v58 = vld [vmem:[%s15496_s6 + $0x68] sm:$0xff]  }
 0x709   : > { %v4669_v56 = vmul.f32 0.2, %v4653_v6  ;;  %v4654_v44 = vadd.f32 %v9675_v14, %v4610_v29  ;;  %vm4661_vm3 = vcmp.gt.f32.partialorder %v4653_v6, 0.0 }
 0x70a   : > { %vm4664_vm4 = vcmp.gt.f32.partialorder %v4656_v5, 0.0  ;;  %v4672_v53 = vmul.f32 0.2, %v4656_v5  ;;  %v4679_v20 = vsel %vm4663_vm2, %v4655_v48, %v4671_v30  ;;  %v12133_v48 = vld [vmem:[%s15496_s6 + $0x50] sm:$0xff]  }
 0x70b   : > { %vm4662_vm5 = vcmp.gt.f32.partialorder %v4654_v44, 0.0  ;;  %v4670_v49 = vmul.f32 0.2, %v4654_v44  ;;  %v4677_v26 = vsel %vm4661_vm3, %v4653_v6, %v4669_v56  ;;  %v12135_v6 = vld [vmem:[%s15496_s6 + $0x60] sm:$0xff]   ;;  %v12137_v30 = vld [vmem:[%s15496_s6 + $0x70] sm:$0xff]  }
 0x70c   : > { %v4680_v42 = vsel %vm4664_vm4, %v4656_v5, %v4672_v53 }
 0x70d   : > { %v14071_v19 = vpack.c.bf16 %v4680_v42, %v4679_v20  ;;  %v4678_v11 = vsel %vm4662_vm5, %v4654_v44, %v4670_v49 }
 0x70e   : > { %v14073_v12 = vpack.c.bf16 %v4678_v11, %v4677_v26 }
 0x710   : > { %11461 = vmatpush3.bf16.msra.mxu1 %v14073_v12  ;;  %11485 = vmatpush3.bf16.msra.mxu0 %v14073_v12 }
 0x711   : > { %11462 = vmatprep.subr.bf16.mxu1 %v12535_v47  ;;  %11486 = vmatprep.subr.bf16.mxu0 %v12535_v47 }
 0x714   : > { %11463 = vmatpush3.bf16.msra.mxu1 %v14071_v19  ;;  %11487 = vmatpush3.bf16.msra.mxu0 %v14071_v19 }
 0x715   : > { %v11458_v28 = vpop.f32.mrb[68].mxu0  ;;  %11464 = vmatprep.subr.bf16.mxu1 %v12535_v47  ;;  %11488 = vmatprep.subr.bf16.mxu0 %v12535_v47 }
 0x716   : > { %v4659_v45 = vadd.f32 %v11458_v28, %v9675_v14  ;;  %v4623_v55 = vpop.f32.mrb[69].mxu0 }
 0x717   : > { %v4657_v57 = vadd.f32 %v9675_v14, %v4623_v55  ;;  %v11459_v3 = vpop.f32.mrb[70].mxu0  ;;  %v12162_v55 = vld [vmem:[%s15497_s7] ss:$8 sps:$4 sm:$0xff]  }
 0x718   : > { %v4675_v43 = vmul.f32 0.2, %v4659_v45  ;;  %v4660_v46 = vadd.f32 %v11459_v3, %v9675_v14  ;;  %v4626_v61 = vpop.f32.mrb[71].mxu0  ;;  %vm4667_vm6 = vcmp.gt.f32.partialorder %v4659_v45, 0.0 }
 0x719   : > { %v4673_v0 = vmul.f32 0.2, %v4657_v57  ;;  %v4658_v15 = vadd.f32 %v9675_v14, %v4626_v61  ;;  %vm4665_vm7 = vcmp.gt.f32.partialorder %v4657_v57, 0.0  ;;  %v12537_v14 = vmov 0  }
 0x71a   : > { %vm4668_vm8 = vcmp.gt.f32.partialorder %v4660_v46, 0.0  ;;  %v4676_v18 = vmul.f32 0.2, %v4660_v46  ;;  %v4683_v54 = vsel %vm4667_vm6, %v4659_v45, %v4675_v43  ;;  %v12167_v43 = vld [vmem:[%s15497_s7 + $0x14] ss:$8 sps:$4 sm:$0xff]  }
 0x71b   : > { %vm4666_vm9 = vcmp.gt.f32.partialorder %v4658_v15, 0.0  ;;  %v4674_v37 = vmul.f32 0.2, %v4658_v15  ;;  %v4681_v13 = vsel %vm4665_vm7, %v4657_v57, %v4673_v0 }
 0x71c   : > { %v4684_v10 = vsel %vm4668_vm8, %v4660_v46, %v4676_v18  ;;  %v12170_v18 = vld [vmem:[%s15497_s7 + $0x24] ss:$8 sps:$4 sm:$0xff]  }
 0x71d   : > { %v14083_v31 = vpack.c.bf16 %v4684_v10, %v4683_v54  ;;  %v4682_v35 = vsel %vm4666_vm9, %v4658_v15, %v4674_v37  ;;  %v12165_v15 = vld [vmem:[%s15497_s7 + $0x10] ss:$8 sps:$4 sm:$0xff]   ;;  %v12168_v37 = vld [vmem:[%s15497_s7 + $0x20] ss:$8 sps:$4 sm:$0xff]   ;;  %v12173_v54 = vld [vmem:[%s15497_s7 + $0x34] ss:$8 sps:$4 sm:$0xff]  }
 0x71e   : > { %v14085_v27 = vpack.c.bf16 %v4682_v35, %v4681_v13  ;;  %v12171_v10 = vld [vmem:[%s15497_s7 + $0x30] ss:$8 sps:$4 sm:$0xff]   ;;  %v12176_v13 = vld [vmem:[%s15497_s7 + $0x44] ss:$8 sps:$4 sm:$0xff]  }
 0x720   : > { %11465 = vmatpush3.bf16.msra.mxu1 %v14085_v27  ;;  %11489 = vmatpush3.bf16.msra.mxu0 %v14085_v27 }
 0x721   : > { %11466 = vmatprep.subr.bf16.mxu1 %v12535_v47  ;;  %11490 = vmatprep.subr.bf16.mxu0 %v12535_v47 }
 0x724   : > { %11467 = vmatpush3.bf16.msra.mxu1 %v14083_v31  ;;  %11491 = vmatpush3.bf16.msra.mxu0 %v14083_v31 }
 0x725   : > { %11472 = vmatprep.subr.bf16.mxu1 %v12535_v47  ;;  %11496 = vmatprep.subr.bf16.mxu0 %v12535_v47 }
 0x727   : > { %11469 = vmatmul.mubr.msk.bf16.vlgmr.msra.gmra.mrb[176].mxu1 %vm1163_vm0, %v12123_v62  ;;  %11493 = vmatmul.mubr.msk.bf16.vlgmr.msra.gmra.mrb[120].mxu0 %vm1163_vm0, %v12124_v22  ;;  %v12179_v22 = vld [vmem:[%s15497_s7 + $0x54] ss:$8 sps:$4 sm:$0xff]  }
 0x728   : > { %11473 = vmatpush3.bf16.msra.mxu1 %v14073_v12  ;;  %11497 = vmatpush3.bf16.msra.mxu0 %v14073_v12 }
 0x729   : > { %11474 = vmatprep.subr.bf16.mxu1 %v12535_v47  ;;  %11498 = vmatprep.subr.bf16.mxu0 %v12535_v47 }
 0x72a   : > { %11480 = vmatprep.mubr.msk.bf16.mxu1 %vm12536_vm1, %v12535_v47  ;;  %11504 = vmatprep.mubr.msk.bf16.mxu0 %vm12536_vm1, %v12535_v47 }
 0x72c   : > { %11475 = vmatpush3.bf16.msra.mxu1 %v14071_v19  ;;  %11499 = vmatpush3.bf16.msra.mxu0 %v14071_v19 }
 0x72d   : > { %11476 = vmatprep.subr.bf16.mxu1 %v12535_v47  ;;  %11500 = vmatprep.subr.bf16.mxu0 %v12535_v47 }
 0x730   : > { %11477 = vmatpush3.bf16.msra.mxu1 %v14085_v27  ;;  %11501 = vmatpush3.bf16.msra.mxu0 %v14085_v27 }
 0x731   : > { %11478 = vmatprep.subr.bf16.mxu1 %v12535_v47  ;;  %11502 = vmatprep.subr.bf16.mxu0 %v12535_v47 }
 0x734   : > { %11479 = vmatpush3.bf16.msra.mxu1 %v14083_v31  ;;  %11503 = vmatpush3.bf16.msra.mxu0 %v14083_v31 }
 0x735   : > { %11508 = vmatprep.subr.bf16.mxu0 %v12535_v47  ;;  %4907 = vmatprep.subr.bf16.mxu1 %v12140_v17  ;;  %v12183_v17 = vld [vmem:[%s15497_s7 + $0x70] ss:$8 sps:$4 sm:$0xff]  }
 0x737   : > { %11481 = vmatmul.mubr.msk.bf16.vlgmr.msra.gmra.mrb[180].mxu1 %vm1163_vm0, %v12125_v39  ;;  %11505 = vmatmul.mubr.msk.bf16.vlgmr.msra.gmra.mrb[124].mxu0 %vm1163_vm0, %v12126_v59 }
 0x738   : > { %11509 = vmatpush3.bf16.msra.mxu0 %v14073_v12  ;;  %11516 = vmatprep.mubr.msk.bf16.mxu0 %vm12536_vm1, %v12535_v47 }
 0x739   : > { %11510 = vmatprep.subr.bf16.mxu0 %v12535_v47  ;;  %4908 = vmatpush1.bf16.msra.mxu1 %v12138_v63  ;;  %v12185_v63 = vld [vmem:[%s15497_s7 + $0x74] ss:$8 sps:$4 sm:$0xff]  }
 0x73a   : > { %4909 = vmatprep.subr.bf16.mxu1 %v12143_v21  ;;  %4939 = vmatprep.mubr.bf16.mxu1 %v12537_v14 }
 0x73c   : > { %11511 = vmatpush3.bf16.msra.mxu0 %v14071_v19 }
 0x73d   : > { %11512 = vmatprep.subr.bf16.mxu0 %v12535_v47  ;;  %4910 = vmatpush1.bf16.msra.mxu1 %v12141_v23  ;;  %v12188_v23 = vld [vmem:[%s15497_s7 + $0x104] ss:$8 sps:$4 sm:$0xff]  }
 0x73e   : > { %4911 = vmatprep.subr.bf16.mxu1 %v12146_v2 }
 0x740   : > { %11513 = vmatpush3.bf16.msra.mxu0 %v14085_v27 }
 0x741   : > { %11514 = vmatprep.subr.bf16.mxu0 %v12535_v47  ;;  %4912 = vmatpush1.bf16.msra.mxu1 %v12144_v7  ;;  %v12186_v7 = vld [vmem:[%s15497_s7 + $0x100] ss:$8 sps:$4 sm:$0xff]  }
 0x742   : > { %4913 = vmatprep.subr.bf16.mxu1 %v12149_v38  ;;  %v12191_v38 = vld [vmem:[%s15497_s7 + $0x114] ss:$8 sps:$4 sm:$0xff]  }
 0x744   : > { %11515 = vmatpush3.bf16.msra.mxu0 %v14083_v31 }
 0x745   : > { %11520 = vmatprep.subr.bf16.mxu0 %v12535_v47  ;;  %4914 = vmatpush1.bf16.msra.mxu1 %v12147_v52 }
 0x746   : > { %4915 = vmatprep.subr.bf16.mxu1 %v12152_v32 }
 0x747   : > { %11517 = vmatmul.mubr.msk.bf16.vlgmr.msra.gmra.mrb[128].mxu0 %vm1163_vm0, %v12127_v33  ;;  %v12177_v33 = vld [vmem:[%s15497_s7 + $0x50] ss:$8 sps:$4 sm:$0xff]  }
 0x748   : > { %11521 = vmatpush3.bf16.msra.mxu0 %v14073_v12  ;;  %11528 = vmatprep.mubr.msk.bf16.mxu0 %vm12536_vm1, %v12535_v47 }
 0x749   : > { %11522 = vmatprep.subr.bf16.mxu0 %v12535_v47  ;;  %4916 = vmatpush1.bf16.msra.mxu1 %v12150_v4  ;;  %v12189_v4 = vld [vmem:[%s15497_s7 + $0x110] ss:$8 sps:$4 sm:$0xff]  }
 0x74a   : > { %4917 = vmatprep.subr.bf16.mxu1 %v12155_v36  ;;  %v12194_v36 = vld [vmem:[%s15497_s7 + $0x124] ss:$8 sps:$4 sm:$0xff]  }
 0x74c   : > { %11523 = vmatpush3.bf16.msra.mxu0 %v14071_v19 }
 0x74d   : > { %11524 = vmatprep.subr.bf16.mxu0 %v12535_v47  ;;  %4918 = vmatpush1.bf16.msra.mxu1 %v12153_v16  ;;  %v12192_v16 = vld [vmem:[%s15497_s7 + $0x120] ss:$8 sps:$4 sm:$0xff]  }
 0x74e   : > { %4919 = vmatprep.subr.bf16.mxu1 %v12158_v60  ;;  %v12197_v60 = vld [vmem:[%s15497_s7 + $0x134] ss:$8 sps:$4 sm:$0xff]  }
 0x750   : > { %11525 = vmatpush3.bf16.msra.mxu0 %v14085_v27 }
 0x751   : > { %11526 = vmatprep.subr.bf16.mxu0 %v12535_v47  ;;  %4920 = vmatpush1.bf16.msra.mxu1 %v12156_v1  ;;  %v12200_v1 = vld [vmem:[%s15497_s7 + $0x144] ss:$8 sps:$4 sm:$0xff]  }
 0x752   : > { %4921 = vmatprep.subr.bf16.mxu1 %v12161_v41  ;;  %v12198_v41 = vld [vmem:[%s15497_s7 + $0x140] ss:$8 sps:$4 sm:$0xff]  }
 0x754   : > { %11527 = vmatpush3.bf16.msra.mxu0 %v14083_v31 }
 0x755   : > { %11532 = vmatprep.subr.bf16.mxu0 %v12535_v47  ;;  %4922 = vmatpush1.bf16.msra.mxu1 %v12159_v51  ;;  %v12203_v51 = vld [vmem:[%s15497_s7 + $0x154] ss:$8 sps:$4 sm:$0xff]  }
 0x756   : > { %5030 = vmatprep.subr.bf16.mxu1 %v12164_v9  ;;  %v12201_v9 = vld [vmem:[%s15497_s7 + $0x150] ss:$8 sps:$4 sm:$0xff]  }
 0x757   : > { %11529 = vmatmul.mubr.msk.bf16.vlgmr.msra.gmra.mrb[132].mxu0 %vm1163_vm0, %v12128_v24  ;;  %v12182_v24 = vld [vmem:[%s15497_s7 + $0x64] ss:$8 sps:$4 sm:$0xff]  }
 0x758   : > { %11533 = vmatpush3.bf16.msra.mxu0 %v14073_v12  ;;  %11540 = vmatprep.mubr.msk.bf16.mxu0 %vm12536_vm1, %v12535_v47 }
 0x759   : > { %11534 = vmatprep.subr.bf16.mxu0 %v12535_v47 }
 0x75c   : > { %11535 = vmatpush3.bf16.msra.mxu0 %v14071_v19 }
 0x75d   : > { %11536 = vmatprep.subr.bf16.mxu0 %v12535_v47 }
 0x760   : > { %11537 = vmatpush3.bf16.msra.mxu0 %v14085_v27 }
 0x761   : > { %11538 = vmatprep.subr.bf16.mxu0 %v12535_v47 }
 0x764   : > { %11539 = vmatpush3.bf16.msra.mxu0 %v14083_v31 }
 0x765   : > { %11544 = vmatprep.subr.bf16.mxu0 %v12535_v47 }
 0x767   : > { %11541 = vmatmul.mubr.msk.bf16.vlgmr.msra.gmra.mrb[136].mxu0 %vm1163_vm0, %v12129_v8  ;;  %v12180_v8 = vld [vmem:[%s15497_s7 + $0x60] ss:$8 sps:$4 sm:$0xff]  }
 0x768   : > { %11545 = vmatpush3.bf16.msra.mxu0 %v14073_v12  ;;  %11552 = vmatprep.mubr.msk.bf16.mxu0 %vm12536_vm1, %v12535_v47 }
 0x769   : > { %11546 = vmatprep.subr.bf16.mxu0 %v12535_v47 }
 0x76c   : > { %11547 = vmatpush3.bf16.msra.mxu0 %v14071_v19 }
 0x76d   : > { %11548 = vmatprep.subr.bf16.mxu0 %v12535_v47 }
 0x770   : > { %11549 = vmatpush3.bf16.msra.mxu0 %v14085_v27 }
 0x771   : > { %11550 = vmatprep.subr.bf16.mxu0 %v12535_v47 }
 0x774   : > { %11551 = vmatpush3.bf16.msra.mxu0 %v14083_v31 }
 0x775   : > { %11556 = vmatprep.subr.bf16.mxu0 %v12535_v47 }
 0x777   : > { %11553 = vmatmul.mubr.msk.bf16.vlgmr.msra.gmra.mrb[140].mxu0 %vm1163_vm0, %v12130_v50 }
 0x778   : > { %11557 = vmatpush3.bf16.msra.mxu0 %v14073_v12  ;;  %11564 = vmatprep.mubr.msk.bf16.mxu0 %vm12536_vm1, %v12535_v47 }
 0x779   : > { %11558 = vmatprep.subr.bf16.mxu0 %v12535_v47 }
 0x77c   : > { %11559 = vmatpush3.bf16.msra.mxu0 %v14071_v19 }
 0x77d   : > { %11560 = vmatprep.subr.bf16.mxu0 %v12535_v47 }
 0x780   : > { %11561 = vmatpush3.bf16.msra.mxu0 %v14085_v27 }
 0x781   : > { %11562 = vmatprep.subr.bf16.mxu0 %v12535_v47 }
 0x784   : > { %11563 = vmatpush3.bf16.msra.mxu0 %v14083_v31 }
 0x785   : > { %11568 = vmatprep.subr.bf16.mxu0 %v12535_v47 }
 0x787   : > { %11565 = vmatmul.mubr.msk.bf16.vlgmr.msra.gmra.mrb[144].mxu0 %vm1163_vm0, %v12131_v25  ;;  %v12195_v25 = vld [vmem:[%s15497_s7 + $0x130] ss:$8 sps:$4 sm:$0xff]  }
 0x788   : > { %11569 = vmatpush3.bf16.msra.mxu0 %v14073_v12  ;;  %11576 = vmatprep.mubr.msk.bf16.mxu0 %vm12536_vm1, %v12535_v47 }
 0x789   : > { %11570 = vmatprep.subr.bf16.mxu0 %v12535_v47 }
 0x78c   : > { %11571 = vmatpush3.bf16.msra.mxu0 %v14071_v19 }
 0x78d   : > { %11572 = vmatprep.subr.bf16.mxu0 %v12535_v47 }
 0x790   : > { %11573 = vmatpush3.bf16.msra.mxu0 %v14085_v27 }
 0x791   : > { %11574 = vmatprep.subr.bf16.mxu0 %v12535_v47 }
 0x794   : > { %11575 = vmatpush3.bf16.msra.mxu0 %v14083_v31 }
 0x795   : > { %11580 = vmatprep.subr.bf16.mxu0 %v12535_v47 }
 0x797   : > { %11577 = vmatmul.mubr.msk.bf16.vlgmr.msra.gmra.mrb[148].mxu0 %vm1163_vm0, %v12132_v40  ;;  %v12206_v40 = vld [vmem:[%s15497_s7 + $0x164] ss:$8 sps:$4 sm:$0xff]  }
 0x798   : > { %11581 = vmatpush3.bf16.msra.mxu0 %v14073_v12  ;;  %11588 = vmatprep.mubr.msk.bf16.mxu0 %vm12536_vm1, %v12535_v47 }
 0x799   : > { %11582 = vmatprep.subr.bf16.mxu0 %v12535_v47 }
 0x79c   : > { %11583 = vmatpush3.bf16.msra.mxu0 %v14071_v19 }
 0x79d   : > { %11584 = vmatprep.subr.bf16.mxu0 %v12535_v47 }
 0x7a0   : > { %11585 = vmatpush3.bf16.msra.mxu0 %v14085_v27 }
 0x7a1   : > { %11586 = vmatprep.subr.bf16.mxu0 %v12535_v47 }
 0x7a4   : > { %11587 = vmatpush3.bf16.msra.mxu0 %v14083_v31 }
 0x7a5   : > { %11592 = vmatprep.subr.bf16.mxu0 %v12535_v47 }
 0x7a7   : > { %11589 = vmatmul.mubr.msk.bf16.vlgmr.msra.gmra.mrb[152].mxu0 %vm1163_vm0, %v12133_v48  ;;  %v12204_v48 = vld [vmem:[%s15497_s7 + $0x160] ss:$8 sps:$4 sm:$0xff]  }
 0x7a8   : > { %11593 = vmatpush3.bf16.msra.mxu0 %v14073_v12  ;;  %11600 = vmatprep.mubr.msk.bf16.mxu0 %vm12536_vm1, %v12535_v47 }
 0x7a9   : > { %11594 = vmatprep.subr.bf16.mxu0 %v12535_v47 }
 0x7ac   : > { %11595 = vmatpush3.bf16.msra.mxu0 %v14071_v19 }
 0x7ad   : > { %11596 = vmatprep.subr.bf16.mxu0 %v12535_v47 }
 0x7b0   : > { %11597 = vmatpush3.bf16.msra.mxu0 %v14085_v27 }
 0x7b1   : > { %11598 = vmatprep.subr.bf16.mxu0 %v12535_v47 }
 0x7b4   : > { %11599 = vmatpush3.bf16.msra.mxu0 %v14083_v31 }
 0x7b5   : > { %11604 = vmatprep.subr.bf16.mxu0 %v12535_v47 }
 0x7b7   : > { %11601 = vmatmul.mubr.msk.bf16.vlgmr.msra.gmra.mrb[156].mxu0 %vm1163_vm0, %v12134_v34  ;;  %v12209_v34 = vld [vmem:[%s15497_s7 + $0x174] ss:$8 sps:$4 sm:$0xff]  }
 0x7b8   : > { %11605 = vmatpush3.bf16.msra.mxu0 %v14073_v12  ;;  %11612 = vmatprep.mubr.msk.bf16.mxu0 %vm12536_vm1, %v12535_v47 }
 0x7b9   : > { %11606 = vmatprep.subr.bf16.mxu0 %v12535_v47 }
 0x7bc   : > { %11607 = vmatpush3.bf16.msra.mxu0 %v14071_v19 }
 0x7bd   : > { %11608 = vmatprep.subr.bf16.mxu0 %v12535_v47 }
 0x7c0   : > { %11609 = vmatpush3.bf16.msra.mxu0 %v14085_v27 }
 0x7c1   : > { %11610 = vmatprep.subr.bf16.mxu0 %v12535_v47 }
 0x7c4   : > { %11611 = vmatpush3.bf16.msra.mxu0 %v14083_v31 }
 0x7c5   : > { %11616 = vmatprep.subr.bf16.mxu0 %v12535_v47 }
 0x7c7   : > { %11613 = vmatmul.mubr.msk.bf16.vlgmr.msra.gmra.mrb[160].mxu0 %vm1163_vm0, %v12135_v6  ;;  %v12207_v6 = vld [vmem:[%s15497_s7 + $0x170] ss:$8 sps:$4 sm:$0xff]  }
 0x7c8   : > { %11617 = vmatpush3.bf16.msra.mxu0 %v14073_v12  ;;  %11624 = vmatprep.mubr.msk.bf16.mxu0 %vm12536_vm1, %v12535_v47 }
 0x7c9   : > { %11618 = vmatprep.subr.bf16.mxu0 %v12535_v47 }
 0x7cc   : > { %11619 = vmatpush3.bf16.msra.mxu0 %v14071_v19 }
 0x7cd   : > { %11620 = vmatprep.subr.bf16.mxu0 %v12535_v47 }
 0x7d0   : > { %11621 = vmatpush3.bf16.msra.mxu0 %v14085_v27 }
 0x7d1   : > { %11622 = vmatprep.subr.bf16.mxu0 %v12535_v47 }
 0x7d4   : > { %11623 = vmatpush3.bf16.msra.mxu0 %v14083_v31 }
 0x7d5   : > { %11628 = vmatprep.subr.bf16.mxu0 %v12535_v47 }
 0x7d7   : > { %11625 = vmatmul.mubr.msk.bf16.vlgmr.msra.gmra.mrb[164].mxu0 %vm1163_vm0, %v12136_v58 }
 0x7d8   : > { %11629 = vmatpush3.bf16.msra.mxu0 %v14073_v12  ;;  %11636 = vmatprep.mubr.msk.bf16.mxu0 %vm12536_vm1, %v12535_v47 }
 0x7d9   : > { %11630 = vmatprep.subr.bf16.mxu0 %v12535_v47 }
 0x7dc   : > { %11631 = vmatpush3.bf16.msra.mxu0 %v14071_v19 }
 0x7dd   : > { %11632 = vmatprep.subr.bf16.mxu0 %v12535_v47 }
 0x7e0   : > { %11633 = vmatpush3.bf16.msra.mxu0 %v14085_v27 }
 0x7e1   : > { %11634 = vmatprep.subr.bf16.mxu0 %v12535_v47 }
 0x7e4   : > { %11635 = vmatpush3.bf16.msra.mxu0 %v14083_v31 }
 0x7e5   : > { %11640 = vmatprep.subr.bf16.mxu0 %v12535_v47 }
 0x7e7   : > { %11637 = vmatmul.mubr.msk.bf16.vlgmr.msra.gmra.mrb[168].mxu0 %vm1163_vm0, %v12137_v30  ;;  %v12212_v30 = vld [vmem:[%s15497_s7 + $0x184] ss:$8 sps:$4 sm:$0xff]  }
 0x7e8   : > { %11641 = vmatpush3.bf16.msra.mxu0 %v14073_v12  ;;  %11648 = vmatprep.mubr.msk.bf16.mxu0 %vm12536_vm1, %v12535_v47 }
 0x7e9   : > { %11642 = vmatprep.subr.bf16.mxu0 %v12535_v47 }
 0x7ec   : > { %11643 = vmatpush3.bf16.msra.mxu0 %v14071_v19 }
 0x7ed   : > { %11644 = vmatprep.subr.bf16.mxu0 %v12535_v47 }
 0x7f0   : > { %11645 = vmatpush3.bf16.msra.mxu0 %v14085_v27  ;;  %v12174_v27 = vld [vmem:[%s15497_s7 + $0x40] ss:$8 sps:$4 sm:$0xff]  }
 0x7f1   : > { %11646 = vmatprep.subr.bf16.mxu0 %v12535_v47 }
 0x7f4   : > { %11647 = vmatpush3.bf16.msra.mxu0 %v14083_v31 }
 0x7fa   : > { %v14345_v5 = vpop.f32.mrb[176].mxu1  ;;  %v14347_v29 = vpop.f32.mrb[120].mxu0 }
 0x7fb   : > { %v11470_v56 = vpop.f32.mrb[177].mxu1  ;;  %v11494_v44 = vpop.f32.mrb[121].mxu0 }
 0x7fc   : > { %v4736_v53 = vpop.f32.mrb[178].mxu1  ;;  %v14349_v49 = vpop.f32.mrb[122].mxu0 }
 0x7fd   : > { %v4740_v20 = vpack.c.bf16 %v4736_v53, %v14345_v5  ;;  %v11471_v42 = vpop.f32.mrb[179].mxu1  ;;  %v5125_v26 = vpack.c.bf16 %v14349_v49, %v14347_v29  ;;  %v11495_v19 = vpop.f32.mrb[123].mxu0  ;;  %v12210_v53 = vld [vmem:[%s15497_s7 + $0x180] ss:$8 sps:$4 sm:$0xff]   ;;  %v12221_v29 = vld [vmem:[%s15497_s7 + $0x1b4] ss:$8 sps:$4 sm:$0xff]  }
 0x7fe   : > { %v12215_v42 = vld [vmem:[%s15497_s7 + $0x194] ss:$8 sps:$4 sm:$0xff]   ;;  %v12213_v19 = vld [vmem:[%s15497_s7 + $0x190] ss:$8 sps:$4 sm:$0xff]  }
 0x7ff   : > { %v12219_v49 = vld [vmem:[%s15497_s7 + $0x1b0] ss:$8 sps:$4 sm:$0xff]  }
 0x80a   : > { %v4802_v11 = vpop.f32.mrb[180].mxu1  ;;  %v14354_v47 = vpop.f32.mrb[124].mxu0 }
 0x80b   : > { %v11482_v12 = vpop.f32.mrb[181].mxu1  ;;  %v11506_v28 = vpop.f32.mrb[125].mxu0 }
 0x80c   : > { %v4805_v45 = vpop.f32.mrb[182].mxu1  ;;  %v14359_v57 = vpop.f32.mrb[126].mxu0  ;;  %v12216_v12 = vld [vmem:[%s15497_s7 + $0x1a0] ss:$8 sps:$4 sm:$0xff]  }
 0x80d   : > { %v4809_v3 = vpack.c.bf16 %v4805_v45, %v4802_v11  ;;  %v11483_v46 = vpop.f32.mrb[183].mxu1  ;;  %v5322_v61 = vpack.c.bf16 %v14359_v57, %v14354_v47  ;;  %v11507_v0 = vpop.f32.mrb[127].mxu0  ;;  %v12218_v11 = vld [vmem:[%s15497_s7 + $0x1a4] ss:$8 sps:$4 sm:$0xff]   ;;  %v12222_v28 = vld [vmem:[%s15497_s7 + $0x1c0] ss:$8 sps:$4 sm:$0xff]  }
 0x80e   : > { %v12227_v45 = vld [vmem:[%s15497_s7 + $0x1d4] ss:$8 sps:$4 sm:$0xff]   ;;  %v12231_v0 = vld [vmem:[%s15497_s7 + $0x1f0] ss:$8 sps:$4 sm:$0xff]  }
 0x80f   : > { %4940 = vmatmul.mubr.bf16.vlgmr.msra.gmra.mrb[184].mxu1 %v4809_v3  ;;  %v12230_v3 = vld [vmem:[%s15497_s7 + $0x1e4] ss:$8 sps:$4 sm:$0xff]   ;;  %v12233_v46 = vld [vmem:[%s15497_s7 + $0x1f4] ss:$8 sps:$4 sm:$0xff]   ;;  %v12243_v57 = vld [vmem:[%s15497_s7 + $0x230] ss:$8 sps:$4 sm:$0xff]  }
 0x810   : > { %5031 = vmatpush1.bf16.msra.mxu1 %v12162_v55  ;;  %5062 = vmatprep.mubr.bf16.mxu1 %v12537_v14  ;;  %v12225_v55 = vld [vmem:[%s15497_s7 + $0x1d0] ss:$8 sps:$4 sm:$0xff]   ;;  %v12245_v47 = vld [vmem:[%s15497_s7 + $0x234] ss:$8 sps:$4 sm:$0xff]  }
 0x811   : > { %5032 = vmatprep.subr.bf16.mxu1 %v12167_v43  ;;  %v12228_v43 = vld [vmem:[%s15497_s7 + $0x1e0] ss:$8 sps:$4 sm:$0xff]  }
 0x814   : > { %5033 = vmatpush1.bf16.msra.mxu1 %v12165_v15 }
 0x815   : > { %5034 = vmatprep.subr.bf16.mxu1 %v12170_v18  ;;  %v12236_v18 = vld [vmem:[%s15497_s7 + $0x204] ss:$8 sps:$4 sm:$0xff]  }
 0x818   : > { %5035 = vmatpush1.bf16.msra.mxu1 %v12168_v37 }
 0x819   : > { %5036 = vmatprep.subr.bf16.mxu1 %v12173_v54 }
 0x81a   : > { %v14385_v31 = vpop.f32.mrb[128].mxu0 }
 0x81b   : > { %v11518_v35 = vpop.f32.mrb[129].mxu0 }
 0x81c   : > { %5037 = vmatpush1.bf16.msra.mxu1 %v12171_v10  ;;  %v14390_v62 = vpop.f32.mrb[130].mxu0 }
 0x81d   : > { %5038 = vmatprep.subr.bf16.mxu1 %v12176_v13  ;;  %v5519_v39 = vpack.c.bf16 %v14390_v62, %v14385_v31  ;;  %v11519_v59 = vpop.f32.mrb[131].mxu0  ;;  %v12234_v13 = vld [vmem:[%s15497_s7 + $0x200] ss:$8 sps:$4 sm:$0xff]   ;;  %v12269_v62 = vld [vmem:[%s15497_s7 + $0x2b4] ss:$8 sps:$4 sm:$0xff]  }
 0x81e   : > { %v12242_v59 = vld [vmem:[%s15497_s7 + $0x224] ss:$8 sps:$4 sm:$0xff]   ;;  %v12264_v31 = vld [vmem:[%s15497_s7 + $0x2a0] ss:$8 sps:$4 sm:$0xff]  }
 0x820   : > { %5039 = vmatpush1.bf16.msra.mxu1 %v12174_v27  ;;  %v12239_v27 = vld [vmem:[%s15497_s7 + $0x214] ss:$8 sps:$4 sm:$0xff]  }
 0x821   : > { %5040 = vmatprep.subr.bf16.mxu1 %v12179_v22  ;;  %v12237_v22 = vld [vmem:[%s15497_s7 + $0x210] ss:$8 sps:$4 sm:$0xff]  }
 0x824   : > { %5041 = vmatpush1.bf16.msra.mxu1 %v12177_v33  ;;  %v12240_v33 = vld [vmem:[%s15497_s7 + $0x220] ss:$8 sps:$4 sm:$0xff]  }
 0x825   : > { %5042 = vmatprep.subr.bf16.mxu1 %v12182_v24  ;;  %v12246_v24 = vld [vmem:[%s15497_s7 + $0x240] ss:$8 sps:$4 sm:$0xff]  }
 0x828   : > { %5043 = vmatpush1.bf16.msra.mxu1 %v12180_v8  ;;  %v12251_v8 = vld [vmem:[%s15497_s7 + $0x254] ss:$8 sps:$4 sm:$0xff]  }
 0x829   : > { %5044 = vmatprep.subr.bf16.mxu1 %v12185_v63  ;;  %v12249_v63 = vld [vmem:[%s15497_s7 + $0x250] ss:$8 sps:$4 sm:$0xff]  }
 0x82a   : > { %v14415_v21 = vpop.f32.mrb[132].mxu0 }
 0x82b   : > { %v11530_v50 = vpop.f32.mrb[133].mxu0 }
 0x82c   : > { %5045 = vmatpush1.bf16.msra.mxu1 %v12183_v17  ;;  %v14420_v2 = vpop.f32.mrb[134].mxu0  ;;  %v12254_v17 = vld [vmem:[%s15497_s7 + $0x264] ss:$8 sps:$4 sm:$0xff]   ;;  %v12257_v50 = vld [vmem:[%s15497_s7 + $0x274] ss:$8 sps:$4 sm:$0xff]  }
 0x82d   : > { %5223 = vmatprep.subr.bf16.mxu1 %v12188_v23  ;;  %v5716_v52 = vpack.c.bf16 %v14420_v2, %v14415_v21  ;;  %v11531_v32 = vpop.f32.mrb[135].mxu0  ;;  %v12252_v23 = vld [vmem:[%s15497_s7 + $0x260] ss:$8 sps:$4 sm:$0xff]   ;;  %v12293_v21 = vld [vmem:[%s15497_s7 + $0x334] ss:$8 sps:$4 sm:$0xff]  }
 0x82e   : > { %v12260_v32 = vld [vmem:[%s15497_s7 + $0x284] ss:$8 sps:$4 sm:$0xff]   ;;  %v12291_v2 = vld [vmem:[%s15497_s7 + $0x330] ss:$8 sps:$4 sm:$0xff]  }
 0x82f   : > { %5063 = vmatmul.mubr.bf16.vlgmr.msra.gmra.mrb[184].mxu1 %v4740_v20 }
 0x830   : > { %5224 = vmatpush1.bf16.msra.mxu1 %v12186_v7  ;;  %5255 = vmatprep.mubr.bf16.mxu1 %v12537_v14  ;;  %v12255_v7 = vld [vmem:[%s15497_s7 + $0x270] ss:$8 sps:$4 sm:$0xff]  }
 0x831   : > { %5225 = vmatprep.subr.bf16.mxu1 %v12191_v38 }
 0x834   : > { %5226 = vmatpush1.bf16.msra.mxu1 %v12189_v4 }
 0x835   : > { %5227 = vmatprep.subr.bf16.mxu1 %v12194_v36 }
 0x838   : > { %5228 = vmatpush1.bf16.msra.mxu1 %v12192_v16 }
 0x839   : > { %5229 = vmatprep.subr.bf16.mxu1 %v12197_v60  ;;  %v12258_v60 = vld [vmem:[%s15497_s7 + $0x280] ss:$8 sps:$4 sm:$0xff]  }
 0x83a   : > { %v14467_v58 = vpop.f32.mrb[136].mxu0 }
 0x83b   : > { %v11542_v5 = vpop.f32.mrb[137].mxu0 }
 0x83c   : > { %5230 = vmatpush1.bf16.msra.mxu1 %v12195_v25  ;;  %v14472_v56 = vpop.f32.mrb[138].mxu0  ;;  %v12276_v5 = vld [vmem:[%s15497_s7 + $0x2e0] ss:$8 sps:$4 sm:$0xff]  }
 0x83d   : > { %5231 = vmatprep.subr.bf16.mxu1 %v12200_v1  ;;  %v11543_v44 = vpop.f32.mrb[139].mxu0  ;;  %v5913_v20 = vpack.c.bf16 %v14472_v56, %v14467_v58  ;;  %v12263_v1 = vld [vmem:[%s15497_s7 + $0x294] ss:$8 sps:$4 sm:$0xff]   ;;  %v12315_v56 = vld [vmem:[%s15497_s7 + $0x3b0] ss:$8 sps:$4 sm:$0xff]  }
 0x83e   : > { %v12281_v44 = vld [vmem:[%s15497_s7 + $0x2f4] ss:$8 sps:$4 sm:$0xff]  }
 0x83f   : > { %v12317_v58 = vld [vmem:[%s15497_s7 + $0x3b4] ss:$8 sps:$4 sm:$0xff]  }
 0x840   : > { %5232 = vmatpush1.bf16.msra.mxu1 %v12198_v41  ;;  %v12261_v41 = vld [vmem:[%s15497_s7 + $0x290] ss:$8 sps:$4 sm:$0xff]  }
 0x841   : > { %5233 = vmatprep.subr.bf16.mxu1 %v12203_v51  ;;  %v12266_v51 = vld [vmem:[%s15497_s7 + $0x2a4] ss:$8 sps:$4 sm:$0xff]  }
 0x844   : > { %5234 = vmatpush1.bf16.msra.mxu1 %v12201_v9  ;;  %v12363_v9 = vld [vmem:[%s15496_s6 + $0x78] sm:$0xff]  }
 0x845   : > { %5235 = vmatprep.subr.bf16.mxu1 %v12206_v40  ;;  %11649 = vmatmul.mubr.msk.bf16.vlgmr.msra.gmra.mrb[172].mxu0 %vm1163_vm0, %v12363_v9  ;;  %v12272_v40 = vld [vmem:[%s15497_s7 + $0x2c4] ss:$8 sps:$4 sm:$0xff]   ;;  %vm9091_vm0 = vcmask 3072  }
 0x846   : > { %7898 = vmatprep.mubr.bf16.mxu0 %v12537_v14 }
 0x848   : > { %5236 = vmatpush1.bf16.msra.mxu1 %v12204_v48  ;;  %v12270_v48 = vld [vmem:[%s15497_s7 + $0x2c0] ss:$8 sps:$4 sm:$0xff]  }
 0x849   : > { %5237 = vmatprep.subr.bf16.mxu1 %v12209_v34  ;;  %v12275_v34 = vld [vmem:[%s15497_s7 + $0x2d4] ss:$8 sps:$4 sm:$0xff]  }
 0x84a   : > { %v14525_v15 = vpop.f32.mrb[140].mxu0 }
 0x84b   : > { %v11554_v37 = vpop.f32.mrb[141].mxu0 }
 0x84c   : > { %5238 = vmatpush1.bf16.msra.mxu1 %v12207_v6  ;;  %v14530_v54 = vpop.f32.mrb[142].mxu0  ;;  %v12273_v6 = vld [vmem:[%s15497_s7 + $0x2d0] ss:$8 sps:$4 sm:$0xff]   ;;  %v12300_v37 = vld [vmem:[%s15497_s7 + $0x360] ss:$8 sps:$4 sm:$0xff]  }
 0x84d   : > { %5420 = vmatprep.subr.bf16.mxu1 %v12212_v30  ;;  %v11555_v10 = vpop.f32.mrb[143].mxu0  ;;  %v6110_v35 = vpack.c.bf16 %v14530_v54, %v14525_v15  ;;  %v12278_v30 = vld [vmem:[%s15497_s7 + $0x2e4] ss:$8 sps:$4 sm:$0xff]   ;;  %v12341_v15 = vld [vmem:[%s15497_s7 + $0x434] ss:$8 sps:$4 sm:$0xff]  }
 0x84e   : > { %v12305_v10 = vld [vmem:[%s15497_s7 + $0x374] ss:$8 sps:$4 sm:$0xff]   ;;  %v12339_v54 = vld [vmem:[%s15497_s7 + $0x430] ss:$8 sps:$4 sm:$0xff]  }
 0x84f   : > { %5256 = vmatmul.mubr.bf16.vlgmr.msra.gmra.mrb[184].mxu1 %v5125_v26  ;;  %v12224_v26 = vld [vmem:[%s15497_s7 + $0x1c4] ss:$8 sps:$4 sm:$0xff]  }
 0x850   : > { %5421 = vmatpush1.bf16.msra.mxu1 %v12210_v53  ;;  %5452 = vmatprep.mubr.bf16.mxu1 %v12537_v14  ;;  %v12279_v53 = vld [vmem:[%s15497_s7 + $0x2f0] ss:$8 sps:$4 sm:$0xff]  }
 0x851   : > { %5422 = vmatprep.subr.bf16.mxu1 %v12215_v42 }
 0x854   : > { %5423 = vmatpush1.bf16.msra.mxu1 %v12213_v19  ;;  %v12284_v19 = vld [vmem:[%s15497_s7 + $0x304] ss:$8 sps:$4 sm:$0xff]  }
 0x855   : > { %5424 = vmatprep.subr.bf16.mxu1 %v12218_v11 }
 0x858   : > { %5425 = vmatpush1.bf16.msra.mxu1 %v12216_v12 }
 0x859   : > { %5426 = vmatprep.subr.bf16.mxu1 %v12221_v29 }
 0x85a   : > { %v14583_v38 = vpop.f32.mrb[144].mxu0 }
 0x85b   : > { %v11566_v4 = vpop.f32.mrb[145].mxu0 }
 0x85c   : > { %5427 = vmatpush1.bf16.msra.mxu1 %v12219_v49  ;;  %v14588_v36 = vpop.f32.mrb[146].mxu0  ;;  %v12282_v49 = vld [vmem:[%s15497_s7 + $0x300] ss:$8 sps:$4 sm:$0xff]  }
 0x85d   : > { %5428 = vmatprep.subr.bf16.mxu1 %v12224_v26  ;;  %v11567_v16 = vpop.f32.mrb[147].mxu0  ;;  %v6307_v25 = vpack.c.bf16 %v14588_v36, %v14583_v38  ;;  %v12324_v4 = vld [vmem:[%s15497_s7 + $0x3e0] ss:$8 sps:$4 sm:$0xff]   ;;  %v12366_v38 = vld [vmem:[%s15497_s7 + $0x4b4] ss:$8 sps:$4 sm:$0xff]  }
 0x85e   : > { %v12329_v16 = vld [vmem:[%s15497_s7 + $0x3f4] ss:$8 sps:$4 sm:$0xff]   ;;  %v12364_v36 = vld [vmem:[%s15497_s7 + $0x4b0] ss:$8 sps:$4 sm:$0xff]  }
 0x860   : > { %5429 = vmatpush1.bf16.msra.mxu1 %v12222_v28  ;;  %v12287_v28 = vld [vmem:[%s15497_s7 + $0x314] ss:$8 sps:$4 sm:$0xff]  }
 0x861   : > { %5430 = vmatprep.subr.bf16.mxu1 %v12227_v45  ;;  %v12285_v45 = vld [vmem:[%s15497_s7 + $0x310] ss:$8 sps:$4 sm:$0xff]  }
 0x864   : > { %5431 = vmatpush1.bf16.msra.mxu1 %v12225_v55  ;;  %v12290_v55 = vld [vmem:[%s15497_s7 + $0x324] ss:$8 sps:$4 sm:$0xff]  }
 0x865   : > { %5432 = vmatprep.subr.bf16.mxu1 %v12230_v3  ;;  %v12288_v3 = vld [vmem:[%s15497_s7 + $0x320] ss:$8 sps:$4 sm:$0xff]  }
 0x868   : > { %5433 = vmatpush1.bf16.msra.mxu1 %v12228_v43  ;;  %v12294_v43 = vld [vmem:[%s15497_s7 + $0x340] ss:$8 sps:$4 sm:$0xff]  }
 0x869   : > { %5434 = vmatprep.subr.bf16.mxu1 %v12233_v46  ;;  %v12299_v46 = vld [vmem:[%s15497_s7 + $0x354] ss:$8 sps:$4 sm:$0xff]  }
 0x86a   : > { %v14646_v42 = vpop.f32.mrb[148].mxu0 }
 0x86b   : > { %v11578_v11 = vpop.f32.mrb[149].mxu0 }
 0x86c   : > { %5435 = vmatpush1.bf16.msra.mxu1 %v12231_v0  ;;  %v14651_v12 = vpop.f32.mrb[150].mxu0  ;;  %v12297_v0 = vld [vmem:[%s15497_s7 + $0x350] ss:$8 sps:$4 sm:$0xff]   ;;  %v12353_v11 = vld [vmem:[%s15497_s7 + $0x474] ss:$8 sps:$4 sm:$0xff]  }
 0x86d   : > { %5617 = vmatprep.subr.bf16.mxu1 %v12236_v18  ;;  %v11579_v29 = vpop.f32.mrb[151].mxu0  ;;  %v6504_v26 = vpack.c.bf16 %v14651_v12, %v14646_v42  ;;  %v12302_v18 = vld [vmem:[%s15497_s7 + $0x364] ss:$8 sps:$4 sm:$0xff]   ;;  %v12390_v42 = vld [vmem:[%s15497_s7 + $0x534] ss:$8 sps:$4 sm:$0xff]  }
 0x86e   : > { %v12351_v29 = vld [vmem:[%s15497_s7 + $0x470] ss:$8 sps:$4 sm:$0xff]  }
 0x86f   : > { %5453 = vmatmul.mubr.bf16.vlgmr.msra.gmra.mrb[184].mxu1 %v5322_v61  ;;  %v12248_v61 = vld [vmem:[%s15497_s7 + $0x244] ss:$8 sps:$4 sm:$0xff]   ;;  %v12388_v12 = vld [vmem:[%s15497_s7 + $0x530] ss:$8 sps:$4 sm:$0xff]  }
 0x870   : > { %5618 = vmatpush1.bf16.msra.mxu1 %v12234_v13  ;;  %5649 = vmatprep.mubr.bf16.mxu1 %v12537_v14  ;;  %v12303_v13 = vld [vmem:[%s15497_s7 + $0x370] ss:$8 sps:$4 sm:$0xff]  }
 0x871   : > { %5619 = vmatprep.subr.bf16.mxu1 %v12239_v27 }
 0x874   : > { %5620 = vmatpush1.bf16.msra.mxu1 %v12237_v22  ;;  %v12308_v22 = vld [vmem:[%s15497_s7 + $0x384] ss:$8 sps:$4 sm:$0xff]  }
 0x875   : > { %5621 = vmatprep.subr.bf16.mxu1 %v12242_v59 }
 0x878   : > { %5622 = vmatpush1.bf16.msra.mxu1 %v12240_v33 }
 0x879   : > { %5623 = vmatprep.subr.bf16.mxu1 %v12245_v47 }
 0x87a   : > { %v14704_v27 = vpop.f32.mrb[152].mxu0 }
 0x87b   : > { %v11590_v59 = vpop.f32.mrb[153].mxu0 }
 0x87c   : > { %5624 = vmatpush1.bf16.msra.mxu1 %v12243_v57  ;;  %v14709_v33 = vpop.f32.mrb[154].mxu0  ;;  %v12306_v57 = vld [vmem:[%s15497_s7 + $0x380] ss:$8 sps:$4 sm:$0xff]   ;;  %v12378_v59 = vld [vmem:[%s15497_s7 + $0x4f4] ss:$8 sps:$4 sm:$0xff]  }
 0x87d   : > { %5625 = vmatprep.subr.bf16.mxu1 %v12248_v61  ;;  %v11591_v47 = vpop.f32.mrb[155].mxu0  ;;  %v6701_v61 = vpack.c.bf16 %v14709_v33, %v14704_v27  ;;  %v12414_v27 = vld [vmem:[%s15497_s7 + $0x5b4] ss:$8 sps:$4 sm:$0xff]   ;;  %v12412_v33 = vld [vmem:[%s15497_s7 + $0x5b0] ss:$8 sps:$4 sm:$0xff]  }
 0x87e   : > { %v12376_v47 = vld [vmem:[%s15497_s7 + $0x4f0] ss:$8 sps:$4 sm:$0xff]  }
 0x880   : > { %5626 = vmatpush1.bf16.msra.mxu1 %v12246_v24  ;;  %v12311_v24 = vld [vmem:[%s15497_s7 + $0x394] ss:$8 sps:$4 sm:$0xff]  }
 0x881   : > { %5627 = vmatprep.subr.bf16.mxu1 %v12251_v8  ;;  %v12309_v8 = vld [vmem:[%s15497_s7 + $0x390] ss:$8 sps:$4 sm:$0xff]  }
 0x884   : > { %5628 = vmatpush1.bf16.msra.mxu1 %v12249_v63  ;;  %v12314_v63 = vld [vmem:[%s15497_s7 + $0x3a4] ss:$8 sps:$4 sm:$0xff]  }
 0x885   : > { %5629 = vmatprep.subr.bf16.mxu1 %v12254_v17  ;;  %v12312_v17 = vld [vmem:[%s15497_s7 + $0x3a0] ss:$8 sps:$4 sm:$0xff]  }
 0x888   : > { %5630 = vmatpush1.bf16.msra.mxu1 %v12252_v23  ;;  %v12318_v23 = vld [vmem:[%s15497_s7 + $0x3c0] ss:$8 sps:$4 sm:$0xff]  }
 0x889   : > { %5631 = vmatprep.subr.bf16.mxu1 %v12257_v50  ;;  %v12323_v50 = vld [vmem:[%s15497_s7 + $0x3d4] ss:$8 sps:$4 sm:$0xff]  }
 0x88c   : > { %5632 = vmatpush1.bf16.msra.mxu1 %v12255_v7  ;;  %v12321_v7 = vld [vmem:[%s15497_s7 + $0x3d0] ss:$8 sps:$4 sm:$0xff]  }
 0x88d   : > { %5814 = vmatprep.subr.bf16.mxu1 %v12260_v32  ;;  %v12326_v32 = vld [vmem:[%s15497_s7 + $0x3e4] ss:$8 sps:$4 sm:$0xff]  }
 0x88f   : > { %5650 = vmatmul.mubr.bf16.vlgmr.msra.gmra.mrb[184].mxu1 %v5519_v39  ;;  %v12267_v39 = vld [vmem:[%s15497_s7 + $0x2b0] ss:$8 sps:$4 sm:$0xff]  }
 0x890   : > { %5815 = vmatpush1.bf16.msra.mxu1 %v12258_v60  ;;  %5846 = vmatprep.mubr.bf16.mxu1 %v12537_v14  ;;  %v12327_v60 = vld [vmem:[%s15497_s7 + $0x3f0] ss:$8 sps:$4 sm:$0xff]  }
 0x891   : > { %5816 = vmatprep.subr.bf16.mxu1 %v12263_v1  ;;  %v14762_v1 = vpop.f32.mrb[156].mxu0 }
 0x894   : > { %5817 = vmatpush1.bf16.msra.mxu1 %v12261_v41  ;;  %v12332_v41 = vld [vmem:[%s15497_s7 + $0x404] ss:$8 sps:$4 sm:$0xff]  }
 0x895   : > { %5818 = vmatprep.subr.bf16.mxu1 %v12266_v51  ;;  %v11602_v51 = vpop.f32.mrb[157].mxu0 }
 0x896   : > { %v14767_v9 = vpop.f32.mrb[158].mxu0  ;;  %v12402_v51 = vld [vmem:[%s15497_s7 + $0x574] ss:$8 sps:$4 sm:$0xff]  }
 0x898   : > { %5819 = vmatpush1.bf16.msra.mxu1 %v12264_v31  ;;  %v11603_v31 = vpop.f32.mrb[159].mxu0 }
 0x899   : > { %5820 = vmatprep.subr.bf16.mxu1 %v12269_v62  ;;  %v12330_v62 = vld [vmem:[%s15497_s7 + $0x400] ss:$8 sps:$4 sm:$0xff]   ;;  %v12400_v31 = vld [vmem:[%s15497_s7 + $0x570] ss:$8 sps:$4 sm:$0xff]  }
 0x89c   : > { %5821 = vmatpush1.bf16.msra.mxu1 %v12267_v39  ;;  %v6898_v39 = vpack.c.bf16 %v14767_v9, %v14762_v1  ;;  %v12438_v1 = vld [vmem:[%s15497_s7 + $0x634] ss:$8 sps:$4 sm:$0xff]   ;;  %v12436_v9 = vld [vmem:[%s15497_s7 + $0x630] ss:$8 sps:$4 sm:$0xff]  }
 0x89d   : > { %5822 = vmatprep.subr.bf16.mxu1 %v12272_v40  ;;  %v12335_v40 = vld [vmem:[%s15497_s7 + $0x414] ss:$8 sps:$4 sm:$0xff]  }
 0x8a0   : > { %5823 = vmatpush1.bf16.msra.mxu1 %v12270_v48  ;;  %v12333_v48 = vld [vmem:[%s15497_s7 + $0x410] ss:$8 sps:$4 sm:$0xff]  }
 0x8a1   : > { %5824 = vmatprep.subr.bf16.mxu1 %v12275_v34  ;;  %v12338_v34 = vld [vmem:[%s15497_s7 + $0x424] ss:$8 sps:$4 sm:$0xff]  }
 0x8a4   : > { %5825 = vmatpush1.bf16.msra.mxu1 %v12273_v6  ;;  %v12336_v6 = vld [vmem:[%s15497_s7 + $0x420] ss:$8 sps:$4 sm:$0xff]  }
 0x8a5   : > { %5826 = vmatprep.subr.bf16.mxu1 %v12278_v30  ;;  %v12342_v30 = vld [vmem:[%s15497_s7 + $0x440] ss:$8 sps:$4 sm:$0xff]  }
 0x8a8   : > { %5827 = vmatpush1.bf16.msra.mxu1 %v12276_v5  ;;  %v12347_v5 = vld [vmem:[%s15497_s7 + $0x454] ss:$8 sps:$4 sm:$0xff]  }
 0x8a9   : > { %5828 = vmatprep.subr.bf16.mxu1 %v12281_v44  ;;  %v12345_v44 = vld [vmem:[%s15497_s7 + $0x450] ss:$8 sps:$4 sm:$0xff]  }
 0x8ac   : > { %5829 = vmatpush1.bf16.msra.mxu1 %v12279_v53  ;;  %v12350_v53 = vld [vmem:[%s15497_s7 + $0x464] ss:$8 sps:$4 sm:$0xff]  }
 0x8ad   : > { %6011 = vmatprep.subr.bf16.mxu1 %v12284_v19  ;;  %v12348_v19 = vld [vmem:[%s15497_s7 + $0x460] ss:$8 sps:$4 sm:$0xff]  }
 0x8af   : > { %5847 = vmatmul.mubr.bf16.vlgmr.msra.gmra.mrb[184].mxu1 %v5716_v52  ;;  %v12296_v52 = vld [vmem:[%s15497_s7 + $0x344] ss:$8 sps:$4 sm:$0xff]  }
 0x8b0   : > { %6012 = vmatpush1.bf16.msra.mxu1 %v12282_v49  ;;  %6043 = vmatprep.mubr.bf16.mxu1 %v12537_v14  ;;  %v14820_v49 = vpop.f32.mrb[160].mxu0 }
 0x8b1   : > { %6013 = vmatprep.subr.bf16.mxu1 %v12287_v28  ;;  %v12356_v28 = vld [vmem:[%s15497_s7 + $0x484] ss:$8 sps:$4 sm:$0xff]  }
 0x8b4   : > { %6014 = vmatpush1.bf16.msra.mxu1 %v12285_v45  ;;  %v11614_v45 = vpop.f32.mrb[161].mxu0 }
 0x8b5   : > { %6015 = vmatprep.subr.bf16.mxu1 %v12290_v55  ;;  %v14825_v55 = vpop.f32.mrb[162].mxu0  ;;  %v12426_v45 = vld [vmem:[%s15497_s7 + $0x5f4] ss:$8 sps:$4 sm:$0xff]  }
 0x8b8   : > { %6016 = vmatpush1.bf16.msra.mxu1 %v12288_v3  ;;  %v11615_v3 = vpop.f32.mrb[163].mxu0 }
 0x8b9   : > { %6017 = vmatprep.subr.bf16.mxu1 %v12293_v21  ;;  %v12354_v21 = vld [vmem:[%s15497_s7 + $0x480] ss:$8 sps:$4 sm:$0xff]  }
 0x8bc   : > { %6018 = vmatpush1.bf16.msra.mxu1 %v12291_v2  ;;  %v7095_v2 = vpack.c.bf16 %v14825_v55, %v14820_v49  ;;  %v12462_v49 = vld [vmem:[%s15497_s7 + $0x6b4] ss:$8 sps:$4 sm:$0xff]   ;;  %v12460_v55 = vld [vmem:[%s15497_s7 + $0x6b0] ss:$8 sps:$4 sm:$0xff]  }
 0x8bd   : > { %6019 = vmatprep.subr.bf16.mxu1 %v12296_v52  ;;  %v12359_v52 = vld [vmem:[%s15497_s7 + $0x494] ss:$8 sps:$4 sm:$0xff]  }
 0x8c0   : > { %6020 = vmatpush1.bf16.msra.mxu1 %v12294_v43  ;;  %v12357_v43 = vld [vmem:[%s15497_s7 + $0x490] ss:$8 sps:$4 sm:$0xff]  }
 0x8c1   : > { %6021 = vmatprep.subr.bf16.mxu1 %v12299_v46  ;;  %v12362_v46 = vld [vmem:[%s15497_s7 + $0x4a4] ss:$8 sps:$4 sm:$0xff]  }
 0x8c4   : > { %6022 = vmatpush1.bf16.msra.mxu1 %v12297_v0  ;;  %v12360_v0 = vld [vmem:[%s15497_s7 + $0x4a0] ss:$8 sps:$4 sm:$0xff]  }
 0x8c5   : > { %6023 = vmatprep.subr.bf16.mxu1 %v12302_v18  ;;  %v12367_v18 = vld [vmem:[%s15497_s7 + $0x4c0] ss:$8 sps:$4 sm:$0xff]  }
 0x8c8   : > { %6024 = vmatpush1.bf16.msra.mxu1 %v12300_v37  ;;  %v12372_v37 = vld [vmem:[%s15497_s7 + $0x4d4] ss:$8 sps:$4 sm:$0xff]  }
 0x8c9   : > { %6025 = vmatprep.subr.bf16.mxu1 %v12305_v10  ;;  %v12370_v10 = vld [vmem:[%s15497_s7 + $0x4d0] ss:$8 sps:$4 sm:$0xff]  }
 0x8cc   : > { %6026 = vmatpush1.bf16.msra.mxu1 %v12303_v13  ;;  %v12375_v13 = vld [vmem:[%s15497_s7 + $0x4e4] ss:$8 sps:$4 sm:$0xff]  }
 0x8cd   : > { %6208 = vmatprep.subr.bf16.mxu1 %v12308_v22  ;;  %v12373_v22 = vld [vmem:[%s15497_s7 + $0x4e0] ss:$8 sps:$4 sm:$0xff]  }
 0x8cf   : > { %6044 = vmatmul.mubr.bf16.vlgmr.msra.gmra.mrb[184].mxu1 %v5913_v20  ;;  %v12320_v20 = vld [vmem:[%s15497_s7 + $0x3c4] ss:$8 sps:$4 sm:$0xff]  }
 0x8d0   : > { %6209 = vmatpush1.bf16.msra.mxu1 %v12306_v57  ;;  %6240 = vmatprep.mubr.bf16.mxu1 %v12537_v14  ;;  %v14878_v57 = vpop.f32.mrb[164].mxu0 }
 0x8d1   : > { %6210 = vmatprep.subr.bf16.mxu1 %v12311_v24  ;;  %v12381_v24 = vld [vmem:[%s15497_s7 + $0x504] ss:$8 sps:$4 sm:$0xff]  }
 0x8d4   : > { %6211 = vmatpush1.bf16.msra.mxu1 %v12309_v8  ;;  %v11626_v8 = vpop.f32.mrb[165].mxu0 }
 0x8d5   : > { %6212 = vmatprep.subr.bf16.mxu1 %v12314_v63  ;;  %v14883_v63 = vpop.f32.mrb[166].mxu0  ;;  %v12450_v8 = vld [vmem:[%s15497_s7 + $0x674] ss:$8 sps:$4 sm:$0xff]  }
 0x8d8   : > { %6213 = vmatpush1.bf16.msra.mxu1 %v12312_v17  ;;  %v11627_v17 = vpop.f32.mrb[167].mxu0 }
 0x8d9   : > { %6214 = vmatprep.subr.bf16.mxu1 %v12317_v58  ;;  %v12379_v58 = vld [vmem:[%s15497_s7 + $0x500] ss:$8 sps:$4 sm:$0xff]   ;;  %v12448_v17 = vld [vmem:[%s15497_s7 + $0x670] ss:$8 sps:$4 sm:$0xff]  }
 0x8dc   : > { %6215 = vmatpush1.bf16.msra.mxu1 %v12315_v56  ;;  %v7292_v56 = vpack.c.bf16 %v14883_v63, %v14878_v57  ;;  %v12486_v57 = vld [vmem:[%s15497_s7 + $0x734] ss:$8 sps:$4 sm:$0xff]   ;;  %v12484_v63 = vld [vmem:[%s15497_s7 + $0x730] ss:$8 sps:$4 sm:$0xff]  }
 0x8dd   : > { %6216 = vmatprep.subr.bf16.mxu1 %v12320_v20  ;;  %v12384_v20 = vld [vmem:[%s15497_s7 + $0x514] ss:$8 sps:$4 sm:$0xff]  }
 0x8e0   : > { %6217 = vmatpush1.bf16.msra.mxu1 %v12318_v23  ;;  %v12382_v23 = vld [vmem:[%s15497_s7 + $0x510] ss:$8 sps:$4 sm:$0xff]  }
 0x8e1   : > { %6218 = vmatprep.subr.bf16.mxu1 %v12323_v50  ;;  %v12387_v50 = vld [vmem:[%s15497_s7 + $0x524] ss:$8 sps:$4 sm:$0xff]  }
 0x8e4   : > { %6219 = vmatpush1.bf16.msra.mxu1 %v12321_v7  ;;  %v12385_v7 = vld [vmem:[%s15497_s7 + $0x520] ss:$8 sps:$4 sm:$0xff]  }
 0x8e5   : > { %6220 = vmatprep.subr.bf16.mxu1 %v12326_v32  ;;  %v12391_v32 = vld [vmem:[%s15497_s7 + $0x540] ss:$8 sps:$4 sm:$0xff]  }
 0x8e8   : > { %6221 = vmatpush1.bf16.msra.mxu1 %v12324_v4  ;;  %v12396_v4 = vld [vmem:[%s15497_s7 + $0x554] ss:$8 sps:$4 sm:$0xff]  }
 0x8e9   : > { %6222 = vmatprep.subr.bf16.mxu1 %v12329_v16  ;;  %v12394_v16 = vld [vmem:[%s15497_s7 + $0x550] ss:$8 sps:$4 sm:$0xff]  }
 0x8ec   : > { %6223 = vmatpush1.bf16.msra.mxu1 %v12327_v60  ;;  %v12399_v60 = vld [vmem:[%s15497_s7 + $0x564] ss:$8 sps:$4 sm:$0xff]  }
 0x8ed   : > { %6405 = vmatprep.subr.bf16.mxu1 %v12332_v41  ;;  %v12397_v41 = vld [vmem:[%s15497_s7 + $0x560] ss:$8 sps:$4 sm:$0xff]  }
 0x8ef   : > { %6241 = vmatmul.mubr.bf16.vlgmr.msra.gmra.mrb[184].mxu1 %v6110_v35  ;;  %v12344_v35 = vld [vmem:[%s15497_s7 + $0x444] ss:$8 sps:$4 sm:$0xff]  }
 0x8f0   : > { %6406 = vmatpush1.bf16.msra.mxu1 %v12330_v62  ;;  %6437 = vmatprep.mubr.bf16.mxu1 %v12537_v14  ;;  %v14936_v62 = vpop.f32.mrb[168].mxu0 }
 0x8f1   : > { %6407 = vmatprep.subr.bf16.mxu1 %v12335_v40  ;;  %v12405_v40 = vld [vmem:[%s15497_s7 + $0x584] ss:$8 sps:$4 sm:$0xff]  }
 0x8f4   : > { %6408 = vmatpush1.bf16.msra.mxu1 %v12333_v48  ;;  %v11638_v48 = vpop.f32.mrb[169].mxu0 }
 0x8f5   : > { %6409 = vmatprep.subr.bf16.mxu1 %v12338_v34  ;;  %v14941_v34 = vpop.f32.mrb[170].mxu0  ;;  %v12478_v48 = vld [vmem:[%s15497_s7 + $0x710] ss:$8 sps:$4 sm:$0xff]  }
 0x8f8   : > { %6410 = vmatpush1.bf16.msra.mxu1 %v12336_v6  ;;  %v11639_v6 = vpop.f32.mrb[171].mxu0 }
 0x8f9   : > { %6411 = vmatprep.subr.bf16.mxu1 %v12341_v15  ;;  %v12403_v15 = vld [vmem:[%s15497_s7 + $0x580] ss:$8 sps:$4 sm:$0xff]   ;;  %v12483_v6 = vld [vmem:[%s15497_s7 + $0x724] ss:$8 sps:$4 sm:$0xff]  }
 0x8fc   : > { %6412 = vmatpush1.bf16.msra.mxu1 %v12339_v54  ;;  %v7489_v54 = vpack.c.bf16 %v14941_v34, %v14936_v62  ;;  %v12510_v62 = vld [vmem:[%s15497_s7 + $0x7b4] ss:$8 sps:$4 sm:$0xff]   ;;  %v12508_v34 = vld [vmem:[%s15497_s7 + $0x7b0] ss:$8 sps:$4 sm:$0xff]  }
 0x8fd   : > { %6413 = vmatprep.subr.bf16.mxu1 %v12344_v35  ;;  %v12408_v35 = vld [vmem:[%s15497_s7 + $0x594] ss:$8 sps:$4 sm:$0xff]  }
 0x900   : > { %6414 = vmatpush1.bf16.msra.mxu1 %v12342_v30  ;;  %v12406_v30 = vld [vmem:[%s15497_s7 + $0x590] ss:$8 sps:$4 sm:$0xff]  }
 0x901   : > { %6415 = vmatprep.subr.bf16.mxu1 %v12347_v5  ;;  %v12411_v5 = vld [vmem:[%s15497_s7 + $0x5a4] ss:$8 sps:$4 sm:$0xff]  }
 0x904   : > { %6416 = vmatpush1.bf16.msra.mxu1 %v12345_v44  ;;  %v12409_v44 = vld [vmem:[%s15497_s7 + $0x5a0] ss:$8 sps:$4 sm:$0xff]  }
 0x905   : > { %6417 = vmatprep.subr.bf16.mxu1 %v12350_v53  ;;  %v12415_v53 = vld [vmem:[%s15497_s7 + $0x5c0] ss:$8 sps:$4 sm:$0xff]  }
 0x908   : > { %6418 = vmatpush1.bf16.msra.mxu1 %v12348_v19  ;;  %v12420_v19 = vld [vmem:[%s15497_s7 + $0x5d4] ss:$8 sps:$4 sm:$0xff]  }
 0x909   : > { %6419 = vmatprep.subr.bf16.mxu1 %v12353_v11  ;;  %v12418_v11 = vld [vmem:[%s15497_s7 + $0x5d0] ss:$8 sps:$4 sm:$0xff]  }
 0x90c   : > { %6420 = vmatpush1.bf16.msra.mxu1 %v12351_v29  ;;  %v12423_v29 = vld [vmem:[%s15497_s7 + $0x5e4] ss:$8 sps:$4 sm:$0xff]  }
 0x90d   : > { %6602 = vmatprep.subr.bf16.mxu1 %v12356_v28  ;;  %v12421_v28 = vld [vmem:[%s15497_s7 + $0x5e0] ss:$8 sps:$4 sm:$0xff]  }
 0x90f   : > { %6438 = vmatmul.mubr.bf16.vlgmr.msra.gmra.mrb[184].mxu1 %v6307_v25  ;;  %v12369_v25 = vld [vmem:[%s15497_s7 + $0x4c4] ss:$8 sps:$4 sm:$0xff]  }
 0x910   : > { %6603 = vmatpush1.bf16.msra.mxu1 %v12354_v21  ;;  %6634 = vmatprep.mubr.bf16.mxu1 %v12537_v14  ;;  %v12424_v21 = vld [vmem:[%s15497_s7 + $0x5f0] ss:$8 sps:$4 sm:$0xff]  }
 0x911   : > { %6604 = vmatprep.subr.bf16.mxu1 %v12359_v52 }
 0x914   : > { %6605 = vmatpush1.bf16.msra.mxu1 %v12357_v43  ;;  %v12429_v43 = vld [vmem:[%s15497_s7 + $0x604] ss:$8 sps:$4 sm:$0xff]  }
 0x915   : > { %6606 = vmatprep.subr.bf16.mxu1 %v12362_v46 }
 0x918   : > { %6607 = vmatpush1.bf16.msra.mxu1 %v12360_v0  ;;  %v14991_v3 = vpop.f32.mrb[172].mxu0 }
 0x919   : > { %6608 = vmatprep.subr.bf16.mxu1 %v12366_v38  ;;  %v11650_v52 = vpop.f32.mrb[173].mxu0 }
 0x91a   : > { %v14999_v46 = vpop.f32.mrb[174].mxu0  ;;  %v12516_v52 = vld [vmem:[%s15497_s7 + $0x7d4] ss:$8 sps:$4 sm:$0xff]  }
 0x91b   : > { %v7686_v0 = vpack.c.bf16 %v14999_v46, %v14991_v3  ;;  %v11651_v38 = vpop.f32.mrb[175].mxu0 }
 0x91c   : > { %6609 = vmatpush1.bf16.msra.mxu1 %v12364_v36  ;;  %v12427_v36 = vld [vmem:[%s15497_s7 + $0x600] ss:$8 sps:$4 sm:$0xff]   ;;  %v12519_v38 = vld [vmem:[%s15497_s7 + $0x7e4] ss:$8 sps:$4 sm:$0xff]  }
 0x91d   : > { %6610 = vmatprep.subr.bf16.mxu1 %v12369_v25  ;;  %v12432_v25 = vld [vmem:[%s15497_s7 + $0x614] ss:$8 sps:$4 sm:$0xff]  }
 0x920   : > { %6611 = vmatpush1.bf16.msra.mxu1 %v12367_v18  ;;  %v12430_v18 = vld [vmem:[%s15497_s7 + $0x610] ss:$8 sps:$4 sm:$0xff]  }
 0x921   : > { %6612 = vmatprep.subr.bf16.mxu1 %v12372_v37  ;;  %v12435_v37 = vld [vmem:[%s15497_s7 + $0x624] ss:$8 sps:$4 sm:$0xff]  }
 0x924   : > { %6613 = vmatpush1.bf16.msra.mxu1 %v12370_v10  ;;  %v12433_v10 = vld [vmem:[%s15497_s7 + $0x620] ss:$8 sps:$4 sm:$0xff]  }
 0x925   : > { %6614 = vmatprep.subr.bf16.mxu1 %v12375_v13  ;;  %v12439_v13 = vld [vmem:[%s15497_s7 + $0x640] ss:$8 sps:$4 sm:$0xff]  }
 0x928   : > { %6615 = vmatpush1.bf16.msra.mxu1 %v12373_v22  ;;  %v12444_v22 = vld [vmem:[%s15497_s7 + $0x654] ss:$8 sps:$4 sm:$0xff]  }
 0x929   : > { %6616 = vmatprep.subr.bf16.mxu1 %v12378_v59  ;;  %v12442_v59 = vld [vmem:[%s15497_s7 + $0x650] ss:$8 sps:$4 sm:$0xff]  }
 0x92c   : > { %6617 = vmatpush1.bf16.msra.mxu1 %v12376_v47  ;;  %v12447_v47 = vld [vmem:[%s15497_s7 + $0x664] ss:$8 sps:$4 sm:$0xff]  }
 0x92d   : > { %6799 = vmatprep.subr.bf16.mxu1 %v12381_v24  ;;  %v12445_v24 = vld [vmem:[%s15497_s7 + $0x660] ss:$8 sps:$4 sm:$0xff]  }
 0x92f   : > { %6635 = vmatmul.mubr.bf16.vlgmr.msra.gmra.mrb[184].mxu1 %v6504_v26  ;;  %v12393_v26 = vld [vmem:[%s15497_s7 + $0x544] ss:$8 sps:$4 sm:$0xff]  }
 0x930   : > { %6800 = vmatpush1.bf16.msra.mxu1 %v12379_v58  ;;  %6831 = vmatprep.mubr.bf16.mxu1 %v12537_v14  ;;  %v12453_v58 = vld [vmem:[%s15497_s7 + $0x684] ss:$8 sps:$4 sm:$0xff]  }
 0x931   : > { %6801 = vmatprep.subr.bf16.mxu1 %v12384_v20  ;;  %v12451_v20 = vld [vmem:[%s15497_s7 + $0x680] ss:$8 sps:$4 sm:$0xff]  }
 0x934   : > { %6802 = vmatpush1.bf16.msra.mxu1 %v12382_v23  ;;  %v12456_v23 = vld [vmem:[%s15497_s7 + $0x694] ss:$8 sps:$4 sm:$0xff]  }
 0x935   : > { %6803 = vmatprep.subr.bf16.mxu1 %v12387_v50  ;;  %v12454_v50 = vld [vmem:[%s15497_s7 + $0x690] ss:$8 sps:$4 sm:$0xff]  }
 0x938   : > { %6804 = vmatpush1.bf16.msra.mxu1 %v12385_v7  ;;  %v12459_v7 = vld [vmem:[%s15497_s7 + $0x6a4] ss:$8 sps:$4 sm:$0xff]  }
 0x939   : > { %6805 = vmatprep.subr.bf16.mxu1 %v12390_v42  ;;  %v12457_v42 = vld [vmem:[%s15497_s7 + $0x6a0] ss:$8 sps:$4 sm:$0xff]  }
 0x93c   : > { %6806 = vmatpush1.bf16.msra.mxu1 %v12388_v12  ;;  %v12463_v12 = vld [vmem:[%s15497_s7 + $0x6c0] ss:$8 sps:$4 sm:$0xff]  }
 0x93d   : > { %6807 = vmatprep.subr.bf16.mxu1 %v12393_v26  ;;  %v12468_v26 = vld [vmem:[%s15497_s7 + $0x6d4] ss:$8 sps:$4 sm:$0xff]  }
 0x940   : > { %6808 = vmatpush1.bf16.msra.mxu1 %v12391_v32  ;;  %v12466_v32 = vld [vmem:[%s15497_s7 + $0x6d0] ss:$8 sps:$4 sm:$0xff]  }
 0x941   : > { %6809 = vmatprep.subr.bf16.mxu1 %v12396_v4  ;;  %v12471_v4 = vld [vmem:[%s15497_s7 + $0x6e4] ss:$8 sps:$4 sm:$0xff]  }
 0x944   : > { %6810 = vmatpush1.bf16.msra.mxu1 %v12394_v16  ;;  %v12469_v16 = vld [vmem:[%s15497_s7 + $0x6e0] ss:$8 sps:$4 sm:$0xff]  }
 0x945   : > { %6811 = vmatprep.subr.bf16.mxu1 %v12399_v60  ;;  %v12474_v60 = vld [vmem:[%s15497_s7 + $0x6f4] ss:$8 sps:$4 sm:$0xff]  }
 0x948   : > { %6812 = vmatpush1.bf16.msra.mxu1 %v12397_v41  ;;  %v12472_v41 = vld [vmem:[%s15497_s7 + $0x6f0] ss:$8 sps:$4 sm:$0xff]  }
 0x949   : > { %6813 = vmatprep.subr.bf16.mxu1 %v12402_v51  ;;  %v12477_v51 = vld [vmem:[%s15497_s7 + $0x704] ss:$8 sps:$4 sm:$0xff]  }
 0x94c   : > { %6814 = vmatpush1.bf16.msra.mxu1 %v12400_v31  ;;  %v12475_v31 = vld [vmem:[%s15497_s7 + $0x700] ss:$8 sps:$4 sm:$0xff]  }
 0x94d   : > { %6996 = vmatprep.subr.bf16.mxu1 %v12405_v40  ;;  %v12480_v40 = vld [vmem:[%s15497_s7 + $0x714] ss:$8 sps:$4 sm:$0xff]  }
 0x94f   : > { %6832 = vmatmul.mubr.bf16.vlgmr.msra.gmra.mrb[184].mxu1 %v6701_v61  ;;  %v12417_v61 = vld [vmem:[%s15497_s7 + $0x5c4] ss:$8 sps:$4 sm:$0xff]  }
 0x950   : > { %6997 = vmatpush1.bf16.msra.mxu1 %v12403_v15  ;;  %7028 = vmatprep.mubr.bf16.mxu1 %v12537_v14  ;;  %v12481_v15 = vld [vmem:[%s15497_s7 + $0x720] ss:$8 sps:$4 sm:$0xff]  }
 0x951   : > { %6998 = vmatprep.subr.bf16.mxu1 %v12408_v35  ;;  %v12487_v35 = vld [vmem:[%s15497_s7 + $0x740] ss:$8 sps:$4 sm:$0xff]  }
 0x954   : > { %6999 = vmatpush1.bf16.msra.mxu1 %v12406_v30  ;;  %v12492_v30 = vld [vmem:[%s15497_s7 + $0x754] ss:$8 sps:$4 sm:$0xff]  }
 0x955   : > { %7000 = vmatprep.subr.bf16.mxu1 %v12411_v5  ;;  %v12490_v5 = vld [vmem:[%s15497_s7 + $0x750] ss:$8 sps:$4 sm:$0xff]  }
 0x958   : > { %7001 = vmatpush1.bf16.msra.mxu1 %v12409_v44  ;;  %v12495_v44 = vld [vmem:[%s15497_s7 + $0x764] ss:$8 sps:$4 sm:$0xff]  }
 0x959   : > { %7002 = vmatprep.subr.bf16.mxu1 %v12414_v27  ;;  %v12493_v27 = vld [vmem:[%s15497_s7 + $0x760] ss:$8 sps:$4 sm:$0xff]  }
 0x95c   : > { %7003 = vmatpush1.bf16.msra.mxu1 %v12412_v33  ;;  %v12498_v33 = vld [vmem:[%s15497_s7 + $0x774] ss:$8 sps:$4 sm:$0xff]  }
 0x95d   : > { %7004 = vmatprep.subr.bf16.mxu1 %v12417_v61  ;;  %v12496_v61 = vld [vmem:[%s15497_s7 + $0x770] ss:$8 sps:$4 sm:$0xff]  }
 0x960   : > { %7005 = vmatpush1.bf16.msra.mxu1 %v12415_v53  ;;  %v12501_v53 = vld [vmem:[%s15497_s7 + $0x784] ss:$8 sps:$4 sm:$0xff]  }
 0x961   : > { %7006 = vmatprep.subr.bf16.mxu1 %v12420_v19  ;;  %v12499_v19 = vld [vmem:[%s15497_s7 + $0x780] ss:$8 sps:$4 sm:$0xff]  }
 0x964   : > { %7007 = vmatpush1.bf16.msra.mxu1 %v12418_v11  ;;  %v12504_v11 = vld [vmem:[%s15497_s7 + $0x794] ss:$8 sps:$4 sm:$0xff]  }
 0x965   : > { %7008 = vmatprep.subr.bf16.mxu1 %v12423_v29  ;;  %v12502_v29 = vld [vmem:[%s15497_s7 + $0x790] ss:$8 sps:$4 sm:$0xff]  }
 0x968   : > { %7009 = vmatpush1.bf16.msra.mxu1 %v12421_v28  ;;  %v12507_v28 = vld [vmem:[%s15497_s7 + $0x7a4] ss:$8 sps:$4 sm:$0xff]  }
 0x969   : > { %7010 = vmatprep.subr.bf16.mxu1 %v12426_v45  ;;  %v12505_v45 = vld [vmem:[%s15497_s7 + $0x7a0] ss:$8 sps:$4 sm:$0xff]  }
 0x96c   : > { %7011 = vmatpush1.bf16.msra.mxu1 %v12424_v21  ;;  %v12511_v21 = vld [vmem:[%s15497_s7 + $0x7c0] ss:$8 sps:$4 sm:$0xff]  }
 0x96d   : > { %7193 = vmatprep.subr.bf16.mxu1 %v12429_v43  ;;  %v12514_v43 = vld [vmem:[%s15497_s7 + $0x7d0] ss:$8 sps:$4 sm:$0xff]  }
 0x96f   : > { %7029 = vmatmul.mubr.bf16.vlgmr.msra.gmra.mrb[184].mxu1 %v6898_v39  ;;  %v12441_v39 = vld [vmem:[%s15497_s7 + $0x644] ss:$8 sps:$4 sm:$0xff]  }
 0x970   : > { %7194 = vmatpush1.bf16.msra.mxu1 %v12427_v36  ;;  %7225 = vmatprep.mubr.bf16.mxu1 %v12537_v14  ;;  %v12517_v36 = vld [vmem:[%s15497_s7 + $0x7e0] ss:$8 sps:$4 sm:$0xff]  }
 0x971   : > { %7195 = vmatprep.subr.bf16.mxu1 %v12432_v25  ;;  %v12522_v25 = vld [vmem:[%s15497_s7 + $0x7f4] ss:$8 sps:$4 sm:$0xff]  }
 0x974   : > { %7196 = vmatpush1.bf16.msra.mxu1 %v12430_v18  ;;  %v12520_v18 = vld [vmem:[%s15497_s7 + $0x7f0] ss:$8 sps:$4 sm:$0xff]  }
 0x975   : > { %7197 = vmatprep.subr.bf16.mxu1 %v12435_v37  ;;  %v7833_v37 = vlaneseq }
 0x978   : > { %7198 = vmatpush1.bf16.msra.mxu1 %v12433_v10  ;;  %v15211_v10 = vshrl.u32 %v7833_v37, 7 }
 0x979   : > { %7199 = vmatprep.subr.bf16.mxu1 %v12438_v1 }
 0x97a   : > { %v15214_v1 = vsub.s32 0, %v15211_v10 }
 0x97c   : > { %7200 = vmatpush1.bf16.msra.mxu1 %v12436_v9  ;;  %v7831_v9 = vld [vmem:[%s15498_s8] sm:$0x3] }
 0x97d   : > { %7201 = vmatprep.subr.bf16.mxu1 %v12441_v39  ;;  %v7839_v39 = vsub.s32 1, %v15211_v10 }
 0x980   : > { %7202 = vmatpush1.bf16.msra.mxu1 %v12439_v13  ;;  %v7836_v13 = vrot.slane %v7831_v9, %v15214_v1 }
 0x981   : > { %7203 = vmatprep.subr.bf16.mxu1 %v12444_v22  ;;  %v7840_v22 = vrot.slane %v7831_v9, %v7839_v39 }
 0x984   : > { %7204 = vmatpush1.bf16.msra.mxu1 %v12442_v59 }
 0x985   : > { %7205 = vmatprep.subr.bf16.mxu1 %v12447_v47 }
 0x988   : > { %7206 = vmatpush1.bf16.msra.mxu1 %v12445_v24 }
 0x989   : > { %7207 = vmatprep.subr.bf16.mxu1 %v12450_v8 }
 0x98c   : > { %7208 = vmatpush1.bf16.msra.mxu1 %v12448_v17 }
 0x98d   : > { %7390 = vmatprep.subr.bf16.mxu1 %v12453_v58 }
 0x98f   : > { %7226 = vmatmul.mubr.bf16.vlgmr.msra.gmra.mrb[184].mxu1 %v7095_v2  ;;  %v12465_v2 = vld [vmem:[%s15497_s7 + $0x6c4] ss:$8 sps:$4 sm:$0xff]  }
 0x990   : > { %7391 = vmatpush1.bf16.msra.mxu1 %v12451_v20  ;;  %7422 = vmatprep.mubr.bf16.mxu1 %v12537_v14 }
 0x991   : > { %7392 = vmatprep.subr.bf16.mxu1 %v12456_v23 }
 0x994   : > { %7393 = vmatpush1.bf16.msra.mxu1 %v12454_v50 }
 0x995   : > { %7394 = vmatprep.subr.bf16.mxu1 %v12459_v7 }
 0x998   : > { %7395 = vmatpush1.bf16.msra.mxu1 %v12457_v42 }
 0x999   : > { %7396 = vmatprep.subr.bf16.mxu1 %v12462_v49 }
 0x99c   : > { %7397 = vmatpush1.bf16.msra.mxu1 %v12460_v55 }
 0x99d   : > { %7398 = vmatprep.subr.bf16.mxu1 %v12465_v2 }
 0x9a0   : > { %7399 = vmatpush1.bf16.msra.mxu1 %v12463_v12 }
 0x9a1   : > { %7400 = vmatprep.subr.bf16.mxu1 %v12468_v26  ;;  %v7861_v26 = vld [vmem:[%s15499_s9] sm:$0x3] }
 0x9a4   : > { %7401 = vmatpush1.bf16.msra.mxu1 %v12466_v32  ;;  %v10235_v32 = vld [vmem:[%s15499_s9 + $0x2] sm:$0x3] }
 0x9a5   : > { %7402 = vmatprep.subr.bf16.mxu1 %v12471_v4  ;;  %v10238_v4 = vld [vmem:[%s15499_s9 + $0x4] sm:$0x3] }
 0x9a8   : > { %7403 = vmatpush1.bf16.msra.mxu1 %v12469_v16  ;;  %v10241_v16 = vld [vmem:[%s15499_s9 + $0x6] sm:$0x3] }
 0x9a9   : > { %7404 = vmatprep.subr.bf16.mxu1 %v12474_v60  ;;  %v10244_v60 = vld [vmem:[%s15499_s9 + $0x8] sm:$0x3] }
 0x9ac   : > { %7405 = vmatpush1.bf16.msra.mxu1 %v12472_v41  ;;  %v10247_v41 = vld [vmem:[%s15499_s9 + $0xa] sm:$0x3] }
 0x9ad   : > { %7587 = vmatprep.subr.bf16.mxu1 %v12477_v51  ;;  %v10250_v51 = vld [vmem:[%s15499_s9 + $0xc] sm:$0x3] }
 0x9af   : > { %7423 = vmatmul.mubr.bf16.vlgmr.msra.gmra.mrb[184].mxu1 %v7292_v56  ;;  %v12489_v56 = vld [vmem:[%s15497_s7 + $0x744] ss:$8 sps:$4 sm:$0xff]  }
 0x9b0   : > { %7588 = vmatpush1.bf16.msra.mxu1 %v12475_v31  ;;  %7619 = vmatprep.mubr.bf16.mxu1 %v12537_v14  ;;  %v10253_v31 = vld [vmem:[%s15499_s9 + $0xe] sm:$0x3] }
 0x9b1   : > { %7589 = vmatprep.subr.bf16.mxu1 %v12480_v40  ;;  %v10256_v40 = vld [vmem:[%s15499_s9 + $0x10] sm:$0x3] }
 0x9b4   : > { %7590 = vmatpush1.bf16.msra.mxu1 %v12478_v48  ;;  %v10259_v48 = vld [vmem:[%s15499_s9 + $0x12] sm:$0x3] }
 0x9b5   : > { %7591 = vmatprep.subr.bf16.mxu1 %v12483_v6  ;;  %v10262_v6 = vld [vmem:[%s15499_s9 + $0x14] sm:$0x3] }
 0x9b8   : > { %7592 = vmatpush1.bf16.msra.mxu1 %v12481_v15  ;;  %v10265_v15 = vld [vmem:[%s15499_s9 + $0x16] sm:$0x3] }
 0x9b9   : > { %7593 = vmatprep.subr.bf16.mxu1 %v12486_v57  ;;  %v10268_v57 = vld [vmem:[%s15499_s9 + $0x18] sm:$0x3] }
 0x9bc   : > { %7594 = vmatpush1.bf16.msra.mxu1 %v12484_v63  ;;  %v10271_v63 = vld [vmem:[%s15499_s9 + $0x1a] sm:$0x3] }
 0x9bd   : > { %7595 = vmatprep.subr.bf16.mxu1 %v12489_v56  ;;  %v10274_v56 = vld [vmem:[%s15499_s9 + $0x1c] sm:$0x3] }
 0x9c0   : > { %7596 = vmatpush1.bf16.msra.mxu1 %v12487_v35  ;;  %v10277_v35 = vld [vmem:[%s15499_s9 + $0x1e] sm:$0x3] }
 0x9c1   : > { %7597 = vmatprep.subr.bf16.mxu1 %v12492_v30  ;;  %v7907_v30 = vld [vmem:[%s15500_s10] sm:$0x3] }
 0x9c4   : > { %7598 = vmatpush1.bf16.msra.mxu1 %v12490_v5  ;;  %v7908_v5 = vunpack.c.l.bf16 %v7907_v30 }
 0x9c5   : > { %7599 = vmatprep.subr.bf16.mxu1 %v12495_v44  ;;  %v15340_v44 = vsub.s32 2, %v15211_v10 }
 0x9c8   : > { %7600 = vmatpush1.bf16.msra.mxu1 %v12493_v27  ;;  %v7913_v27 = vrot.slane %v7908_v5, %v15214_v1 }
 0x9c9   : > { %7601 = vmatprep.subr.bf16.mxu1 %v12498_v33  ;;  %v7917_v33 = vrot.slane %v7908_v5, %v15340_v44 }
 0x9cc   : > { %7602 = vmatpush1.bf16.msra.mxu1 %v12496_v61  ;;  %v7923_v61 = vrot.slane %v7913_v27, %v15214_v1 }
 0x9cd   : > { %7784 = vmatprep.subr.bf16.mxu1 %v12501_v53 }
 0x9cf   : > { %7620 = vmatmul.mubr.bf16.vlgmr.msra.gmra.mrb[184].mxu1 %v7489_v54  ;;  %v12513_v54 = vld [vmem:[%s15497_s7 + $0x7c4] ss:$8 sps:$4 sm:$0xff]  }
 0x9d0   : > { %7785 = vmatpush1.bf16.msra.mxu1 %v12499_v19  ;;  %7816 = vmatprep.mubr.bf16.mxu1 %v12537_v14  ;;  %v7927_v19 = vrot.slane %v7917_v33, %v15214_v1 }
 0x9d1   : > { %7786 = vmatprep.subr.bf16.mxu1 %v12504_v11 }
 0x9d4   : > { %7787 = vmatpush1.bf16.msra.mxu1 %v12502_v29 }
 0x9d5   : > { %7788 = vmatprep.subr.bf16.mxu1 %v12507_v28 }
 0x9d8   : > { %7789 = vmatpush1.bf16.msra.mxu1 %v12505_v45 }
 0x9d9   : > { %7790 = vmatprep.subr.bf16.mxu1 %v12510_v62 }
 0x9dc   : > { %7791 = vmatpush1.bf16.msra.mxu1 %v12508_v34 }
 0x9dd   : > { %7792 = vmatprep.subr.bf16.mxu1 %v12513_v54 }
 0x9e0   : > { %7793 = vmatpush1.bf16.msra.mxu1 %v12511_v21  ;;  %v10240_v21 = vld [vmem:[%s15500_s10 + $0x4] sm:$0x3] }
 0x9e1   : > { %7794 = vmatprep.subr.bf16.mxu1 %v12516_v52 }
 0x9e4   : > { %7795 = vmatpush1.bf16.msra.mxu1 %v12514_v43 }
 0x9e5   : > { %7796 = vmatprep.subr.bf16.mxu1 %v12519_v38 }
 0x9e8   : > { %7797 = vmatpush1.bf16.msra.mxu1 %v12517_v36 }
 0x9e9   : > { %7798 = vmatprep.subr.bf16.mxu1 %v12522_v25  ;;  %v8061_v25 = vunpack.c.l.bf16 %v10240_v21 }
 0x9ec   : > { %7799 = vmatpush1.bf16.msra.mxu1 %v12520_v18 }
 0x9ef   : > { %7817 = vmatmul.mubr.bf16.vlgmr.msra.gmra.mrb[184].mxu1 %v7686_v0 }
 0xac2   : > { %v7818_v59 = vpop.f32.mrb[184].mxu1 }
 0xac3   : > { %v7843_v47 = vadd.f32 %v7836_v13, %v7818_v59  ;;  %v7820_v24 = vpop.f32.mrb[185].mxu1 }
 0xac4   : > { %v7844_v3 = vadd.f32 %v7840_v22, %v7820_v24  ;;  %v7822_v46 = vpop.f32.mrb[186].mxu1  ;;  %v10243_v24 = vld [vmem:[%s15500_s10 + $0x6] sm:$0x3] }
 0xac5   : > { %v7851_v0 = vmul.f32 0.2, %v7843_v47  ;;  %v7845_v8 = vadd.f32 %v7836_v13, %v7822_v46  ;;  %v7824_v17 = vpop.f32.mrb[187].mxu1  ;;  %vm7847_vm10 = vcmp.gt.f32.partialorder %v7843_v47, 0.0  ;;  %v8066_v13 = vrot.slane %v8061_v25, %v15214_v1 }
 0xac6   : > { %v7852_v58 = vmul.f32 0.2, %v7844_v3  ;;  %v7846_v20 = vadd.f32 %v7840_v22, %v7824_v17  ;;  %vm7848_vm11 = vcmp.gt.f32.partialorder %v7844_v3, 0.0  ;;  %v8137_v17 = vunpack.c.l.bf16 %v10243_v24 }
 0xac7   : > { %vm7849_vm12 = vcmp.gt.f32.partialorder %v7845_v8, 0.0  ;;  %v7853_v23 = vmul.f32 0.2, %v7845_v8  ;;  %v7855_v7 = vsel %vm7847_vm10, %v7843_v47, %v7851_v0  ;;  %v8070_v47 = vrot.slane %v8061_v25, %v15340_v44 }
 0xac8   : > { %vm7850_vm13 = vcmp.gt.f32.partialorder %v7846_v20, 0.0  ;;  %v7854_v50 = vmul.f32 0.2, %v7846_v20  ;;  %v7856_v49 = vsel %vm7848_vm11, %v7844_v3, %v7852_v58 }
 0xac9   : > { %v7857_v42 = vsel %vm7849_vm12, %v7845_v8, %v7853_v23  ;;  %v8076_v8 = vrot.slane %v8066_v13, %v15214_v1 }
 0xaca   : > { %v15221_v55 = vpack.c.bf16 %v7857_v42, %v7855_v7  ;;  %v7858_v2 = vsel %vm7850_vm13, %v7846_v20, %v7854_v50  ;;  %v8080_v20 = vrot.slane %v8070_v47, %v15214_v1  ;;  %v8142_v42 = vrot.slane %v8137_v17, %v15214_v1 }
 0xacb   : > { %v15223_v12 = vpack.c.bf16 %v7858_v2, %v7856_v49  ;;  %v8146_v2 = vrot.slane %v8137_v17, %v15340_v44 }
 0xacd   : > { %7866 = vmatprep.subr.bf16.mxu0 %v15223_v12 }
 0xace   : > { %7867 = vmatpush1.bf16.msra.mxu0 %v15221_v55 }
 0xacf   : > { %7942 = vmatprep.subr.bf16.mxu0 %v15223_v12 }
 0xad1   : > { %10234 = vmatmul.mubr.msk.bf16.vlgmr.msra.gmra.mrb[176].mxu0 %vm7862_vm14, %v7861_v26 }
 0xad2   : > { %7943 = vmatpush1.bf16.msra.mxu0 %v15221_v55  ;;  %7974 = vmatprep.mubr.bf16.mxu0 %v12537_v14 }
 0xad3   : > { %8018 = vmatprep.subr.bf16.mxu0 %v15223_v12 }
 0xad9   : > { %10236 = vmatmul.mubr.msk.bf16.vlgmr.msra.gmra.mrb[180].mxu0 %vm7862_vm14, %v10235_v32 }
 0xada   : > { %8019 = vmatpush1.bf16.msra.mxu0 %v15221_v55  ;;  %8050 = vmatprep.mubr.bf16.mxu0 %v12537_v14 }
 0xadb   : > { %8094 = vmatprep.subr.bf16.mxu0 %v15223_v12 }
 0xae1   : > { %10239 = vmatmul.mubr.msk.bf16.vlgmr.msra.gmra.mrb[184].mxu0 %vm7862_vm14, %v10238_v4 }
 0xae2   : > { %8095 = vmatpush1.bf16.msra.mxu0 %v15221_v55  ;;  %8126 = vmatprep.mubr.bf16.mxu0 %v12537_v14 }
 0xae3   : > { %8170 = vmatprep.subr.bf16.mxu0 %v15223_v12 }
 0xae9   : > { %10242 = vmatmul.mubr.msk.bf16.vlgmr.msra.gmra.mrb[188].mxu0 %vm7862_vm14, %v10241_v16  ;;  %v8152_v16 = vrot.slane %v8142_v42, %v15214_v1 }
 0xaea   : > { %8171 = vmatpush1.bf16.msra.mxu0 %v15221_v55  ;;  %8202 = vmatprep.mubr.bf16.mxu0 %v12537_v14 }
 0xaeb   : > { %8246 = vmatprep.subr.bf16.mxu0 %v15223_v12 }
 0xaf1   : > { %10245 = vmatmul.mubr.msk.bf16.vlgmr.msra.gmra.mrb[192].mxu0 %vm7862_vm14, %v10244_v60 }
 0xaf2   : > { %8247 = vmatpush1.bf16.msra.mxu0 %v15221_v55  ;;  %8278 = vmatprep.mubr.bf16.mxu0 %v12537_v14 }
 0xaf3   : > { %8322 = vmatprep.subr.bf16.mxu0 %v15223_v12 }
 0xaf9   : > { %10248 = vmatmul.mubr.msk.bf16.vlgmr.msra.gmra.mrb[196].mxu0 %vm7862_vm14, %v10247_v41 }
 0xafa   : > { %8323 = vmatpush1.bf16.msra.mxu0 %v15221_v55  ;;  %8354 = vmatprep.mubr.bf16.mxu0 %v12537_v14 }
 0xafb   : > { %8398 = vmatprep.subr.bf16.mxu0 %v15223_v12 }
 0xb01   : > { %10251 = vmatmul.mubr.msk.bf16.vlgmr.msra.gmra.mrb[200].mxu0 %vm7862_vm14, %v10250_v51  ;;  %v8156_v51 = vrot.slane %v8146_v2, %v15214_v1 }
 0xb02   : > { %8399 = vmatpush1.bf16.msra.mxu0 %v15221_v55  ;;  %8430 = vmatprep.mubr.bf16.mxu0 %v12537_v14 }
 0xb03   : > { %8474 = vmatprep.subr.bf16.mxu0 %v15223_v12 }
 0xb09   : > { %10254 = vmatmul.mubr.msk.bf16.vlgmr.msra.gmra.mrb[204].mxu0 %vm7862_vm14, %v10253_v31 }
 0xb0a   : > { %8475 = vmatpush1.bf16.msra.mxu0 %v15221_v55  ;;  %8506 = vmatprep.mubr.bf16.mxu0 %v12537_v14 }
 0xb0b   : > { %8550 = vmatprep.subr.bf16.mxu0 %v15223_v12 }
 0xb11   : > { %10257 = vmatmul.mubr.msk.bf16.vlgmr.msra.gmra.mrb[208].mxu0 %vm7862_vm14, %v10256_v40 }
 0xb12   : > { %8551 = vmatpush1.bf16.msra.mxu0 %v15221_v55  ;;  %8582 = vmatprep.mubr.bf16.mxu0 %v12537_v14 }
 0xb13   : > { %8626 = vmatprep.subr.bf16.mxu0 %v15223_v12 }
 0xb19   : > { %10260 = vmatmul.mubr.msk.bf16.vlgmr.msra.gmra.mrb[212].mxu0 %vm7862_vm14, %v10259_v48 }
 0xb1a   : > { %8627 = vmatpush1.bf16.msra.mxu0 %v15221_v55  ;;  %8658 = vmatprep.mubr.bf16.mxu0 %v12537_v14 }
 0xb1b   : > { %8702 = vmatprep.subr.bf16.mxu0 %v15223_v12 }
 0xb21   : > { %10263 = vmatmul.mubr.msk.bf16.vlgmr.msra.gmra.mrb[216].mxu0 %vm7862_vm14, %v10262_v6 }
 0xb22   : > { %8703 = vmatpush1.bf16.msra.mxu0 %v15221_v55  ;;  %8734 = vmatprep.mubr.bf16.mxu0 %v12537_v14 }
 0xb23   : > { %8778 = vmatprep.subr.bf16.mxu0 %v15223_v12 }
 0xb29   : > { %10266 = vmatmul.mubr.msk.bf16.vlgmr.msra.gmra.mrb[220].mxu0 %vm7862_vm14, %v10265_v15 }
 0xb2a   : > { %8779 = vmatpush1.bf16.msra.mxu0 %v15221_v55  ;;  %8810 = vmatprep.mubr.bf16.mxu0 %v12537_v14 }
 0xb2b   : > { %8854 = vmatprep.subr.bf16.mxu0 %v15223_v12 }
 0xb31   : > { %10269 = vmatmul.mubr.msk.bf16.vlgmr.msra.gmra.mrb[224].mxu0 %vm7862_vm14, %v10268_v57 }
 0xb32   : > { %8855 = vmatpush1.bf16.msra.mxu0 %v15221_v55  ;;  %8886 = vmatprep.mubr.bf16.mxu0 %v12537_v14 }
 0xb33   : > { %8930 = vmatprep.subr.bf16.mxu0 %v15223_v12 }
 0xb39   : > { %10272 = vmatmul.mubr.msk.bf16.vlgmr.msra.gmra.mrb[228].mxu0 %vm7862_vm14, %v10271_v63 }
 0xb3a   : > { %8931 = vmatpush1.bf16.msra.mxu0 %v15221_v55  ;;  %8962 = vmatprep.mubr.bf16.mxu0 %v12537_v14 }
 0xb3b   : > { %9006 = vmatprep.subr.bf16.mxu0 %v15223_v12  ;;  %v10246_v12 = vld [vmem:[%s15500_s10 + $0x8] sm:$0x3] }
 0xb3c   : > { %v8213_v60 = vunpack.c.l.bf16 %v10246_v12 }
 0xb3e   : > { %v8218_v6 = vrot.slane %v8213_v60, %v15214_v1  ;;  %v8222_v63 = vrot.slane %v8213_v60, %v15340_v44 }
 0xb40   : > { %v8228_v27 = vrot.slane %v8218_v6, %v15214_v1 }
 0xb41   : > { %10275 = vmatmul.mubr.msk.bf16.vlgmr.msra.gmra.mrb[232].mxu0 %vm7862_vm14, %v10274_v56  ;;  %v10249_v56 = vld [vmem:[%s15500_s10 + $0xa] sm:$0x3] }
 0xb42   : > { %9007 = vmatpush1.bf16.msra.mxu0 %v15221_v55  ;;  %9038 = vmatprep.mubr.bf16.mxu0 %v12537_v14  ;;  %v10237_v14 = vld [vmem:[%s15500_s10 + $0x2] sm:$0x3]  ;;  %v8289_v33 = vunpack.c.l.bf16 %v10249_v56 }
 0xb43   : > { %v7985_v53 = vunpack.c.l.bf16 %v10237_v14 }
 0xb45   : > { %v7990_v45 = vrot.slane %v7985_v53, %v15214_v1  ;;  %v7994_v54 = vrot.slane %v7985_v53, %v15340_v44 }
 0xb47   : > { %v8000_v36 = vrot.slane %v7990_v45, %v15214_v1  ;;  %v8004_v37 = vrot.slane %v7994_v54, %v15214_v1 }
 0xb49   : > { %10278 = vmatmul.mubr.msk.bf16.vlgmr.msra.gmra.mrb[236].mxu0 %vm7862_vm14, %v10277_v35 }
 0xba4   : > { %v7900_v11 = vpop.f32.mrb[176].mxu0 }
 0xba5   : > { %v7928_v29 = vmul.f32 %v7923_v61, %v7900_v11  ;;  %v7902_v28 = vpop.f32.mrb[177].mxu0  ;;  %v8232_v61 = vrot.slane %v8222_v63, %v15214_v1 }
 0xba6   : > { %v7929_v62 = vmul.f32 %v7927_v19, %v7902_v28  ;;  %v7904_v34 = vpop.f32.mrb[178].mxu0 }
 0xba7   : > { %v7905_v52 = vpop.f32.mrb[179].mxu0  ;;  %v7931_v43 = vsel %vm7930_vm15, %v7928_v29, 0.0  ;;  %v8294_v29 = vrot.slane %v8289_v33, %v15214_v1  ;;  %v10252_v34 = vld [vmem:[%s15500_s10 + $0xc] sm:$0x3] }
 0xba8   : > { %v7932_v38 = vsel %vm7930_vm15, %v7929_v62, 0.0  ;;  %v8298_v62 = vrot.slane %v8289_v33, %v15340_v44 }
 0xba9   : > { %v7933_v18 = vadd.f32 %v7932_v38, %v7931_v43  ;;  %v8304_v43 = vrot.slane %v8294_v29, %v15214_v1 }
 0xbaa   : > { %v8308_v25 = vrot.slane %v8298_v62, %v15214_v1 }
 0xbab   : > { %7934 = vadd.xlane.f32.xlu0 %v7933_v18 }
 0xbac   : > { %v7976_v10 = vpop.f32.mrb[180].mxu0 }
 0xbad   : > { %v8005_v9 = vmul.f32 %v8000_v36, %v7976_v10  ;;  %v7978_v39 = vpop.f32.mrb[181].mxu0  ;;  %v8365_v36 = vunpack.c.l.bf16 %v10252_v34 }
 0xbae   : > { %v8006_v22 = vmul.f32 %v8004_v37, %v7978_v39  ;;  %v7980_v59 = vpop.f32.mrb[182].mxu0 }
 0xbaf   : > { %v7981_v3 = vpop.f32.mrb[183].mxu0  ;;  %v8007_v46 = vsel %vm7930_vm15, %v8005_v9, 0.0  ;;  %v8370_v9 = vrot.slane %v8365_v36, %v15214_v1  ;;  %v10255_v59 = vld [vmem:[%s15500_s10 + $0xe] sm:$0x3] }
 0xbb0   : > { %v8008_v0 = vsel %vm7930_vm15, %v8006_v22, 0.0  ;;  %v8374_v22 = vrot.slane %v8365_v36, %v15340_v44 }
 0xbb1   : > { %v8009_v58 = vadd.f32 %v8008_v0, %v8007_v46  ;;  %v8380_v0 = vrot.slane %v8370_v9, %v15214_v1 }
 0xbb2   : > { %v8384_v17 = vrot.slane %v8374_v22, %v15214_v1 }
 0xbb3   : > { %8010 = vadd.xlane.f32.xlu0 %v8009_v58 }
 0xbb4   : > { %v8052_v23 = vpop.f32.mrb[184].mxu0 }
 0xbb5   : > { %v8081_v50 = vmul.f32 %v8076_v8, %v8052_v23  ;;  %v8054_v7 = vpop.f32.mrb[185].mxu0  ;;  %v8441_v8 = vunpack.c.l.bf16 %v10255_v59 }
 0xbb6   : > { %v8082_v49 = vmul.f32 %v8080_v20, %v8054_v7  ;;  %v8056_v55 = vpop.f32.mrb[186].mxu0 }
 0xbb7   : > { %v8057_v26 = vpop.f32.mrb[187].mxu0  ;;  %v8083_v32 = vsel %vm7930_vm15, %v8081_v50, 0.0  ;;  %v8446_v50 = vrot.slane %v8441_v8, %v15214_v1  ;;  %v10258_v55 = vld [vmem:[%s15500_s10 + $0x10] sm:$0x3] }
 0xbb8   : > { %v8084_v4 = vsel %vm7930_vm15, %v8082_v49, 0.0  ;;  %v8450_v49 = vrot.slane %v8441_v8, %v15340_v44 }
 0xbb9   : > { %v8085_v41 = vadd.f32 %v8084_v4, %v8083_v32  ;;  %v8456_v4 = vrot.slane %v8446_v50, %v15214_v1 }
 0xbba   : > { %v8460_v60 = vrot.slane %v8450_v49, %v15214_v1 }
 0xbbb   : > { %8086 = vadd.xlane.f32.xlu1 %v8085_v41 }
 0xbbc   : > { %v8128_v31 = vpop.f32.mrb[188].mxu0 }
 0xbbd   : > { %v8157_v40 = vmul.f32 %v8152_v16, %v8128_v31  ;;  %v8130_v48 = vpop.f32.mrb[189].mxu0  ;;  %v8517_v16 = vunpack.c.l.bf16 %v10258_v55 }
 0xbbe   : > { %v8158_v15 = vmul.f32 %v8156_v51, %v8130_v48  ;;  %v8132_v57 = vpop.f32.mrb[190].mxu0 }
 0xbbf   : > { %v8133_v35 = vpop.f32.mrb[191].mxu0  ;;  %v8159_v30 = vsel %vm7930_vm15, %v8157_v40, 0.0  ;;  %v8522_v40 = vrot.slane %v8517_v16, %v15214_v1  ;;  %v10261_v57 = vld [vmem:[%s15500_s10 + $0x12] sm:$0x3] }
 0xbc0   : > { %v8160_v5 = vsel %vm7930_vm15, %v8158_v15, 0.0  ;;  %v8526_v15 = vrot.slane %v8517_v16, %v15340_v44 }
 0xbc1   : > { %v8161_v14 = vadd.f32 %v8160_v5, %v8159_v30  ;;  %v8532_v5 = vrot.slane %v8522_v40, %v15214_v1 }
 0xbc2   : > { %v8536_v33 = vrot.slane %v8526_v15, %v15214_v1 }
 0xbc3   : > { %8162 = vadd.xlane.f32.xlu1 %v8161_v14 }
 0xbc4   : > { %v8204_v53 = vpop.f32.mrb[192].mxu0 }
 0xbc5   : > { %v8233_v19 = vmul.f32 %v8228_v27, %v8204_v53  ;;  %v8206_v11 = vpop.f32.mrb[193].mxu0  ;;  %v8593_v27 = vunpack.c.l.bf16 %v10261_v57 }
 0xbc6   : > { %v8234_v28 = vmul.f32 %v8232_v61, %v8206_v11  ;;  %v8208_v45 = vpop.f32.mrb[194].mxu0 }
 0xbc7   : > { %v8209_v54 = vpop.f32.mrb[195].mxu0  ;;  %v8235_v21 = vsel %vm7930_vm15, %v8233_v19, 0.0  ;;  %v8598_v19 = vrot.slane %v8593_v27, %v15214_v1  ;;  %v10264_v45 = vld [vmem:[%s15500_s10 + $0x14] sm:$0x3] }
 0xbc8   : > { %v8236_v52 = vsel %vm7930_vm15, %v8234_v28, 0.0  ;;  %v8602_v28 = vrot.slane %v8593_v27, %v15340_v44 }
 0xbc9   : > { %v8237_v38 = vadd.f32 %v8236_v52, %v8235_v21  ;;  %v8608_v52 = vrot.slane %v8598_v19, %v15214_v1 }
 0xbcb   : > { %8238 = vadd.xlane.f32.xlu0 %v8237_v38  ;;  %v8612_v38 = vrot.slane %v8602_v28, %v15214_v1 }
 0xbcc   : > { %v8280_v18 = vpop.f32.mrb[196].mxu0 }
 0xbcd   : > { %v8309_v37 = vmul.f32 %v8304_v43, %v8280_v18  ;;  %v8282_v10 = vpop.f32.mrb[197].mxu0  ;;  %v8669_v43 = vunpack.c.l.bf16 %v10264_v45 }
 0xbce   : > { %v8310_v39 = vmul.f32 %v8308_v25, %v8282_v10  ;;  %v8284_v13 = vpop.f32.mrb[198].mxu0 }
 0xbcf   : > { %v8311_v47 = vsel %vm7930_vm15, %v8309_v37, 0.0  ;;  %v8285_v24 = vpop.f32.mrb[199].mxu0  ;;  %v8674_v37 = vrot.slane %v8669_v43, %v15214_v1  ;;  %v10267_v13 = vld [vmem:[%s15500_s10 + $0x16] sm:$0x3] }
 0xbd0   : > { %v8312_v3 = vsel %vm7930_vm15, %v8310_v39, 0.0  ;;  %v8678_v39 = vrot.slane %v8669_v43, %v15340_v44 }
 0xbd1   : > { %v8313_v46 = vadd.f32 %v8312_v3, %v8311_v47  ;;  %v8684_v3 = vrot.slane %v8674_v37, %v15214_v1 }
 0xbd3   : > { %8314 = vadd.xlane.f32.xlu1 %v8313_v46  ;;  %v8745_v46 = vunpack.c.l.bf16 %v10267_v13 }
 0xbd4   : > { %v8356_v58 = vpop.f32.mrb[200].mxu0 }
 0xbd5   : > { %v8385_v20 = vmul.f32 %v8380_v0, %v8356_v58  ;;  %v8358_v23 = vpop.f32.mrb[201].mxu0  ;;  %v8688_v0 = vrot.slane %v8678_v39, %v15214_v1 }
 0xbd6   : > { %v8386_v7 = vmul.f32 %v8384_v17, %v8358_v23  ;;  %v8360_v42 = vpop.f32.mrb[202].mxu0 }
 0xbd7   : > { %v8387_v2 = vsel %vm7930_vm15, %v8385_v20, 0.0  ;;  %v8361_v12 = vpop.f32.mrb[203].mxu0  ;;  %v8750_v20 = vrot.slane %v8745_v46, %v15214_v1  ;;  %v10270_v42 = vld [vmem:[%s15500_s10 + $0x18] sm:$0x3] }
 0xbd8   : > { %v8388_v26 = vsel %vm7930_vm15, %v8386_v7, 0.0  ;;  %v8754_v7 = vrot.slane %v8745_v46, %v15340_v44 }
 0xbd9   : > { %v8389_v32 = vadd.f32 %v8388_v26, %v8387_v2  ;;  %v8760_v26 = vrot.slane %v8750_v20, %v15214_v1 }
 0xbdb   : > { %8390 = vadd.xlane.f32.xlu0 %v8389_v32  ;;  %v8821_v32 = vunpack.c.l.bf16 %v10270_v42 }
 0xbdc   : > { %v8432_v41 = vpop.f32.mrb[204].mxu0 }
 0xbdd   : > { %v8461_v51 = vmul.f32 %v8456_v4, %v8432_v41  ;;  %v8434_v31 = vpop.f32.mrb[205].mxu0  ;;  %v8764_v4 = vrot.slane %v8754_v7, %v15214_v1 }
 0xbde   : > { %v8462_v48 = vmul.f32 %v8460_v60, %v8434_v31  ;;  %v8436_v6 = vpop.f32.mrb[206].mxu0 }
 0xbdf   : > { %v8463_v63 = vsel %vm7930_vm15, %v8461_v51, 0.0  ;;  %v8437_v56 = vpop.f32.mrb[207].mxu0  ;;  %v8826_v51 = vrot.slane %v8821_v32, %v15214_v1  ;;  %v10273_v6 = vld [vmem:[%s15500_s10 + $0x1a] sm:$0x3] }
 0xbe0   : > { %v8464_v35 = vsel %vm7930_vm15, %v8462_v48, 0.0  ;;  %v8830_v48 = vrot.slane %v8821_v32, %v15340_v44 }
 0xbe1   : > { %v8465_v30 = vadd.f32 %v8464_v35, %v8463_v63  ;;  %v8836_v35 = vrot.slane %v8826_v51, %v15214_v1 }
 0xbe3   : > { %8466 = vadd.xlane.f32.xlu1 %v8465_v30  ;;  %v8897_v30 = vunpack.c.l.bf16 %v10273_v6 }
 0xbe4   : > { %v8508_v14 = vpop.f32.mrb[208].mxu0 }
 0xbe5   : > { %v8537_v61 = vmul.f32 %v8532_v5, %v8508_v14  ;;  %v8510_v53 = vpop.f32.mrb[209].mxu0  ;;  %v8840_v5 = vrot.slane %v8830_v48, %v15214_v1 }
 0xbe6   : > { %v8538_v11 = vmul.f32 %v8536_v33, %v8510_v53  ;;  %v8512_v29 = vpop.f32.mrb[210].mxu0 }
 0xbe7   : > { %v8539_v62 = vsel %vm7930_vm15, %v8537_v61, 0.0  ;;  %v8513_v34 = vpop.f32.mrb[211].mxu0  ;;  %v8902_v61 = vrot.slane %v8897_v30, %v15214_v1  ;;  %v10276_v29 = vld [vmem:[%s15500_s10 + $0x1c] sm:$0x3] }
 0xbe8   : > { %v8540_v54 = vsel %vm7930_vm15, %v8538_v11, 0.0  ;;  %v8906_v11 = vrot.slane %v8897_v30, %v15340_v44 }
 0xbe9   : > { %v8541_v21 = vadd.f32 %v8540_v54, %v8539_v62  ;;  %v8912_v54 = vrot.slane %v8902_v61, %v15214_v1 }
 0xbeb   : > { %8542 = vadd.xlane.f32.xlu0 %v8541_v21  ;;  %v8973_v21 = vunpack.c.l.bf16 %v10276_v29 }
 0xbec   : > { %v8584_v36 = vpop.f32.mrb[212].mxu0 }
 0xbed   : > { %v8613_v25 = vmul.f32 %v8608_v52, %v8584_v36  ;;  %v8586_v18 = vpop.f32.mrb[213].mxu0  ;;  %v8916_v52 = vrot.slane %v8906_v11, %v15214_v1 }
 0xbee   : > { %v8614_v10 = vmul.f32 %v8612_v38, %v8586_v18  ;;  %v8588_v9 = vpop.f32.mrb[214].mxu0 }
 0xbef   : > { %v8615_v22 = vsel %vm7930_vm15, %v8613_v25, 0.0  ;;  %v8589_v59 = vpop.f32.mrb[215].mxu0  ;;  %v8978_v25 = vrot.slane %v8973_v21, %v15214_v1  ;;  %v10279_v9 = vld [vmem:[%s15500_s10 + $0x1e] sm:$0x3] }
 0xbf0   : > { %v8616_v47 = vsel %vm7930_vm15, %v8614_v10, 0.0  ;;  %v8982_v10 = vrot.slane %v8973_v21, %v15340_v44 }
 0xbf1   : > { %v8617_v24 = vadd.f32 %v8616_v47, %v8615_v22  ;;  %v8988_v47 = vrot.slane %v8978_v25, %v15214_v1 }
 0xbf3   : > { %8618 = vadd.xlane.f32.xlu1 %v8617_v24  ;;  %v9049_v24 = vunpack.c.l.bf16 %v10279_v9 }
 0xbf4   : > { %v8660_v8 = vpop.f32.mrb[216].mxu0 }
 0xbf5   : > { %v8689_v17 = vmul.f32 %v8684_v3, %v8660_v8  ;;  %v8662_v58 = vpop.f32.mrb[217].mxu0  ;;  %v8992_v3 = vrot.slane %v8982_v10, %v15214_v1 }
 0xbf6   : > { %v8690_v23 = vmul.f32 %v8688_v0, %v8662_v58  ;;  %v8664_v50 = vpop.f32.mrb[218].mxu0 }
 0xbf7   : > { %v8691_v49 = vsel %vm7930_vm15, %v8689_v17, 0.0  ;;  %v8665_v55 = vpop.f32.mrb[219].mxu0  ;;  %v9054_v17 = vrot.slane %v9049_v24, %v15214_v1 }
 0xbf8   : > { %v8692_v2 = vsel %vm7930_vm15, %v8690_v23, 0.0  ;;  %v9058_v23 = vrot.slane %v9049_v24, %v15340_v44 }
 0xbf9   : > { %v8693_v12 = vadd.f32 %v8692_v2, %v8691_v49  ;;  %v9064_v55 = vrot.slane %v9054_v17, %v15214_v1 }
 0xbfa   : > { %v9068_v2 = vrot.slane %v9058_v23, %v15214_v1 }
 0xbfb   : > { %8694 = vadd.xlane.f32.xlu0 %v8693_v12 }
 0xbfc   : > { %v8736_v16 = vpop.f32.mrb[220].mxu0 }
 0xbfd   : > { %v8765_v60 = vmul.f32 %v8760_v26, %v8736_v16  ;;  %v8738_v41 = vpop.f32.mrb[221].mxu0 }
 0xbfe   : > { %v8766_v31 = vmul.f32 %v8764_v4, %v8738_v41  ;;  %v8740_v40 = vpop.f32.mrb[222].mxu0 }
 0xbff   : > { %v8767_v15 = vsel %vm7930_vm15, %v8765_v60, 0.0  ;;  %v8741_v57 = vpop.f32.mrb[223].mxu0 }
 0xc00   : > { %v8768_v63 = vsel %vm7930_vm15, %v8766_v31, 0.0 }
 0xc01   : > { %v8769_v56 = vadd.f32 %v8768_v63, %v8767_v15 }
 0xc03   : > { %8770 = vadd.xlane.f32.xlu1 %v8769_v56 }
 0xc04   : > { %v8812_v27 = vpop.f32.mrb[224].mxu0 }
 0xc05   : > { %v8841_v33 = vmul.f32 %v8836_v35, %v8812_v27  ;;  %v8814_v14 = vpop.f32.mrb[225].mxu0 }
 0xc06   : > { %v8842_v53 = vmul.f32 %v8840_v5, %v8814_v14  ;;  %v8816_v19 = vpop.f32.mrb[226].mxu0 }
 0xc07   : > { %v8843_v28 = vsel %vm7930_vm15, %v8841_v33, 0.0  ;;  %v8817_v45 = vpop.f32.mrb[227].mxu0 }
 0xc08   : > { %v8844_v62 = vsel %vm7930_vm15, %v8842_v53, 0.0 }
 0xc09   : > { %v8845_v34 = vadd.f32 %v8844_v62, %v8843_v28 }
 0xc0b   : > { %8846 = vadd.xlane.f32.xlu0 %v8845_v34 }
 0xc0c   : > { %v8888_v43 = vpop.f32.mrb[228].mxu0 }
 0xc0d   : > { %v8917_v38 = vmul.f32 %v8912_v54, %v8888_v43  ;;  %v8890_v36 = vpop.f32.mrb[229].mxu0 }
 0xc0e   : > { %v8918_v18 = vmul.f32 %v8916_v52, %v8890_v36  ;;  %v8892_v37 = vpop.f32.mrb[230].mxu0  ;;  %v10280_v36 = vld [vmem:[#allocation2] ss:$0 sm:$0xff] }
 0xc0f   : > { %v8919_v39 = vsel %vm7930_vm15, %v8917_v38, 0.0  ;;  %v8893_v13 = vpop.f32.mrb[231].mxu0 }
 0xc10   : > { %v8920_v22 = vsel %vm7930_vm15, %v8918_v18, 0.0 }
 0xc11   : > { %v8921_v59 = vadd.f32 %v8920_v22, %v8919_v39 }
 0xc13   : > { %8922 = vadd.xlane.f32.xlu1 %v8921_v59 }
 0xc14   : > { %v8964_v46 = vpop.f32.mrb[232].mxu0 }
 0xc15   : > { %v8993_v0 = vmul.f32 %v8988_v47, %v8964_v46  ;;  %v8966_v8 = vpop.f32.mrb[233].mxu0 }
 0xc16   : > { %v8994_v58 = vmul.f32 %v8992_v3, %v8966_v8  ;;  %v8968_v20 = vpop.f32.mrb[234].mxu0 }
 0xc17   : > { %v8995_v50 = vsel %vm7930_vm15, %v8993_v0, 0.0  ;;  %v8969_v7 = vpop.f32.mrb[235].mxu0 }
 0xc18   : > { %v8996_v42 = vsel %vm7930_vm15, %v8994_v58, 0.0 }
 0xc19   : > { %v8997_v49 = vadd.f32 %v8996_v42, %v8995_v50 }
 0xc1b   : > { %8998 = vadd.xlane.f32.xlu0 %v8997_v49 }
 0xc1c   : > { %v9040_v12 = vpop.f32.mrb[236].mxu0 }
 0xc1d   : > { %v9069_v26 = vmul.f32 %v9064_v55, %v9040_v12  ;;  %v9042_v32 = vpop.f32.mrb[237].mxu0 }
 0xc1e   : > { %v9070_v4 = vmul.f32 %v9068_v2, %v9042_v32  ;;  %v9044_v16 = vpop.f32.mrb[238].mxu0 }
 0xc1f   : > { %v9071_v60 = vsel %vm7930_vm15, %v9069_v26, 0.0  ;;  %v9045_v41 = vpop.f32.mrb[239].mxu0 }
 0xc20   : > { %v9072_v44 = vsel %vm7930_vm15, %v9070_v4, 0.0 }
 0xc21   : > { %v9073_v51 = vadd.f32 %v9072_v44, %v9071_v60 }
 0xc23   : > { %9074 = vadd.xlane.f32.xlu1 %v9073_v51 }
 0xc38   : > { %v7935_v31 = vpop.xlane.xlu0 %7934 }
 0xc40   : > { %v8011_v40 = vpop.xlane.xlu0 %8010 }
 0xc41   : > { %v8012_v6 = vadd.f32 %v8011_v40, %v7935_v31 }
 0xc48   : > { %v8087_v48 = vpop.xlane.xlu1 %8086 }
 0xc49   : > { %v8088_v57 = vadd.f32 %v8087_v48, %v8012_v6 }
 0xc50   : > { %v8163_v15 = vpop.xlane.xlu1 %8162 }
 0xc51   : > { %v8164_v63 = vadd.f32 %v8163_v15, %v8088_v57 }
 0xc58   : > { %v8239_v1 = vpop.xlane.xlu0 %8238 }
 0xc59   : > { %v8240_v35 = vadd.f32 %v8239_v1, %v8164_v63 }
 0xc60   : > { %v8315_v56 = vpop.xlane.xlu1 %8314 }
 0xc61   : > { %v8316_v5 = vadd.f32 %v8315_v56, %v8240_v35 }
 0xc68   : > { %v8391_v30 = vpop.xlane.xlu0 %8390 }
 0xc69   : > { %v8392_v33 = vadd.f32 %v8391_v30, %v8316_v5 }
 0xc70   : > { %v8467_v27 = vpop.xlane.xlu1 %8466 }
 0xc71   : > { %v8468_v61 = vadd.f32 %v8467_v27, %v8392_v33 }
 0xc78   : > { %v8543_v14 = vpop.xlane.xlu0 %8542 }
 0xc79   : > { %v8544_v19 = vadd.f32 %v8543_v14, %v8468_v61 }
 0xc80   : > { %v8619_v53 = vpop.xlane.xlu1 %8618 }
 0xc81   : > { %v8620_v29 = vadd.f32 %v8619_v53, %v8544_v19 }
 0xc88   : > { %v8695_v11 = vpop.xlane.xlu0 %8694 }
 0xc89   : > { %v8696_v45 = vadd.f32 %v8695_v11, %v8620_v29 }
 0xc90   : > { %v8771_v28 = vpop.xlane.xlu1 %8770 }
 0xc91   : > { %v8772_v34 = vadd.f32 %v8771_v28, %v8696_v45 }
 0xc98   : > { %v8847_v62 = vpop.xlane.xlu0 %8846 }
 0xc99   : > { %v8848_v21 = vadd.f32 %v8847_v62, %v8772_v34 }
 0xca0   : > { %v8923_v54 = vpop.xlane.xlu1 %8922 }
 0xca1   : > { %v8924_v43 = vadd.f32 %v8923_v54, %v8848_v21 }
 0xca8   : > { %v8999_v52 = vpop.xlane.xlu0 %8998 }
 0xca9   : > { %v9000_v38 = vadd.f32 %v8999_v52, %v8924_v43 }
 0xcb0   : > { %v9075_v25 = vpop.xlane.xlu1 %9074 }
 0xcb1   : > { %v9076_v18 = vadd.f32 %v9075_v25, %v9000_v38 }
 0xcb3   : > { %v9084_v37 = vadd.f32 %v10280_v36, %v9076_v18 }
 0xcb5   : > { %v9085_v10 = vsub.f32 0.0, %v9084_v37 }
 0xcb7   : > { %v9086_v9 = vmul.f32 1.442695, %v9085_v10 }
 0xcb9   : > { %12523 = vpow2.f32 %v9086_v9 }
 0xcc3   : > { %v12524_v39 = vpop.eup %12523 }
 0xcc4   : > { %v9088_v13 = vadd.f32 1.0, %v12524_v39 }
 0xcc6   : > { %12525 = vrcp.f32 %v9088_v13 }
 0xcd0   : > { %v12526_v22 = vpop.eup %12525 }
 0xcd1   : > { %v9090_v59 = vmin.f32 %v12526_v22, 1.0 }
 0xcd3   : > { %9092 = vst.msk [vmem:[%s413_s26] sm:$0xf] %vm9091_vm0, %v9090_v59 }
 0xcd4 PF: > { %s24_s23 = sadd.s32 1, %s12533_s23  }
 0xcd5   : > { %p21_p4 = scmp.ge.s32.totalorder %s24_s23, 4  }
 0xcd7   :  { %23 = sbr.rel (!%p21_p4) target bundleno = 3 (0x3), region = 188 }

</bundles_post_ra>
